<compile_context>
chip_gen: v6e
topology: v6e:2x2x1
jax: 0.10.0
libtpu: 0.0.40
codegen_flags: <defaults>
</compile_context>

<pallas_src>
import math

import jax
import jax.numpy as jnp
from jax.experimental import pallas as pl
from jax.experimental.pallas import tpu as pltpu

CONFIG = dict(
    speech_input_dim=8,
    speech_hidden_dim=32,
    zipformer_blocks=2,
    reduction_factors=2,
    pretrained_model_name="synthetic-bert-tiny",
    bert_hidden_dim=32,
    adapter_dim=32,
    fusion_dim=32,
)
VOCAB_SIZE = 100
MAX_TEXT_LEN = 8
FF_MULT = 4
TEXT_LAYERS = 2
SLAB_LANES = 128          # lane width of the packed bias/LN parameter slabs


# --------------------------- in-kernel helpers ---------------------------

def _ln_f32(x, g, b, eps=1e-5):
    mu = jnp.mean(x, axis=-1, keepdims=True)
    var = jnp.mean(jnp.square(x - mu), axis=-1, keepdims=True)
    return (x - mu) * jax.lax.rsqrt(var + eps) * g + b


def _softmax_rows(s):
    m = jnp.max(s, axis=-1, keepdims=True)
    p = jnp.exp(s - m)
    denom = jnp.sum(p, axis=-1, keepdims=True)
    return p * pl.reciprocal(denom, approx=True)        # EUP slot


def _nan_flag(v):
    """(1,1) float flag: 1.0 iff any NaN in v."""
    f = jnp.max(jnp.isnan(v).astype(jnp.float32), axis=-1, keepdims=True)
    return jnp.max(f, axis=0, keepdims=True)


def _transformer_block(x, wqkv, wo, wf1, wf2, slab, attn_bias, scale):
    """Post-LN transformer block on a single batch element.  x: (S, H)."""
    h = x.shape[-1]
    ff = wf1.shape[-1]
    bq, bk, bv = slab[0:1, :h], slab[1:2, :h], slab[2:3, :h]
    bo = slab[3:4, :h]
    g1, b1 = slab[4:5, :h], slab[5:6, :h]
    bf1, bf2 = slab[6:7, :ff], slab[7:8, :h]
    g2, b2 = slab[8:9, :h], slab[9:10, :h]

    # Three separate (H,H) matmuls (no lane-offset slicing of a fused result).
    q = jnp.dot(x, wqkv[0], preferred_element_type=jnp.float32) + bq
    k = jnp.dot(x, wqkv[1], preferred_element_type=jnp.float32) + bk
    v = jnp.dot(x, wqkv[2], preferred_element_type=jnp.float32) + bv

    s = jnp.einsum("qd,kd->qk", q, k, preferred_element_type=jnp.float32) * scale
    if attn_bias is not None:
        s = s + attn_bias                                 # (1, S) key bias
    p = _softmax_rows(s)
    a = jnp.dot(p, v, preferred_element_type=jnp.float32)
    a = jnp.dot(a, wo, preferred_element_type=jnp.float32) + bo

    h1 = _ln_f32(x + a, g1, b1)

    f = jnp.dot(h1, wf1, preferred_element_type=jnp.float32) + bf1
    # TODO(synk): torch nn.GELU defaults to exact erf; the tanh approximation
    # (Mosaic-safe) is used, giving tiny numeric drift.
    f = jax.nn.gelu(f)
    f = jnp.dot(f, wf2, preferred_element_type=jnp.float32) + bf2

    return _ln_f32(h1 + f, g2, b2)


def _make_fused_forward(S, L, H, Ht, A, F, n_sp, n_tx):
    sp_scale = 1.0 / math.sqrt(H)
    tx_scale = 1.0 / math.sqrt(Ht)
    fu_scale = 1.0 / math.sqrt(F)

    def kernel(sp_x_ref, sp_pw_ref, sp_pb_ref,
               sp_wqkv_ref, sp_wo_ref, sp_wf1_ref, sp_wf2_ref, sp_slab_ref,
               tx_emb_ref, tx_pre_ref,
               tx_wqkv_ref, tx_wo_ref, tx_wf1_ref, tx_wf2_ref, tx_slab_ref,
               attn_bias_ref,
               ad_w_ref, ad_slab_ref,
               fu_wqkv_ref, fu_wo_ref, fu_slab_ref,
               out_ref, flags_ref):
        # ---------------- speech path (input proj + blocks) ----------------
        x = sp_x_ref[...].astype(jnp.float32)              # (S, Din)
        h = jnp.dot(x, sp_pw_ref[...],
                    preferred_element_type=jnp.float32) + sp_pb_ref[...]
        for layer in range(n_sp):                          # static unroll
            h = _transformer_block(h, sp_wqkv_ref[layer], sp_wo_ref[layer],
                                   sp_wf1_ref[layer], sp_wf2_ref[layer],
                                   sp_slab_ref[layer], None, sp_scale)
        speech_feat = h                                    # (S, H)

        # ---------------- text path (embedding LN + blocks) ----------------
        bias = attn_bias_ref[...].astype(jnp.float32)      # (1, L) key bias
        pre = tx_pre_ref[...]
        t = _ln_f32(tx_emb_ref[...].astype(jnp.float32),
                    pre[0:1, :Ht], pre[1:2, :Ht])
        for layer in range(n_tx):
            t = _transformer_block(t, tx_wqkv_ref[layer], tx_wo_ref[layer],
                                   tx_wf1_ref[layer], tx_wf2_ref[layer],
                                   tx_slab_ref[layer], bias, tx_scale)
        text_feat = t                                      # (L, Ht)

        # ---------------- text adapter (Linear + GELU + LN) ----------------
        ad = ad_slab_ref[...]
        ta = jnp.dot(text_feat, ad_w_ref[...],
                     preferred_element_type=jnp.float32) + ad[0:1, :A]
        ta = jax.nn.gelu(ta)
        ta = _ln_f32(ta, ad[1:2, :A], ad[2:3, :A])         # (L, A)

        # ---------------- cross-attention fusion ----------------
        fs = fu_slab_ref[...]
        fw = fu_wqkv_ref[...]
        q = jnp.dot(speech_feat, fw[0],
                    preferred_element_type=jnp.float32) + fs[0:1, :F]
        k = jnp.dot(ta, fw[1],
                    preferred_element_type=jnp.float32) + fs[1:2, :F]
        v = jnp.dot(ta, fw[2],
                    preferred_element_type=jnp.float32) + fs[2:3, :F]
        s = jnp.einsum("qd,kd->qk", q, k,
                       preferred_element_type=jnp.float32) * fu_scale
        s = s + bias
        p = _softmax_rows(s)
        o = jnp.dot(p, v, preferred_element_type=jnp.float32)
        o = jnp.dot(o, fu_wo_ref[...],
                    preferred_element_type=jnp.float32) + fs[3:4, :F]
        o = _ln_f32(o, fs[4:5, :F], fs[5:6, :F])           # (S, F)

        out_ref[...] = o.reshape(1, S, F).astype(out_ref.dtype)

        # ------------- per-stage NaN diagnostics (torch.isnan prints) -------------
        idx = jax.lax.broadcasted_iota(jnp.int32, (1, 4), 1)
        z = jnp.zeros((1, 4), jnp.float32)
        flags = jnp.where(idx == 0, _nan_flag(speech_feat), z)
        flags = flags + jnp.where(idx == 1, _nan_flag(text_feat), z)
        flags = flags + jnp.where(idx == 2, _nan_flag(ta), z)
        flags = flags + jnp.where(idx == 3, _nan_flag(o), z)
        flags_ref[...] = flags.reshape(1, 1, 4)

    return kernel


# --------------------------- parameter init ---------------------------

def _pack_rows(vectors):
    """Pack 1-D parameter vectors (len <= 128) into a lane-dense (rows,128) slab."""
    rows = []
    for v in vectors:
        assert v.shape[0] <= SLAB_LANES
        rows.append(jnp.zeros((SLAB_LANES,), jnp.float32).at[: v.shape[0]].set(v))
    return jnp.stack(rows, axis=0)


def _dense(key, din, dout):
    w = jax.random.normal(key, (din, dout), jnp.float32) * (1.0 / math.sqrt(din))
    b = jnp.zeros((dout,), jnp.float32)
    return w, b


def init_block_stack(key, n_blocks, h, ff):
    assert h <= SLAB_LANES and ff <= SLAB_LANES
    wqkv, wo, wf1, wf2, slab = [], [], [], [], []
    for kb in jax.random.split(key, n_blocks):
        k0, k1, k2, k3, k4, k5 = jax.random.split(kb, 6)
        wq, bq = _dense(k0, h, h)
        wk, bk = _dense(k1, h, h)
        wv, bv = _dense(k2, h, h)
        wo_, bo = _dense(k3, h, h)
        f1, bf1 = _dense(k4, h, ff)
        f2, bf2 = _dense(k5, ff, h)
        ones = jnp.ones((h,), jnp.float32)
        zeros = jnp.zeros((h,), jnp.float32)
        wqkv.append(jnp.stack([wq, wk, wv], axis=0))       # (3, h, h)
        wo.append(wo_)
        wf1.append(f1)
        wf2.append(f2)
        # slab rows: bq, bk, bv, bo, ln1_g, ln1_b, bf1, bf2, ln2_g, ln2_b
        slab.append(_pack_rows([bq, bk, bv, bo, ones, zeros, bf1, bf2, ones, zeros]))
    return dict(wqkv=jnp.stack(wqkv), wo=jnp.stack(wo),
                wf1=jnp.stack(wf1), wf2=jnp.stack(wf2), slab=jnp.stack(slab))


def init_asr_encoder(key, cfg):
    h = cfg["speech_hidden_dim"]
    hb = cfg["bert_hidden_dim"]
    a = cfg["adapter_dim"]
    f = cfg["fusion_dim"]
    ks = jax.random.split(key, 10)

    proj_w, proj_b = _dense(ks[0], cfg["speech_input_dim"], h)
    speech = dict(
        proj_w=proj_w,
        proj_b=proj_b.reshape(1, h),
        blocks=init_block_stack(ks[1], cfg["zipformer_blocks"], h, FF_MULT * h),
    )

    # TODO(synk): pretrained BERT weights (cfg['pretrained_model_name']) cannot be
    # loaded in-script; a deterministic synthetic 2-layer transformer stands in.
    text = dict(
        tok_emb=jax.random.normal(ks[2], (VOCAB_SIZE, hb), jnp.float32) * 0.02,
        pos_emb=jax.random.normal(ks[3], (MAX_TEXT_LEN, hb), jnp.float32) * 0.02,
        pre_slab=_pack_rows([jnp.ones((hb,), jnp.float32),
                             jnp.zeros((hb,), jnp.float32)]),
        blocks=init_block_stack(ks[4], TEXT_LAYERS, hb, FF_MULT * hb),
    )

    ad_w, ad_b = _dense(ks[5], hb, a)
    adapter = dict(
        w=ad_w,
        slab=_pack_rows([ad_b, jnp.ones((a,), jnp.float32), jnp.zeros((a,), jnp.float32)]),
    )

    assert h == a, "fused q/k/v weight stack assumes audio_dim == adapter_dim"
    wq, bq = _dense(ks[6], h, f)
    wk, bk = _dense(ks[7], a, f)
    wv, bv = _dense(ks[8], a, f)
    wo, bo = _dense(ks[9], f, f)
    fusion = dict(
        wqkv=jnp.stack([wq, wk, wv], axis=0),              # (3, dim, f)
        wo=wo,
        slab=_pack_rows([bq, bk, bv, bo,
                         jnp.ones((f,), jnp.float32), jnp.zeros((f,), jnp.float32)]),
    )
    return dict(speech=speech, text=text, adapter=adapter, fusion=fusion)


# --------------------------- forward pass (one pallas_call) ---------------------------

def asr_encoder_forward(params, cfg, speech_input, utterance_ids, utterance_mask):
    B, T, Din = speech_input.shape
    r = cfg["reduction_factors"]
    S = T // r
    H = cfg["speech_hidden_dim"]
    Ht = cfg["bert_hidden_dim"]
    A = cfg["adapter_dim"]
    F = cfg["fusion_dim"]
    L = utterance_ids.shape[1]
    n_sp = cfg["zipformer_blocks"]
    n_tx = TEXT_LAYERS

    sp, tx, ad, fu = params["speech"], params["text"], params["adapter"], params["fusion"]

    # Temporal reduction folded BEFORE the (linear) input projection:
    # mean_t(W x_t + b) == W mean_t(x_t) + b, so no extra pallas_call and r-x
    # less speech data enters the kernel.
    x_red = speech_input.astype(jnp.float32).reshape(B, S, r, Din).mean(axis=2)

    # Embedding gather + positional add stay in XLA (gather); the LayerNorm is
    # folded into the fused kernel.
    emb = jnp.take(tx["tok_emb"], utterance_ids, axis=0) + tx["pos_emb"][None, :L, :]

    # Additive key-padding bias, precomputed once and reused by every text
    # block and by the fusion cross-attention.
    attn_bias = (utterance_mask.astype(jnp.float32) - 1.0)[:, None, :] * 1e9   # (B,1,L)

    kernel = _make_fused_forward(S, L, H, Ht, A, F, n_sp, n_tx)

    def bspec(arr):                       # full-array block, broadcast over batch grid
        z = (0,) * arr.ndim
        return pl.BlockSpec(arr.shape, lambda b, _z=z: _z)

    def batched(tail):                    # one batch element per grid step (leading dim squeezed)
        z = (0,) * len(tail)
        return pl.BlockSpec((None,) + tuple(tail), lambda b, _z=z: (b,) + _z)

    inputs = [
        x_red, sp["proj_w"], sp["proj_b"],
        sp["blocks"]["wqkv"], sp["blocks"]["wo"], sp["blocks"]["wf1"],
        sp["blocks"]["wf2"], sp["blocks"]["slab"],
        emb, tx["pre_slab"],
        tx["blocks"]["wqkv"], tx["blocks"]["wo"], tx["blocks"]["wf1"],
        tx["blocks"]["wf2"], tx["blocks"]["slab"],
        attn_bias,
        ad["w"], ad["slab"],
        fu["wqkv"], fu["wo"], fu["slab"],
    ]
    in_specs = [
        batched((S, Din)), bspec(sp["proj_w"]), bspec(sp["proj_b"]),
        bspec(sp["blocks"]["wqkv"]), bspec(sp["blocks"]["wo"]), bspec(sp["blocks"]["wf1"]),
        bspec(sp["blocks"]["wf2"]), bspec(sp["blocks"]["slab"]),
        batched((L, Ht)), bspec(tx["pre_slab"]),
        bspec(tx["blocks"]["wqkv"]), bspec(tx["blocks"]["wo"]), bspec(tx["blocks"]["wf1"]),
        bspec(tx["blocks"]["wf2"]), bspec(tx["blocks"]["slab"]),
        batched((1, L)),
        bspec(ad["w"]), bspec(ad["slab"]),
        bspec(fu["wqkv"]), bspec(fu["wo"]), bspec(fu["slab"]),
    ]
    out_shape = (
        jax.ShapeDtypeStruct((B, S, F), jnp.float32),
        jax.ShapeDtypeStruct((B, 1, 4), jnp.float32),
    )
    out_specs = (
        pl.BlockSpec((1, S, F), lambda b: (b, 0, 0)),
        pl.BlockSpec((1, 1, 4), lambda b: (b, 0, 0)),
    )

    fused, flags = pl.pallas_call(
        kernel,
        out_shape=out_shape,
        grid=(B,),
        in_specs=in_specs,
        out_specs=out_specs,
        compiler_params=pltpu.CompilerParams(
            dimension_semantics=("parallel",)),   # v7x: batch elements across the 2 TCs
    )(*inputs)

    diags = {
        "SpeechEncoder": jnp.any(flags[:, 0, 0] > 0.0),
        "TextEncoder": jnp.any(flags[:, 0, 1] > 0.0),
        "TextAdapter": jnp.any(flags[:, 0, 2] > 0.0),
        "CrossAttention": jnp.any(flags[:, 0, 3] > 0.0),
    }
    return fused, diags


@jax.jit
def forward(params, speech_input, utterance_ids, utterance_mask):
    return asr_encoder_forward(params, CONFIG, speech_input,
                               utterance_ids, utterance_mask)


# --------------------------- main ---------------------------

if __name__ == "__main__":
    cfg = CONFIG
    key = jax.random.PRNGKey(0)
    kp, ks, ki = jax.random.split(key, 3)
    params = init_asr_encoder(kp, cfg)

    B, T, L = 2, 16, MAX_TEXT_LEN
    speech_input = jax.random.normal(ks, (B, T, cfg["speech_input_dim"]), jnp.float32)
    utterance_ids = jax.random.randint(ki, (B, L), 0, VOCAB_SIZE, jnp.int32)
    utterance_mask = jnp.array([[1.0] * L, [1.0] * (L - 2) + [0.0] * 2], jnp.float32)

    fused, diags = forward(params, speech_input, utterance_ids, utterance_mask)
    jax.block_until_ready(fused)
    for name, flag in diags.items():
        assert not bool(flag), f"{name} output NaN"
    assert fused.shape == (B, T // cfg["reduction_factors"], cfg["fusion_dim"])
    print("KERNEL_OK")
</pallas_src>

<mosaic_0001>
module attributes {stable_mosaic.version = 11 : i64} {
  func.func @kernel(%arg0: i32, %arg1: memref<1x8x8xf32, #tpu.memory_space<vmem>>, %arg2: memref<8x32xf32, #tpu.memory_space<vmem>>, %arg3: memref<1x32xf32, #tpu.memory_space<vmem>>, %arg4: memref<2x3x32x32xf32, #tpu.memory_space<vmem>>, %arg5: memref<2x32x32xf32, #tpu.memory_space<vmem>>, %arg6: memref<2x32x128xf32, #tpu.memory_space<vmem>>, %arg7: memref<2x128x32xf32, #tpu.memory_space<vmem>>, %arg8: memref<2x10x128xf32, #tpu.memory_space<vmem>>, %arg9: memref<1x8x32xf32, #tpu.memory_space<vmem>>, %arg10: memref<2x128xf32, #tpu.memory_space<vmem>>, %arg11: memref<2x3x32x32xf32, #tpu.memory_space<vmem>>, %arg12: memref<2x32x32xf32, #tpu.memory_space<vmem>>, %arg13: memref<2x32x128xf32, #tpu.memory_space<vmem>>, %arg14: memref<2x128x32xf32, #tpu.memory_space<vmem>>, %arg15: memref<2x10x128xf32, #tpu.memory_space<vmem>>, %arg16: memref<1x1x8xf32, #tpu.memory_space<vmem>>, %arg17: memref<32x32xf32, #tpu.memory_space<vmem>>, %arg18: memref<3x128xf32, #tpu.memory_space<vmem>>, %arg19: memref<3x32x32xf32, #tpu.memory_space<vmem>>, %arg20: memref<32x32xf32, #tpu.memory_space<vmem>>, %arg21: memref<6x128xf32, #tpu.memory_space<vmem>>, %arg22: memref<1x8x32xf32, #tpu.memory_space<vmem>>, %arg23: memref<1x1x4xf32, #tpu.memory_space<vmem>>) attributes {dimension_semantics = [#tpu.dimension_semantics<parallel>], iteration_bounds = array<i64: 2>, scalar_prefetch = 0 : i64, scratch_operands = 0 : i64, tpu.core_type = #tpu.core_type<tc>, window_params = [{transform_indices = @transform_0, window_bounds = array<i64: 1, 8, 8>}, {pipeline_mode = #tpu.pipeline_mode<synchronous>, transform_indices = @transform_1, window_bounds = array<i64: 8, 32>}, {pipeline_mode = #tpu.pipeline_mode<synchronous>, transform_indices = @transform_2, window_bounds = array<i64: 1, 32>}, {pipeline_mode = #tpu.pipeline_mode<synchronous>, transform_indices = @transform_3, window_bounds = array<i64: 2, 3, 32, 32>}, {pipeline_mode = #tpu.pipeline_mode<synchronous>, transform_indices = @transform_4, window_bounds = array<i64: 2, 32, 32>}, {pipeline_mode = #tpu.pipeline_mode<synchronous>, transform_indices = @transform_5, window_bounds = array<i64: 2, 32, 128>}, {pipeline_mode = #tpu.pipeline_mode<synchronous>, transform_indices = @transform_6, window_bounds = array<i64: 2, 128, 32>}, {pipeline_mode = #tpu.pipeline_mode<synchronous>, transform_indices = @transform_7, window_bounds = array<i64: 2, 10, 128>}, {transform_indices = @transform_8, window_bounds = array<i64: 1, 8, 32>}, {pipeline_mode = #tpu.pipeline_mode<synchronous>, transform_indices = @transform_9, window_bounds = array<i64: 2, 128>}, {pipeline_mode = #tpu.pipeline_mode<synchronous>, transform_indices = @transform_10, window_bounds = array<i64: 2, 3, 32, 32>}, {pipeline_mode = #tpu.pipeline_mode<synchronous>, transform_indices = @transform_11, window_bounds = array<i64: 2, 32, 32>}, {pipeline_mode = #tpu.pipeline_mode<synchronous>, transform_indices = @transform_12, window_bounds = array<i64: 2, 32, 128>}, {pipeline_mode = #tpu.pipeline_mode<synchronous>, transform_indices = @transform_13, window_bounds = array<i64: 2, 128, 32>}, {pipeline_mode = #tpu.pipeline_mode<synchronous>, transform_indices = @transform_14, window_bounds = array<i64: 2, 10, 128>}, {transform_indices = @transform_15, window_bounds = array<i64: 1, 1, 8>}, {pipeline_mode = #tpu.pipeline_mode<synchronous>, transform_indices = @transform_16, window_bounds = array<i64: 32, 32>}, {pipeline_mode = #tpu.pipeline_mode<synchronous>, transform_indices = @transform_17, window_bounds = array<i64: 3, 128>}, {pipeline_mode = #tpu.pipeline_mode<synchronous>, transform_indices = @transform_18, window_bounds = array<i64: 3, 32, 32>}, {pipeline_mode = #tpu.pipeline_mode<synchronous>, transform_indices = @transform_19, window_bounds = array<i64: 32, 32>}, {pipeline_mode = #tpu.pipeline_mode<synchronous>, transform_indices = @transform_20, window_bounds = array<i64: 6, 128>}, {transform_indices = @transform_21, window_bounds = array<i64: 1, 8, 32>}, {transform_indices = @transform_22, window_bounds = array<i64: 1, 1, 4>}]} {
    %c0 = arith.constant 0 : index
    %c0_0 = arith.constant 0 : index
    %c0_1 = arith.constant 0 : index
    %0 = vector.load %arg1[%c0, %c0_0, %c0_1] : memref<1x8x8xf32, #tpu.memory_space<vmem>>, vector<1x8x8xf32>
    %1 = vector.shape_cast %0 : vector<1x8x8xf32> to vector<8x8xf32>
    %c0_2 = arith.constant 0 : index
    %c0_3 = arith.constant 0 : index
    %2 = vector.load %arg2[%c0_2, %c0_3] : memref<8x32xf32, #tpu.memory_space<vmem>>, vector<8x32xf32>
    %cst = arith.constant dense<0.000000e+00> : vector<8x32xf32>
    %3 = tpu.matmul %1, %2, %cst {dimension_numbers = #tpu.dot_dimension_numbers<[1], [0], [0], [1], [0, 0, 1, 1], [], []>} : vector<8x8xf32>, vector<8x32xf32>, vector<8x32xf32> -> vector<8x32xf32>
    %c0_4 = arith.constant 0 : index
    %c0_5 = arith.constant 0 : index
    %4 = vector.load %arg3[%c0_4, %c0_5] : memref<1x32xf32, #tpu.memory_space<vmem>>, vector<1x32xf32>
    %5 = vector.broadcast %4 : vector<1x32xf32> to vector<8x32xf32>
    %6 = arith.addf %3, %5 : vector<8x32xf32>
    %c0_6 = arith.constant 0 : index
    %c0_7 = arith.constant 0 : index
    %c0_8 = arith.constant 0 : index
    %c0_9 = arith.constant 0 : index
    %7 = vector.load %arg4[%c0_6, %c0_7, %c0_8, %c0_9] : memref<2x3x32x32xf32, #tpu.memory_space<vmem>>, vector<1x3x32x32xf32>
    %8 = vector.shape_cast %7 : vector<1x3x32x32xf32> to vector<3x32x32xf32>
    %c0_10 = arith.constant 0 : index
    %c0_11 = arith.constant 0 : index
    %c0_12 = arith.constant 0 : index
    %9 = vector.load %arg5[%c0_10, %c0_11, %c0_12] : memref<2x32x32xf32, #tpu.memory_space<vmem>>, vector<1x32x32xf32>
    %10 = vector.shape_cast %9 : vector<1x32x32xf32> to vector<32x32xf32>
    %c0_13 = arith.constant 0 : index
    %c0_14 = arith.constant 0 : index
    %c0_15 = arith.constant 0 : index
    %11 = vector.load %arg6[%c0_13, %c0_14, %c0_15] : memref<2x32x128xf32, #tpu.memory_space<vmem>>, vector<1x32x128xf32>
    %12 = vector.shape_cast %11 : vector<1x32x128xf32> to vector<32x128xf32>
    %c0_16 = arith.constant 0 : index
    %c0_17 = arith.constant 0 : index
    %c0_18 = arith.constant 0 : index
    %13 = vector.load %arg7[%c0_16, %c0_17, %c0_18] : memref<2x128x32xf32, #tpu.memory_space<vmem>>, vector<1x128x32xf32>
    %14 = vector.shape_cast %13 : vector<1x128x32xf32> to vector<128x32xf32>
    %c0_19 = arith.constant 0 : index
    %c0_20 = arith.constant 0 : index
    %c0_21 = arith.constant 0 : index
    %15 = vector.load %arg8[%c0_19, %c0_20, %c0_21] : memref<2x10x128xf32, #tpu.memory_space<vmem>>, vector<1x10x128xf32>
    %16 = vector.shape_cast %15 : vector<1x10x128xf32> to vector<10x128xf32>
    %17 = vector.extract_strided_slice %16 {offsets = [0, 0], sizes = [1, 32], strides = [1, 1]} : vector<10x128xf32> to vector<1x32xf32>
    %18 = vector.extract_strided_slice %16 {offsets = [1, 0], sizes = [1, 32], strides = [1, 1]} : vector<10x128xf32> to vector<1x32xf32>
    %19 = vector.extract_strided_slice %16 {offsets = [2, 0], sizes = [1, 32], strides = [1, 1]} : vector<10x128xf32> to vector<1x32xf32>
    %20 = vector.extract_strided_slice %16 {offsets = [3, 0], sizes = [1, 32], strides = [1, 1]} : vector<10x128xf32> to vector<1x32xf32>
    %21 = vector.extract_strided_slice %16 {offsets = [4, 0], sizes = [1, 32], strides = [1, 1]} : vector<10x128xf32> to vector<1x32xf32>
    %22 = vector.extract_strided_slice %16 {offsets = [5, 0], sizes = [1, 32], strides = [1, 1]} : vector<10x128xf32> to vector<1x32xf32>
    %23 = vector.extract_strided_slice %16 {offsets = [6, 0], sizes = [1, 128], strides = [1, 1]} : vector<10x128xf32> to vector<1x128xf32>
    %24 = vector.extract_strided_slice %16 {offsets = [7, 0], sizes = [1, 32], strides = [1, 1]} : vector<10x128xf32> to vector<1x32xf32>
    %25 = vector.extract_strided_slice %16 {offsets = [8, 0], sizes = [1, 32], strides = [1, 1]} : vector<10x128xf32> to vector<1x32xf32>
    %26 = vector.extract_strided_slice %16 {offsets = [9, 0], sizes = [1, 32], strides = [1, 1]} : vector<10x128xf32> to vector<1x32xf32>
    %27 = vector.extract_strided_slice %8 {offsets = [0, 0, 0], sizes = [1, 32, 32], strides = [1, 1, 1]} : vector<3x32x32xf32> to vector<1x32x32xf32>
    %28 = vector.shape_cast %27 : vector<1x32x32xf32> to vector<32x32xf32>
    %cst_22 = arith.constant dense<0.000000e+00> : vector<8x32xf32>
    %29 = tpu.matmul %6, %28, %cst_22 {dimension_numbers = #tpu.dot_dimension_numbers<[1], [0], [0], [1], [0, 0, 1, 1], [], []>} : vector<8x32xf32>, vector<32x32xf32>, vector<8x32xf32> -> vector<8x32xf32>
    %30 = vector.broadcast %17 : vector<1x32xf32> to vector<8x32xf32>
    %31 = arith.addf %29, %30 : vector<8x32xf32>
    %32 = vector.extract_strided_slice %8 {offsets = [1, 0, 0], sizes = [1, 32, 32], strides = [1, 1, 1]} : vector<3x32x32xf32> to vector<1x32x32xf32>
    %33 = vector.shape_cast %32 : vector<1x32x32xf32> to vector<32x32xf32>
    %cst_23 = arith.constant dense<0.000000e+00> : vector<8x32xf32>
    %34 = tpu.matmul %6, %33, %cst_23 {dimension_numbers = #tpu.dot_dimension_numbers<[1], [0], [0], [1], [0, 0, 1, 1], [], []>} : vector<8x32xf32>, vector<32x32xf32>, vector<8x32xf32> -> vector<8x32xf32>
    %35 = vector.broadcast %18 : vector<1x32xf32> to vector<8x32xf32>
    %36 = arith.addf %34, %35 : vector<8x32xf32>
    %37 = vector.extract_strided_slice %8 {offsets = [2, 0, 0], sizes = [1, 32, 32], strides = [1, 1, 1]} : vector<3x32x32xf32> to vector<1x32x32xf32>
    %38 = vector.shape_cast %37 : vector<1x32x32xf32> to vector<32x32xf32>
    %cst_24 = arith.constant dense<0.000000e+00> : vector<8x32xf32>
    %39 = tpu.matmul %6, %38, %cst_24 {dimension_numbers = #tpu.dot_dimension_numbers<[1], [0], [0], [1], [0, 0, 1, 1], [], []>} : vector<8x32xf32>, vector<32x32xf32>, vector<8x32xf32> -> vector<8x32xf32>
    %40 = vector.broadcast %19 : vector<1x32xf32> to vector<8x32xf32>
    %41 = arith.addf %39, %40 : vector<8x32xf32>
    "tpu.trace_start"() <{level = 10 : i32, message = "qd,kd->qk"}> : () -> ()
    %cst_25 = arith.constant dense<0.000000e+00> : vector<8x8xf32>
    %42 = tpu.matmul %31, %36, %cst_25 {dimension_numbers = #tpu.dot_dimension_numbers<[1], [1], [0], [0], [0, 0, 1, 0], [], []>} : vector<8x32xf32>, vector<8x32xf32>, vector<8x8xf32> -> vector<8x8xf32>
    "tpu.trace_stop"() : () -> ()
    %cst_26 = arith.constant 0.176776692 : f32
    %43 = vector.broadcast %cst_26 : f32 to vector<8x8xf32>
    %44 = arith.mulf %42, %43 : vector<8x8xf32>
    %cst_27 = arith.constant dense<0xFF800000> : vector<8xf32>
    %45 = vector.multi_reduction <maximumf>, %44, %cst_27 [1] : vector<8x8xf32> to vector<8xf32>
    %46 = vector.shape_cast %45 : vector<8xf32> to vector<8x1xf32>
    %47 = vector.broadcast %46 : vector<8x1xf32> to vector<8x8xf32>
    %48 = arith.subf %44, %47 : vector<8x8xf32>
    %49 = math.exp %48 : vector<8x8xf32>
    %cst_28 = arith.constant dense<0.000000e+00> : vector<8xf32>
    %50 = vector.multi_reduction <add>, %49, %cst_28 [1] : vector<8x8xf32> to vector<8xf32>
    %51 = vector.shape_cast %50 : vector<8xf32> to vector<8x1xf32>
    %52 = tpu.reciprocal %51 {approx = true} : vector<8x1xf32> -> vector<8x1xf32>
    %53 = vector.broadcast %52 : vector<8x1xf32> to vector<8x8xf32>
    %54 = arith.mulf %49, %53 : vector<8x8xf32>
    %cst_29 = arith.constant dense<0.000000e+00> : vector<8x32xf32>
    %55 = tpu.matmul %54, %41, %cst_29 {dimension_numbers = #tpu.dot_dimension_numbers<[1], [0], [0], [1], [0, 0, 1, 1], [], []>} : vector<8x8xf32>, vector<8x32xf32>, vector<8x32xf32> -> vector<8x32xf32>
    %cst_30 = arith.constant dense<0.000000e+00> : vector<8x32xf32>
    %56 = tpu.matmul %55, %10, %cst_30 {dimension_numbers = #tpu.dot_dimension_numbers<[1], [0], [0], [1], [0, 0, 1, 1], [], []>} : vector<8x32xf32>, vector<32x32xf32>, vector<8x32xf32> -> vector<8x32xf32>
    %57 = vector.broadcast %20 : vector<1x32xf32> to vector<8x32xf32>
    %58 = arith.addf %56, %57 : vector<8x32xf32>
    %59 = arith.addf %6, %58 : vector<8x32xf32>
    %cst_31 = arith.constant dense<0.000000e+00> : vector<8xf32>
    %60 = vector.multi_reduction <add>, %59, %cst_31 [1] : vector<8x32xf32> to vector<8xf32>
    %61 = vector.shape_cast %60 : vector<8xf32> to vector<8x1xf32>
    %cst_32 = arith.constant 3.200000e+01 : f32
    %62 = vector.broadcast %cst_32 : f32 to vector<8x1xf32>
    %63 = arith.divf %61, %62 : vector<8x1xf32>
    %64 = vector.broadcast %63 : vector<8x1xf32> to vector<8x32xf32>
    %65 = arith.subf %59, %64 : vector<8x32xf32>
    %66 = arith.mulf %65, %65 : vector<8x32xf32>
    %cst_33 = arith.constant dense<0.000000e+00> : vector<8xf32>
    %67 = vector.multi_reduction <add>, %66, %cst_33 [1] : vector<8x32xf32> to vector<8xf32>
    %68 = vector.shape_cast %67 : vector<8xf32> to vector<8x1xf32>
    %cst_34 = arith.constant 3.200000e+01 : f32
    %69 = vector.broadcast %cst_34 : f32 to vector<8x1xf32>
    %70 = arith.divf %68, %69 : vector<8x1xf32>
    %71 = vector.broadcast %63 : vector<8x1xf32> to vector<8x32xf32>
    %72 = arith.subf %59, %71 : vector<8x32xf32>
    %cst_35 = arith.constant 9.99999974E-6 : f32
    %73 = vector.broadcast %cst_35 : f32 to vector<8x1xf32>
    %74 = arith.addf %70, %73 : vector<8x1xf32>
    %75 = math.rsqrt %74 : vector<8x1xf32>
    %76 = vector.broadcast %75 : vector<8x1xf32> to vector<8x32xf32>
    %77 = arith.mulf %72, %76 : vector<8x32xf32>
    %78 = vector.broadcast %21 : vector<1x32xf32> to vector<8x32xf32>
    %79 = arith.mulf %77, %78 : vector<8x32xf32>
    %80 = vector.broadcast %22 : vector<1x32xf32> to vector<8x32xf32>
    %81 = arith.addf %79, %80 : vector<8x32xf32>
    %cst_36 = arith.constant dense<0.000000e+00> : vector<8x128xf32>
    %82 = tpu.matmul %81, %12, %cst_36 {dimension_numbers = #tpu.dot_dimension_numbers<[1], [0], [0], [1], [0, 0, 1, 1], [], []>} : vector<8x32xf32>, vector<32x128xf32>, vector<8x128xf32> -> vector<8x128xf32>
    %83 = vector.broadcast %23 : vector<1x128xf32> to vector<8x128xf32>
    %84 = arith.addf %82, %83 : vector<8x128xf32>
    %85 = arith.mulf %84, %84 : vector<8x128xf32>
    %86 = arith.mulf %84, %85 : vector<8x128xf32>
    %cst_37 = arith.constant 4.471500e-02 : f32
    %87 = vector.broadcast %cst_37 : f32 to vector<8x128xf32>
    %88 = arith.mulf %87, %86 : vector<8x128xf32>
    %89 = arith.addf %84, %88 : vector<8x128xf32>
    %cst_38 = arith.constant 0.797884583 : f32
    %90 = vector.broadcast %cst_38 : f32 to vector<8x128xf32>
    %91 = arith.mulf %90, %89 : vector<8x128xf32>
    %92 = math.tanh %91 : vector<8x128xf32>
    %cst_39 = arith.constant 1.000000e+00 : f32
    %93 = vector.broadcast %cst_39 : f32 to vector<8x128xf32>
    %94 = arith.addf %93, %92 : vector<8x128xf32>
    %cst_40 = arith.constant 5.000000e-01 : f32
    %95 = vector.broadcast %cst_40 : f32 to vector<8x128xf32>
    %96 = arith.mulf %95, %94 : vector<8x128xf32>
    %97 = arith.mulf %84, %96 : vector<8x128xf32>
    %cst_41 = arith.constant dense<0.000000e+00> : vector<8x32xf32>
    %98 = tpu.matmul %97, %14, %cst_41 {dimension_numbers = #tpu.dot_dimension_numbers<[1], [0], [0], [1], [0, 0, 1, 1], [], []>} : vector<8x128xf32>, vector<128x32xf32>, vector<8x32xf32> -> vector<8x32xf32>
    %99 = vector.broadcast %24 : vector<1x32xf32> to vector<8x32xf32>
    %100 = arith.addf %98, %99 : vector<8x32xf32>
    %101 = arith.addf %81, %100 : vector<8x32xf32>
    %cst_42 = arith.constant dense<0.000000e+00> : vector<8xf32>
    %102 = vector.multi_reduction <add>, %101, %cst_42 [1] : vector<8x32xf32> to vector<8xf32>
    %103 = vector.shape_cast %102 : vector<8xf32> to vector<8x1xf32>
    %cst_43 = arith.constant 3.200000e+01 : f32
    %104 = vector.broadcast %cst_43 : f32 to vector<8x1xf32>
    %105 = arith.divf %103, %104 : vector<8x1xf32>
    %106 = vector.broadcast %105 : vector<8x1xf32> to vector<8x32xf32>
    %107 = arith.subf %101, %106 : vector<8x32xf32>
    %108 = arith.mulf %107, %107 : vector<8x32xf32>
    %cst_44 = arith.constant dense<0.000000e+00> : vector<8xf32>
    %109 = vector.multi_reduction <add>, %108, %cst_44 [1] : vector<8x32xf32> to vector<8xf32>
    %110 = vector.shape_cast %109 : vector<8xf32> to vector<8x1xf32>
    %cst_45 = arith.constant 3.200000e+01 : f32
    %111 = vector.broadcast %cst_45 : f32 to vector<8x1xf32>
    %112 = arith.divf %110, %111 : vector<8x1xf32>
    %113 = vector.broadcast %105 : vector<8x1xf32> to vector<8x32xf32>
    %114 = arith.subf %101, %113 : vector<8x32xf32>
    %cst_46 = arith.constant 9.99999974E-6 : f32
    %115 = vector.broadcast %cst_46 : f32 to vector<8x1xf32>
    %116 = arith.addf %112, %115 : vector<8x1xf32>
    %117 = math.rsqrt %116 : vector<8x1xf32>
    %118 = vector.broadcast %117 : vector<8x1xf32> to vector<8x32xf32>
    %119 = arith.mulf %114, %118 : vector<8x32xf32>
    %120 = vector.broadcast %25 : vector<1x32xf32> to vector<8x32xf32>
    %121 = arith.mulf %119, %120 : vector<8x32xf32>
    %122 = vector.broadcast %26 : vector<1x32xf32> to vector<8x32xf32>
    %123 = arith.addf %121, %122 : vector<8x32xf32>
    %c1 = arith.constant 1 : index
    %c0_47 = arith.constant 0 : index
    %c0_48 = arith.constant 0 : index
    %c0_49 = arith.constant 0 : index
    %124 = vector.load %arg4[%c1, %c0_47, %c0_48, %c0_49] : memref<2x3x32x32xf32, #tpu.memory_space<vmem>>, vector<1x3x32x32xf32>
    %125 = vector.shape_cast %124 : vector<1x3x32x32xf32> to vector<3x32x32xf32>
    %c1_50 = arith.constant 1 : index
    %c0_51 = arith.constant 0 : index
    %c0_52 = arith.constant 0 : index
    %126 = vector.load %arg5[%c1_50, %c0_51, %c0_52] : memref<2x32x32xf32, #tpu.memory_space<vmem>>, vector<1x32x32xf32>
    %127 = vector.shape_cast %126 : vector<1x32x32xf32> to vector<32x32xf32>
    %c1_53 = arith.constant 1 : index
    %c0_54 = arith.constant 0 : index
    %c0_55 = arith.constant 0 : index
    %128 = vector.load %arg6[%c1_53, %c0_54, %c0_55] : memref<2x32x128xf32, #tpu.memory_space<vmem>>, vector<1x32x128xf32>
    %129 = vector.shape_cast %128 : vector<1x32x128xf32> to vector<32x128xf32>
    %c1_56 = arith.constant 1 : index
    %c0_57 = arith.constant 0 : index
    %c0_58 = arith.constant 0 : index
    %130 = vector.load %arg7[%c1_56, %c0_57, %c0_58] : memref<2x128x32xf32, #tpu.memory_space<vmem>>, vector<1x128x32xf32>
    %131 = vector.shape_cast %130 : vector<1x128x32xf32> to vector<128x32xf32>
    %c1_59 = arith.constant 1 : index
    %c0_60 = arith.constant 0 : index
    %c0_61 = arith.constant 0 : index
    %132 = vector.load %arg8[%c1_59, %c0_60, %c0_61] : memref<2x10x128xf32, #tpu.memory_space<vmem>>, vector<1x10x128xf32>
    %133 = vector.shape_cast %132 : vector<1x10x128xf32> to vector<10x128xf32>
    %134 = vector.extract_strided_slice %133 {offsets = [0, 0], sizes = [1, 32], strides = [1, 1]} : vector<10x128xf32> to vector<1x32xf32>
    %135 = vector.extract_strided_slice %133 {offsets = [1, 0], sizes = [1, 32], strides = [1, 1]} : vector<10x128xf32> to vector<1x32xf32>
    %136 = vector.extract_strided_slice %133 {offsets = [2, 0], sizes = [1, 32], strides = [1, 1]} : vector<10x128xf32> to vector<1x32xf32>
    %137 = vector.extract_strided_slice %133 {offsets = [3, 0], sizes = [1, 32], strides = [1, 1]} : vector<10x128xf32> to vector<1x32xf32>
    %138 = vector.extract_strided_slice %133 {offsets = [4, 0], sizes = [1, 32], strides = [1, 1]} : vector<10x128xf32> to vector<1x32xf32>
    %139 = vector.extract_strided_slice %133 {offsets = [5, 0], sizes = [1, 32], strides = [1, 1]} : vector<10x128xf32> to vector<1x32xf32>
    %140 = vector.extract_strided_slice %133 {offsets = [6, 0], sizes = [1, 128], strides = [1, 1]} : vector<10x128xf32> to vector<1x128xf32>
    %141 = vector.extract_strided_slice %133 {offsets = [7, 0], sizes = [1, 32], strides = [1, 1]} : vector<10x128xf32> to vector<1x32xf32>
    %142 = vector.extract_strided_slice %133 {offsets = [8, 0], sizes = [1, 32], strides = [1, 1]} : vector<10x128xf32> to vector<1x32xf32>
    %143 = vector.extract_strided_slice %133 {offsets = [9, 0], sizes = [1, 32], strides = [1, 1]} : vector<10x128xf32> to vector<1x32xf32>
    %144 = vector.extract_strided_slice %125 {offsets = [0, 0, 0], sizes = [1, 32, 32], strides = [1, 1, 1]} : vector<3x32x32xf32> to vector<1x32x32xf32>
    %145 = vector.shape_cast %144 : vector<1x32x32xf32> to vector<32x32xf32>
    %cst_62 = arith.constant dense<0.000000e+00> : vector<8x32xf32>
    %146 = tpu.matmul %123, %145, %cst_62 {dimension_numbers = #tpu.dot_dimension_numbers<[1], [0], [0], [1], [0, 0, 1, 1], [], []>} : vector<8x32xf32>, vector<32x32xf32>, vector<8x32xf32> -> vector<8x32xf32>
    %147 = vector.broadcast %134 : vector<1x32xf32> to vector<8x32xf32>
    %148 = arith.addf %146, %147 : vector<8x32xf32>
    %149 = vector.extract_strided_slice %125 {offsets = [1, 0, 0], sizes = [1, 32, 32], strides = [1, 1, 1]} : vector<3x32x32xf32> to vector<1x32x32xf32>
    %150 = vector.shape_cast %149 : vector<1x32x32xf32> to vector<32x32xf32>
    %cst_63 = arith.constant dense<0.000000e+00> : vector<8x32xf32>
    %151 = tpu.matmul %123, %150, %cst_63 {dimension_numbers = #tpu.dot_dimension_numbers<[1], [0], [0], [1], [0, 0, 1, 1], [], []>} : vector<8x32xf32>, vector<32x32xf32>, vector<8x32xf32> -> vector<8x32xf32>
    %152 = vector.broadcast %135 : vector<1x32xf32> to vector<8x32xf32>
    %153 = arith.addf %151, %152 : vector<8x32xf32>
    %154 = vector.extract_strided_slice %125 {offsets = [2, 0, 0], sizes = [1, 32, 32], strides = [1, 1, 1]} : vector<3x32x32xf32> to vector<1x32x32xf32>
    %155 = vector.shape_cast %154 : vector<1x32x32xf32> to vector<32x32xf32>
    %cst_64 = arith.constant dense<0.000000e+00> : vector<8x32xf32>
    %156 = tpu.matmul %123, %155, %cst_64 {dimension_numbers = #tpu.dot_dimension_numbers<[1], [0], [0], [1], [0, 0, 1, 1], [], []>} : vector<8x32xf32>, vector<32x32xf32>, vector<8x32xf32> -> vector<8x32xf32>
    %157 = vector.broadcast %136 : vector<1x32xf32> to vector<8x32xf32>
    %158 = arith.addf %156, %157 : vector<8x32xf32>
    "tpu.trace_start"() <{level = 10 : i32, message = "qd,kd->qk"}> : () -> ()
    %cst_65 = arith.constant dense<0.000000e+00> : vector<8x8xf32>
    %159 = tpu.matmul %148, %153, %cst_65 {dimension_numbers = #tpu.dot_dimension_numbers<[1], [1], [0], [0], [0, 0, 1, 0], [], []>} : vector<8x32xf32>, vector<8x32xf32>, vector<8x8xf32> -> vector<8x8xf32>
    "tpu.trace_stop"() : () -> ()
    %cst_66 = arith.constant 0.176776692 : f32
    %160 = vector.broadcast %cst_66 : f32 to vector<8x8xf32>
    %161 = arith.mulf %159, %160 : vector<8x8xf32>
    %cst_67 = arith.constant dense<0xFF800000> : vector<8xf32>
    %162 = vector.multi_reduction <maximumf>, %161, %cst_67 [1] : vector<8x8xf32> to vector<8xf32>
    %163 = vector.shape_cast %162 : vector<8xf32> to vector<8x1xf32>
    %164 = vector.broadcast %163 : vector<8x1xf32> to vector<8x8xf32>
    %165 = arith.subf %161, %164 : vector<8x8xf32>
    %166 = math.exp %165 : vector<8x8xf32>
    %cst_68 = arith.constant dense<0.000000e+00> : vector<8xf32>
    %167 = vector.multi_reduction <add>, %166, %cst_68 [1] : vector<8x8xf32> to vector<8xf32>
    %168 = vector.shape_cast %167 : vector<8xf32> to vector<8x1xf32>
    %169 = tpu.reciprocal %168 {approx = true} : vector<8x1xf32> -> vector<8x1xf32>
    %170 = vector.broadcast %169 : vector<8x1xf32> to vector<8x8xf32>
    %171 = arith.mulf %166, %170 : vector<8x8xf32>
    %cst_69 = arith.constant dense<0.000000e+00> : vector<8x32xf32>
    %172 = tpu.matmul %171, %158, %cst_69 {dimension_numbers = #tpu.dot_dimension_numbers<[1], [0], [0], [1], [0, 0, 1, 1], [], []>} : vector<8x8xf32>, vector<8x32xf32>, vector<8x32xf32> -> vector<8x32xf32>
    %cst_70 = arith.constant dense<0.000000e+00> : vector<8x32xf32>
    %173 = tpu.matmul %172, %127, %cst_70 {dimension_numbers = #tpu.dot_dimension_numbers<[1], [0], [0], [1], [0, 0, 1, 1], [], []>} : vector<8x32xf32>, vector<32x32xf32>, vector<8x32xf32> -> vector<8x32xf32>
    %174 = vector.broadcast %137 : vector<1x32xf32> to vector<8x32xf32>
    %175 = arith.addf %173, %174 : vector<8x32xf32>
    %176 = arith.addf %123, %175 : vector<8x32xf32>
    %cst_71 = arith.constant dense<0.000000e+00> : vector<8xf32>
    %177 = vector.multi_reduction <add>, %176, %cst_71 [1] : vector<8x32xf32> to vector<8xf32>
    %178 = vector.shape_cast %177 : vector<8xf32> to vector<8x1xf32>
    %cst_72 = arith.constant 3.200000e+01 : f32
    %179 = vector.broadcast %cst_72 : f32 to vector<8x1xf32>
    %180 = arith.divf %178, %179 : vector<8x1xf32>
    %181 = vector.broadcast %180 : vector<8x1xf32> to vector<8x32xf32>
    %182 = arith.subf %176, %181 : vector<8x32xf32>
    %183 = arith.mulf %182, %182 : vector<8x32xf32>
    %cst_73 = arith.constant dense<0.000000e+00> : vector<8xf32>
    %184 = vector.multi_reduction <add>, %183, %cst_73 [1] : vector<8x32xf32> to vector<8xf32>
    %185 = vector.shape_cast %184 : vector<8xf32> to vector<8x1xf32>
    %cst_74 = arith.constant 3.200000e+01 : f32
    %186 = vector.broadcast %cst_74 : f32 to vector<8x1xf32>
    %187 = arith.divf %185, %186 : vector<8x1xf32>
    %188 = vector.broadcast %180 : vector<8x1xf32> to vector<8x32xf32>
    %189 = arith.subf %176, %188 : vector<8x32xf32>
    %cst_75 = arith.constant 9.99999974E-6 : f32
    %190 = vector.broadcast %cst_75 : f32 to vector<8x1xf32>
    %191 = arith.addf %187, %190 : vector<8x1xf32>
    %192 = math.rsqrt %191 : vector<8x1xf32>
    %193 = vector.broadcast %192 : vector<8x1xf32> to vector<8x32xf32>
    %194 = arith.mulf %189, %193 : vector<8x32xf32>
    %195 = vector.broadcast %138 : vector<1x32xf32> to vector<8x32xf32>
    %196 = arith.mulf %194, %195 : vector<8x32xf32>
    %197 = vector.broadcast %139 : vector<1x32xf32> to vector<8x32xf32>
    %198 = arith.addf %196, %197 : vector<8x32xf32>
    %cst_76 = arith.constant dense<0.000000e+00> : vector<8x128xf32>
    %199 = tpu.matmul %198, %129, %cst_76 {dimension_numbers = #tpu.dot_dimension_numbers<[1], [0], [0], [1], [0, 0, 1, 1], [], []>} : vector<8x32xf32>, vector<32x128xf32>, vector<8x128xf32> -> vector<8x128xf32>
    %200 = vector.broadcast %140 : vector<1x128xf32> to vector<8x128xf32>
    %201 = arith.addf %199, %200 : vector<8x128xf32>
    %202 = arith.mulf %201, %201 : vector<8x128xf32>
    %203 = arith.mulf %201, %202 : vector<8x128xf32>
    %cst_77 = arith.constant 4.471500e-02 : f32
    %204 = vector.broadcast %cst_77 : f32 to vector<8x128xf32>
    %205 = arith.mulf %204, %203 : vector<8x128xf32>
    %206 = arith.addf %201, %205 : vector<8x128xf32>
    %cst_78 = arith.constant 0.797884583 : f32
    %207 = vector.broadcast %cst_78 : f32 to vector<8x128xf32>
    %208 = arith.mulf %207, %206 : vector<8x128xf32>
    %209 = math.tanh %208 : vector<8x128xf32>
    %cst_79 = arith.constant 1.000000e+00 : f32
    %210 = vector.broadcast %cst_79 : f32 to vector<8x128xf32>
    %211 = arith.addf %210, %209 : vector<8x128xf32>
    %cst_80 = arith.constant 5.000000e-01 : f32
    %212 = vector.broadcast %cst_80 : f32 to vector<8x128xf32>
    %213 = arith.mulf %212, %211 : vector<8x128xf32>
    %214 = arith.mulf %201, %213 : vector<8x128xf32>
    %cst_81 = arith.constant dense<0.000000e+00> : vector<8x32xf32>
    %215 = tpu.matmul %214, %131, %cst_81 {dimension_numbers = #tpu.dot_dimension_numbers<[1], [0], [0], [1], [0, 0, 1, 1], [], []>} : vector<8x128xf32>, vector<128x32xf32>, vector<8x32xf32> -> vector<8x32xf32>
    %216 = vector.broadcast %141 : vector<1x32xf32> to vector<8x32xf32>
    %217 = arith.addf %215, %216 : vector<8x32xf32>
    %218 = arith.addf %198, %217 : vector<8x32xf32>
    %cst_82 = arith.constant dense<0.000000e+00> : vector<8xf32>
    %219 = vector.multi_reduction <add>, %218, %cst_82 [1] : vector<8x32xf32> to vector<8xf32>
    %220 = vector.shape_cast %219 : vector<8xf32> to vector<8x1xf32>
    %cst_83 = arith.constant 3.200000e+01 : f32
    %221 = vector.broadcast %cst_83 : f32 to vector<8x1xf32>
    %222 = arith.divf %220, %221 : vector<8x1xf32>
    %223 = vector.broadcast %222 : vector<8x1xf32> to vector<8x32xf32>
    %224 = arith.subf %218, %223 : vector<8x32xf32>
    %225 = arith.mulf %224, %224 : vector<8x32xf32>
    %cst_84 = arith.constant dense<0.000000e+00> : vector<8xf32>
    %226 = vector.multi_reduction <add>, %225, %cst_84 [1] : vector<8x32xf32> to vector<8xf32>
    %227 = vector.shape_cast %226 : vector<8xf32> to vector<8x1xf32>
    %cst_85 = arith.constant 3.200000e+01 : f32
    %228 = vector.broadcast %cst_85 : f32 to vector<8x1xf32>
    %229 = arith.divf %227, %228 : vector<8x1xf32>
    %230 = vector.broadcast %222 : vector<8x1xf32> to vector<8x32xf32>
    %231 = arith.subf %218, %230 : vector<8x32xf32>
    %cst_86 = arith.constant 9.99999974E-6 : f32
    %232 = vector.broadcast %cst_86 : f32 to vector<8x1xf32>
    %233 = arith.addf %229, %232 : vector<8x1xf32>
    %234 = math.rsqrt %233 : vector<8x1xf32>
    %235 = vector.broadcast %234 : vector<8x1xf32> to vector<8x32xf32>
    %236 = arith.mulf %231, %235 : vector<8x32xf32>
    %237 = vector.broadcast %142 : vector<1x32xf32> to vector<8x32xf32>
    %238 = arith.mulf %236, %237 : vector<8x32xf32>
    %239 = vector.broadcast %143 : vector<1x32xf32> to vector<8x32xf32>
    %240 = arith.addf %238, %239 : vector<8x32xf32>
    %c0_87 = arith.constant 0 : index
    %c0_88 = arith.constant 0 : index
    %c0_89 = arith.constant 0 : index
    %241 = vector.load %arg16[%c0_87, %c0_88, %c0_89] : memref<1x1x8xf32, #tpu.memory_space<vmem>>, vector<1x1x8xf32>
    %242 = vector.shape_cast %241 : vector<1x1x8xf32> to vector<1x8xf32>
    %c0_90 = arith.constant 0 : index
    %c0_91 = arith.constant 0 : index
    %243 = vector.load %arg10[%c0_90, %c0_91] : memref<2x128xf32, #tpu.memory_space<vmem>>, vector<2x128xf32>
    %c0_92 = arith.constant 0 : index
    %c0_93 = arith.constant 0 : index
    %c0_94 = arith.constant 0 : index
    %244 = vector.load %arg9[%c0_92, %c0_93, %c0_94] : memref<1x8x32xf32, #tpu.memory_space<vmem>>, vector<1x8x32xf32>
    %245 = vector.shape_cast %244 : vector<1x8x32xf32> to vector<8x32xf32>
    %246 = vector.extract_strided_slice %243 {offsets = [0, 0], sizes = [1, 32], strides = [1, 1]} : vector<2x128xf32> to vector<1x32xf32>
    %247 = vector.extract_strided_slice %243 {offsets = [1, 0], sizes = [1, 32], strides = [1, 1]} : vector<2x128xf32> to vector<1x32xf32>
    %cst_95 = arith.constant dense<0.000000e+00> : vector<8xf32>
    %248 = vector.multi_reduction <add>, %245, %cst_95 [1] : vector<8x32xf32> to vector<8xf32>
    %249 = vector.shape_cast %248 : vector<8xf32> to vector<8x1xf32>
    %cst_96 = arith.constant 3.200000e+01 : f32
    %250 = vector.broadcast %cst_96 : f32 to vector<8x1xf32>
    %251 = arith.divf %249, %250 : vector<8x1xf32>
    %252 = vector.broadcast %251 : vector<8x1xf32> to vector<8x32xf32>
    %253 = arith.subf %245, %252 : vector<8x32xf32>
    %254 = arith.mulf %253, %253 : vector<8x32xf32>
    %cst_97 = arith.constant dense<0.000000e+00> : vector<8xf32>
    %255 = vector.multi_reduction <add>, %254, %cst_97 [1] : vector<8x32xf32> to vector<8xf32>
    %256 = vector.shape_cast %255 : vector<8xf32> to vector<8x1xf32>
    %cst_98 = arith.constant 3.200000e+01 : f32
    %257 = vector.broadcast %cst_98 : f32 to vector<8x1xf32>
    %258 = arith.divf %256, %257 : vector<8x1xf32>
    %259 = vector.broadcast %251 : vector<8x1xf32> to vector<8x32xf32>
    %260 = arith.subf %245, %259 : vector<8x32xf32>
    %cst_99 = arith.constant 9.99999974E-6 : f32
    %261 = vector.broadcast %cst_99 : f32 to vector<8x1xf32>
    %262 = arith.addf %258, %261 : vector<8x1xf32>
    %263 = math.rsqrt %262 : vector<8x1xf32>
    %264 = vector.broadcast %263 : vector<8x1xf32> to vector<8x32xf32>
    %265 = arith.mulf %260, %264 : vector<8x32xf32>
    %266 = vector.broadcast %246 : vector<1x32xf32> to vector<8x32xf32>
    %267 = arith.mulf %265, %266 : vector<8x32xf32>
    %268 = vector.broadcast %247 : vector<1x32xf32> to vector<8x32xf32>
    %269 = arith.addf %267, %268 : vector<8x32xf32>
    %c0_100 = arith.constant 0 : index
    %c0_101 = arith.constant 0 : index
    %c0_102 = arith.constant 0 : index
    %c0_103 = arith.constant 0 : index
    %270 = vector.load %arg11[%c0_100, %c0_101, %c0_102, %c0_103] : memref<2x3x32x32xf32, #tpu.memory_space<vmem>>, vector<1x3x32x32xf32>
    %271 = vector.shape_cast %270 : vector<1x3x32x32xf32> to vector<3x32x32xf32>
    %c0_104 = arith.constant 0 : index
    %c0_105 = arith.constant 0 : index
    %c0_106 = arith.constant 0 : index
    %272 = vector.load %arg12[%c0_104, %c0_105, %c0_106] : memref<2x32x32xf32, #tpu.memory_space<vmem>>, vector<1x32x32xf32>
    %273 = vector.shape_cast %272 : vector<1x32x32xf32> to vector<32x32xf32>
    %c0_107 = arith.constant 0 : index
    %c0_108 = arith.constant 0 : index
    %c0_109 = arith.constant 0 : index
    %274 = vector.load %arg13[%c0_107, %c0_108, %c0_109] : memref<2x32x128xf32, #tpu.memory_space<vmem>>, vector<1x32x128xf32>
    %275 = vector.shape_cast %274 : vector<1x32x128xf32> to vector<32x128xf32>
    %c0_110 = arith.constant 0 : index
    %c0_111 = arith.constant 0 : index
    %c0_112 = arith.constant 0 : index
    %276 = vector.load %arg14[%c0_110, %c0_111, %c0_112] : memref<2x128x32xf32, #tpu.memory_space<vmem>>, vector<1x128x32xf32>
    %277 = vector.shape_cast %276 : vector<1x128x32xf32> to vector<128x32xf32>
    %c0_113 = arith.constant 0 : index
    %c0_114 = arith.constant 0 : index
    %c0_115 = arith.constant 0 : index
    %278 = vector.load %arg15[%c0_113, %c0_114, %c0_115] : memref<2x10x128xf32, #tpu.memory_space<vmem>>, vector<1x10x128xf32>
    %279 = vector.shape_cast %278 : vector<1x10x128xf32> to vector<10x128xf32>
    %280 = vector.extract_strided_slice %279 {offsets = [0, 0], sizes = [1, 32], strides = [1, 1]} : vector<10x128xf32> to vector<1x32xf32>
    %281 = vector.extract_strided_slice %279 {offsets = [1, 0], sizes = [1, 32], strides = [1, 1]} : vector<10x128xf32> to vector<1x32xf32>
    %282 = vector.extract_strided_slice %279 {offsets = [2, 0], sizes = [1, 32], strides = [1, 1]} : vector<10x128xf32> to vector<1x32xf32>
    %283 = vector.extract_strided_slice %279 {offsets = [3, 0], sizes = [1, 32], strides = [1, 1]} : vector<10x128xf32> to vector<1x32xf32>
    %284 = vector.extract_strided_slice %279 {offsets = [4, 0], sizes = [1, 32], strides = [1, 1]} : vector<10x128xf32> to vector<1x32xf32>
    %285 = vector.extract_strided_slice %279 {offsets = [5, 0], sizes = [1, 32], strides = [1, 1]} : vector<10x128xf32> to vector<1x32xf32>
    %286 = vector.extract_strided_slice %279 {offsets = [6, 0], sizes = [1, 128], strides = [1, 1]} : vector<10x128xf32> to vector<1x128xf32>
    %287 = vector.extract_strided_slice %279 {offsets = [7, 0], sizes = [1, 32], strides = [1, 1]} : vector<10x128xf32> to vector<1x32xf32>
    %288 = vector.extract_strided_slice %279 {offsets = [8, 0], sizes = [1, 32], strides = [1, 1]} : vector<10x128xf32> to vector<1x32xf32>
    %289 = vector.extract_strided_slice %279 {offsets = [9, 0], sizes = [1, 32], strides = [1, 1]} : vector<10x128xf32> to vector<1x32xf32>
    %290 = vector.extract_strided_slice %271 {offsets = [0, 0, 0], sizes = [1, 32, 32], strides = [1, 1, 1]} : vector<3x32x32xf32> to vector<1x32x32xf32>
    %291 = vector.shape_cast %290 : vector<1x32x32xf32> to vector<32x32xf32>
    %cst_116 = arith.constant dense<0.000000e+00> : vector<8x32xf32>
    %292 = tpu.matmul %269, %291, %cst_116 {dimension_numbers = #tpu.dot_dimension_numbers<[1], [0], [0], [1], [0, 0, 1, 1], [], []>} : vector<8x32xf32>, vector<32x32xf32>, vector<8x32xf32> -> vector<8x32xf32>
    %293 = vector.broadcast %280 : vector<1x32xf32> to vector<8x32xf32>
    %294 = arith.addf %292, %293 : vector<8x32xf32>
    %295 = vector.extract_strided_slice %271 {offsets = [1, 0, 0], sizes = [1, 32, 32], strides = [1, 1, 1]} : vector<3x32x32xf32> to vector<1x32x32xf32>
    %296 = vector.shape_cast %295 : vector<1x32x32xf32> to vector<32x32xf32>
    %cst_117 = arith.constant dense<0.000000e+00> : vector<8x32xf32>
    %297 = tpu.matmul %269, %296, %cst_117 {dimension_numbers = #tpu.dot_dimension_numbers<[1], [0], [0], [1], [0, 0, 1, 1], [], []>} : vector<8x32xf32>, vector<32x32xf32>, vector<8x32xf32> -> vector<8x32xf32>
    %298 = vector.broadcast %281 : vector<1x32xf32> to vector<8x32xf32>
    %299 = arith.addf %297, %298 : vector<8x32xf32>
    %300 = vector.extract_strided_slice %271 {offsets = [2, 0, 0], sizes = [1, 32, 32], strides = [1, 1, 1]} : vector<3x32x32xf32> to vector<1x32x32xf32>
    %301 = vector.shape_cast %300 : vector<1x32x32xf32> to vector<32x32xf32>
    %cst_118 = arith.constant dense<0.000000e+00> : vector<8x32xf32>
    %302 = tpu.matmul %269, %301, %cst_118 {dimension_numbers = #tpu.dot_dimension_numbers<[1], [0], [0], [1], [0, 0, 1, 1], [], []>} : vector<8x32xf32>, vector<32x32xf32>, vector<8x32xf32> -> vector<8x32xf32>
    %303 = vector.broadcast %282 : vector<1x32xf32> to vector<8x32xf32>
    %304 = arith.addf %302, %303 : vector<8x32xf32>
    "tpu.trace_start"() <{level = 10 : i32, message = "qd,kd->qk"}> : () -> ()
    %cst_119 = arith.constant dense<0.000000e+00> : vector<8x8xf32>
    %305 = tpu.matmul %294, %299, %cst_119 {dimension_numbers = #tpu.dot_dimension_numbers<[1], [1], [0], [0], [0, 0, 1, 0], [], []>} : vector<8x32xf32>, vector<8x32xf32>, vector<8x8xf32> -> vector<8x8xf32>
    "tpu.trace_stop"() : () -> ()
    %cst_120 = arith.constant 0.176776692 : f32
    %306 = vector.broadcast %cst_120 : f32 to vector<8x8xf32>
    %307 = arith.mulf %305, %306 : vector<8x8xf32>
    %308 = vector.broadcast %242 : vector<1x8xf32> to vector<8x8xf32>
    %309 = arith.addf %307, %308 : vector<8x8xf32>
    %cst_121 = arith.constant dense<0xFF800000> : vector<8xf32>
    %310 = vector.multi_reduction <maximumf>, %309, %cst_121 [1] : vector<8x8xf32> to vector<8xf32>
    %311 = vector.shape_cast %310 : vector<8xf32> to vector<8x1xf32>
    %312 = vector.broadcast %311 : vector<8x1xf32> to vector<8x8xf32>
    %313 = arith.subf %309, %312 : vector<8x8xf32>
    %314 = math.exp %313 : vector<8x8xf32>
    %cst_122 = arith.constant dense<0.000000e+00> : vector<8xf32>
    %315 = vector.multi_reduction <add>, %314, %cst_122 [1] : vector<8x8xf32> to vector<8xf32>
    %316 = vector.shape_cast %315 : vector<8xf32> to vector<8x1xf32>
    %317 = tpu.reciprocal %316 {approx = true} : vector<8x1xf32> -> vector<8x1xf32>
    %318 = vector.broadcast %317 : vector<8x1xf32> to vector<8x8xf32>
    %319 = arith.mulf %314, %318 : vector<8x8xf32>
    %cst_123 = arith.constant dense<0.000000e+00> : vector<8x32xf32>
    %320 = tpu.matmul %319, %304, %cst_123 {dimension_numbers = #tpu.dot_dimension_numbers<[1], [0], [0], [1], [0, 0, 1, 1], [], []>} : vector<8x8xf32>, vector<8x32xf32>, vector<8x32xf32> -> vector<8x32xf32>
    %cst_124 = arith.constant dense<0.000000e+00> : vector<8x32xf32>
    %321 = tpu.matmul %320, %273, %cst_124 {dimension_numbers = #tpu.dot_dimension_numbers<[1], [0], [0], [1], [0, 0, 1, 1], [], []>} : vector<8x32xf32>, vector<32x32xf32>, vector<8x32xf32> -> vector<8x32xf32>
    %322 = vector.broadcast %283 : vector<1x32xf32> to vector<8x32xf32>
    %323 = arith.addf %321, %322 : vector<8x32xf32>
    %324 = arith.addf %269, %323 : vector<8x32xf32>
    %cst_125 = arith.constant dense<0.000000e+00> : vector<8xf32>
    %325 = vector.multi_reduction <add>, %324, %cst_125 [1] : vector<8x32xf32> to vector<8xf32>
    %326 = vector.shape_cast %325 : vector<8xf32> to vector<8x1xf32>
    %cst_126 = arith.constant 3.200000e+01 : f32
    %327 = vector.broadcast %cst_126 : f32 to vector<8x1xf32>
    %328 = arith.divf %326, %327 : vector<8x1xf32>
    %329 = vector.broadcast %328 : vector<8x1xf32> to vector<8x32xf32>
    %330 = arith.subf %324, %329 : vector<8x32xf32>
    %331 = arith.mulf %330, %330 : vector<8x32xf32>
    %cst_127 = arith.constant dense<0.000000e+00> : vector<8xf32>
    %332 = vector.multi_reduction <add>, %331, %cst_127 [1] : vector<8x32xf32> to vector<8xf32>
    %333 = vector.shape_cast %332 : vector<8xf32> to vector<8x1xf32>
    %cst_128 = arith.constant 3.200000e+01 : f32
    %334 = vector.broadcast %cst_128 : f32 to vector<8x1xf32>
    %335 = arith.divf %333, %334 : vector<8x1xf32>
    %336 = vector.broadcast %328 : vector<8x1xf32> to vector<8x32xf32>
    %337 = arith.subf %324, %336 : vector<8x32xf32>
    %cst_129 = arith.constant 9.99999974E-6 : f32
    %338 = vector.broadcast %cst_129 : f32 to vector<8x1xf32>
    %339 = arith.addf %335, %338 : vector<8x1xf32>
    %340 = math.rsqrt %339 : vector<8x1xf32>
    %341 = vector.broadcast %340 : vector<8x1xf32> to vector<8x32xf32>
    %342 = arith.mulf %337, %341 : vector<8x32xf32>
    %343 = vector.broadcast %284 : vector<1x32xf32> to vector<8x32xf32>
    %344 = arith.mulf %342, %343 : vector<8x32xf32>
    %345 = vector.broadcast %285 : vector<1x32xf32> to vector<8x32xf32>
    %346 = arith.addf %344, %345 : vector<8x32xf32>
    %cst_130 = arith.constant dense<0.000000e+00> : vector<8x128xf32>
    %347 = tpu.matmul %346, %275, %cst_130 {dimension_numbers = #tpu.dot_dimension_numbers<[1], [0], [0], [1], [0, 0, 1, 1], [], []>} : vector<8x32xf32>, vector<32x128xf32>, vector<8x128xf32> -> vector<8x128xf32>
    %348 = vector.broadcast %286 : vector<1x128xf32> to vector<8x128xf32>
    %349 = arith.addf %347, %348 : vector<8x128xf32>
    %350 = arith.mulf %349, %349 : vector<8x128xf32>
    %351 = arith.mulf %349, %350 : vector<8x128xf32>
    %cst_131 = arith.constant 4.471500e-02 : f32
    %352 = vector.broadcast %cst_131 : f32 to vector<8x128xf32>
    %353 = arith.mulf %352, %351 : vector<8x128xf32>
    %354 = arith.addf %349, %353 : vector<8x128xf32>
    %cst_132 = arith.constant 0.797884583 : f32
    %355 = vector.broadcast %cst_132 : f32 to vector<8x128xf32>
    %356 = arith.mulf %355, %354 : vector<8x128xf32>
    %357 = math.tanh %356 : vector<8x128xf32>
    %cst_133 = arith.constant 1.000000e+00 : f32
    %358 = vector.broadcast %cst_133 : f32 to vector<8x128xf32>
    %359 = arith.addf %358, %357 : vector<8x128xf32>
    %cst_134 = arith.constant 5.000000e-01 : f32
    %360 = vector.broadcast %cst_134 : f32 to vector<8x128xf32>
    %361 = arith.mulf %360, %359 : vector<8x128xf32>
    %362 = arith.mulf %349, %361 : vector<8x128xf32>
    %cst_135 = arith.constant dense<0.000000e+00> : vector<8x32xf32>
    %363 = tpu.matmul %362, %277, %cst_135 {dimension_numbers = #tpu.dot_dimension_numbers<[1], [0], [0], [1], [0, 0, 1, 1], [], []>} : vector<8x128xf32>, vector<128x32xf32>, vector<8x32xf32> -> vector<8x32xf32>
    %364 = vector.broadcast %287 : vector<1x32xf32> to vector<8x32xf32>
    %365 = arith.addf %363, %364 : vector<8x32xf32>
    %366 = arith.addf %346, %365 : vector<8x32xf32>
    %cst_136 = arith.constant dense<0.000000e+00> : vector<8xf32>
    %367 = vector.multi_reduction <add>, %366, %cst_136 [1] : vector<8x32xf32> to vector<8xf32>
    %368 = vector.shape_cast %367 : vector<8xf32> to vector<8x1xf32>
    %cst_137 = arith.constant 3.200000e+01 : f32
    %369 = vector.broadcast %cst_137 : f32 to vector<8x1xf32>
    %370 = arith.divf %368, %369 : vector<8x1xf32>
    %371 = vector.broadcast %370 : vector<8x1xf32> to vector<8x32xf32>
    %372 = arith.subf %366, %371 : vector<8x32xf32>
    %373 = arith.mulf %372, %372 : vector<8x32xf32>
    %cst_138 = arith.constant dense<0.000000e+00> : vector<8xf32>
    %374 = vector.multi_reduction <add>, %373, %cst_138 [1] : vector<8x32xf32> to vector<8xf32>
    %375 = vector.shape_cast %374 : vector<8xf32> to vector<8x1xf32>
    %cst_139 = arith.constant 3.200000e+01 : f32
    %376 = vector.broadcast %cst_139 : f32 to vector<8x1xf32>
    %377 = arith.divf %375, %376 : vector<8x1xf32>
    %378 = vector.broadcast %370 : vector<8x1xf32> to vector<8x32xf32>
    %379 = arith.subf %366, %378 : vector<8x32xf32>
    %cst_140 = arith.constant 9.99999974E-6 : f32
    %380 = vector.broadcast %cst_140 : f32 to vector<8x1xf32>
    %381 = arith.addf %377, %380 : vector<8x1xf32>
    %382 = math.rsqrt %381 : vector<8x1xf32>
    %383 = vector.broadcast %382 : vector<8x1xf32> to vector<8x32xf32>
    %384 = arith.mulf %379, %383 : vector<8x32xf32>
    %385 = vector.broadcast %288 : vector<1x32xf32> to vector<8x32xf32>
    %386 = arith.mulf %384, %385 : vector<8x32xf32>
    %387 = vector.broadcast %289 : vector<1x32xf32> to vector<8x32xf32>
    %388 = arith.addf %386, %387 : vector<8x32xf32>
    %c1_141 = arith.constant 1 : index
    %c0_142 = arith.constant 0 : index
    %c0_143 = arith.constant 0 : index
    %c0_144 = arith.constant 0 : index
    %389 = vector.load %arg11[%c1_141, %c0_142, %c0_143, %c0_144] : memref<2x3x32x32xf32, #tpu.memory_space<vmem>>, vector<1x3x32x32xf32>
    %390 = vector.shape_cast %389 : vector<1x3x32x32xf32> to vector<3x32x32xf32>
    %c1_145 = arith.constant 1 : index
    %c0_146 = arith.constant 0 : index
    %c0_147 = arith.constant 0 : index
    %391 = vector.load %arg12[%c1_145, %c0_146, %c0_147] : memref<2x32x32xf32, #tpu.memory_space<vmem>>, vector<1x32x32xf32>
    %392 = vector.shape_cast %391 : vector<1x32x32xf32> to vector<32x32xf32>
    %c1_148 = arith.constant 1 : index
    %c0_149 = arith.constant 0 : index
    %c0_150 = arith.constant 0 : index
    %393 = vector.load %arg13[%c1_148, %c0_149, %c0_150] : memref<2x32x128xf32, #tpu.memory_space<vmem>>, vector<1x32x128xf32>
    %394 = vector.shape_cast %393 : vector<1x32x128xf32> to vector<32x128xf32>
    %c1_151 = arith.constant 1 : index
    %c0_152 = arith.constant 0 : index
    %c0_153 = arith.constant 0 : index
    %395 = vector.load %arg14[%c1_151, %c0_152, %c0_153] : memref<2x128x32xf32, #tpu.memory_space<vmem>>, vector<1x128x32xf32>
    %396 = vector.shape_cast %395 : vector<1x128x32xf32> to vector<128x32xf32>
    %c1_154 = arith.constant 1 : index
    %c0_155 = arith.constant 0 : index
    %c0_156 = arith.constant 0 : index
    %397 = vector.load %arg15[%c1_154, %c0_155, %c0_156] : memref<2x10x128xf32, #tpu.memory_space<vmem>>, vector<1x10x128xf32>
    %398 = vector.shape_cast %397 : vector<1x10x128xf32> to vector<10x128xf32>
    %399 = vector.extract_strided_slice %398 {offsets = [0, 0], sizes = [1, 32], strides = [1, 1]} : vector<10x128xf32> to vector<1x32xf32>
    %400 = vector.extract_strided_slice %398 {offsets = [1, 0], sizes = [1, 32], strides = [1, 1]} : vector<10x128xf32> to vector<1x32xf32>
    %401 = vector.extract_strided_slice %398 {offsets = [2, 0], sizes = [1, 32], strides = [1, 1]} : vector<10x128xf32> to vector<1x32xf32>
    %402 = vector.extract_strided_slice %398 {offsets = [3, 0], sizes = [1, 32], strides = [1, 1]} : vector<10x128xf32> to vector<1x32xf32>
    %403 = vector.extract_strided_slice %398 {offsets = [4, 0], sizes = [1, 32], strides = [1, 1]} : vector<10x128xf32> to vector<1x32xf32>
    %404 = vector.extract_strided_slice %398 {offsets = [5, 0], sizes = [1, 32], strides = [1, 1]} : vector<10x128xf32> to vector<1x32xf32>
    %405 = vector.extract_strided_slice %398 {offsets = [6, 0], sizes = [1, 128], strides = [1, 1]} : vector<10x128xf32> to vector<1x128xf32>
    %406 = vector.extract_strided_slice %398 {offsets = [7, 0], sizes = [1, 32], strides = [1, 1]} : vector<10x128xf32> to vector<1x32xf32>
    %407 = vector.extract_strided_slice %398 {offsets = [8, 0], sizes = [1, 32], strides = [1, 1]} : vector<10x128xf32> to vector<1x32xf32>
    %408 = vector.extract_strided_slice %398 {offsets = [9, 0], sizes = [1, 32], strides = [1, 1]} : vector<10x128xf32> to vector<1x32xf32>
    %409 = vector.extract_strided_slice %390 {offsets = [0, 0, 0], sizes = [1, 32, 32], strides = [1, 1, 1]} : vector<3x32x32xf32> to vector<1x32x32xf32>
    %410 = vector.shape_cast %409 : vector<1x32x32xf32> to vector<32x32xf32>
    %cst_157 = arith.constant dense<0.000000e+00> : vector<8x32xf32>
    %411 = tpu.matmul %388, %410, %cst_157 {dimension_numbers = #tpu.dot_dimension_numbers<[1], [0], [0], [1], [0, 0, 1, 1], [], []>} : vector<8x32xf32>, vector<32x32xf32>, vector<8x32xf32> -> vector<8x32xf32>
    %412 = vector.broadcast %399 : vector<1x32xf32> to vector<8x32xf32>
    %413 = arith.addf %411, %412 : vector<8x32xf32>
    %414 = vector.extract_strided_slice %390 {offsets = [1, 0, 0], sizes = [1, 32, 32], strides = [1, 1, 1]} : vector<3x32x32xf32> to vector<1x32x32xf32>
    %415 = vector.shape_cast %414 : vector<1x32x32xf32> to vector<32x32xf32>
    %cst_158 = arith.constant dense<0.000000e+00> : vector<8x32xf32>
    %416 = tpu.matmul %388, %415, %cst_158 {dimension_numbers = #tpu.dot_dimension_numbers<[1], [0], [0], [1], [0, 0, 1, 1], [], []>} : vector<8x32xf32>, vector<32x32xf32>, vector<8x32xf32> -> vector<8x32xf32>
    %417 = vector.broadcast %400 : vector<1x32xf32> to vector<8x32xf32>
    %418 = arith.addf %416, %417 : vector<8x32xf32>
    %419 = vector.extract_strided_slice %390 {offsets = [2, 0, 0], sizes = [1, 32, 32], strides = [1, 1, 1]} : vector<3x32x32xf32> to vector<1x32x32xf32>
    %420 = vector.shape_cast %419 : vector<1x32x32xf32> to vector<32x32xf32>
    %cst_159 = arith.constant dense<0.000000e+00> : vector<8x32xf32>
    %421 = tpu.matmul %388, %420, %cst_159 {dimension_numbers = #tpu.dot_dimension_numbers<[1], [0], [0], [1], [0, 0, 1, 1], [], []>} : vector<8x32xf32>, vector<32x32xf32>, vector<8x32xf32> -> vector<8x32xf32>
    %422 = vector.broadcast %401 : vector<1x32xf32> to vector<8x32xf32>
    %423 = arith.addf %421, %422 : vector<8x32xf32>
    "tpu.trace_start"() <{level = 10 : i32, message = "qd,kd->qk"}> : () -> ()
    %cst_160 = arith.constant dense<0.000000e+00> : vector<8x8xf32>
    %424 = tpu.matmul %413, %418, %cst_160 {dimension_numbers = #tpu.dot_dimension_numbers<[1], [1], [0], [0], [0, 0, 1, 0], [], []>} : vector<8x32xf32>, vector<8x32xf32>, vector<8x8xf32> -> vector<8x8xf32>
    "tpu.trace_stop"() : () -> ()
    %cst_161 = arith.constant 0.176776692 : f32
    %425 = vector.broadcast %cst_161 : f32 to vector<8x8xf32>
    %426 = arith.mulf %424, %425 : vector<8x8xf32>
    %427 = vector.broadcast %242 : vector<1x8xf32> to vector<8x8xf32>
    %428 = arith.addf %426, %427 : vector<8x8xf32>
    %cst_162 = arith.constant dense<0xFF800000> : vector<8xf32>
    %429 = vector.multi_reduction <maximumf>, %428, %cst_162 [1] : vector<8x8xf32> to vector<8xf32>
    %430 = vector.shape_cast %429 : vector<8xf32> to vector<8x1xf32>
    %431 = vector.broadcast %430 : vector<8x1xf32> to vector<8x8xf32>
    %432 = arith.subf %428, %431 : vector<8x8xf32>
    %433 = math.exp %432 : vector<8x8xf32>
    %cst_163 = arith.constant dense<0.000000e+00> : vector<8xf32>
    %434 = vector.multi_reduction <add>, %433, %cst_163 [1] : vector<8x8xf32> to vector<8xf32>
    %435 = vector.shape_cast %434 : vector<8xf32> to vector<8x1xf32>
    %436 = tpu.reciprocal %435 {approx = true} : vector<8x1xf32> -> vector<8x1xf32>
    %437 = vector.broadcast %436 : vector<8x1xf32> to vector<8x8xf32>
    %438 = arith.mulf %433, %437 : vector<8x8xf32>
    %cst_164 = arith.constant dense<0.000000e+00> : vector<8x32xf32>
    %439 = tpu.matmul %438, %423, %cst_164 {dimension_numbers = #tpu.dot_dimension_numbers<[1], [0], [0], [1], [0, 0, 1, 1], [], []>} : vector<8x8xf32>, vector<8x32xf32>, vector<8x32xf32> -> vector<8x32xf32>
    %cst_165 = arith.constant dense<0.000000e+00> : vector<8x32xf32>
    %440 = tpu.matmul %439, %392, %cst_165 {dimension_numbers = #tpu.dot_dimension_numbers<[1], [0], [0], [1], [0, 0, 1, 1], [], []>} : vector<8x32xf32>, vector<32x32xf32>, vector<8x32xf32> -> vector<8x32xf32>
    %441 = vector.broadcast %402 : vector<1x32xf32> to vector<8x32xf32>
    %442 = arith.addf %440, %441 : vector<8x32xf32>
    %443 = arith.addf %388, %442 : vector<8x32xf32>
    %cst_166 = arith.constant dense<0.000000e+00> : vector<8xf32>
    %444 = vector.multi_reduction <add>, %443, %cst_166 [1] : vector<8x32xf32> to vector<8xf32>
    %445 = vector.shape_cast %444 : vector<8xf32> to vector<8x1xf32>
    %cst_167 = arith.constant 3.200000e+01 : f32
    %446 = vector.broadcast %cst_167 : f32 to vector<8x1xf32>
    %447 = arith.divf %445, %446 : vector<8x1xf32>
    %448 = vector.broadcast %447 : vector<8x1xf32> to vector<8x32xf32>
    %449 = arith.subf %443, %448 : vector<8x32xf32>
    %450 = arith.mulf %449, %449 : vector<8x32xf32>
    %cst_168 = arith.constant dense<0.000000e+00> : vector<8xf32>
    %451 = vector.multi_reduction <add>, %450, %cst_168 [1] : vector<8x32xf32> to vector<8xf32>
    %452 = vector.shape_cast %451 : vector<8xf32> to vector<8x1xf32>
    %cst_169 = arith.constant 3.200000e+01 : f32
    %453 = vector.broadcast %cst_169 : f32 to vector<8x1xf32>
    %454 = arith.divf %452, %453 : vector<8x1xf32>
    %455 = vector.broadcast %447 : vector<8x1xf32> to vector<8x32xf32>
    %456 = arith.subf %443, %455 : vector<8x32xf32>
    %cst_170 = arith.constant 9.99999974E-6 : f32
    %457 = vector.broadcast %cst_170 : f32 to vector<8x1xf32>
    %458 = arith.addf %454, %457 : vector<8x1xf32>
    %459 = math.rsqrt %458 : vector<8x1xf32>
    %460 = vector.broadcast %459 : vector<8x1xf32> to vector<8x32xf32>
    %461 = arith.mulf %456, %460 : vector<8x32xf32>
    %462 = vector.broadcast %403 : vector<1x32xf32> to vector<8x32xf32>
    %463 = arith.mulf %461, %462 : vector<8x32xf32>
    %464 = vector.broadcast %404 : vector<1x32xf32> to vector<8x32xf32>
    %465 = arith.addf %463, %464 : vector<8x32xf32>
    %cst_171 = arith.constant dense<0.000000e+00> : vector<8x128xf32>
    %466 = tpu.matmul %465, %394, %cst_171 {dimension_numbers = #tpu.dot_dimension_numbers<[1], [0], [0], [1], [0, 0, 1, 1], [], []>} : vector<8x32xf32>, vector<32x128xf32>, vector<8x128xf32> -> vector<8x128xf32>
    %467 = vector.broadcast %405 : vector<1x128xf32> to vector<8x128xf32>
    %468 = arith.addf %466, %467 : vector<8x128xf32>
    %469 = arith.mulf %468, %468 : vector<8x128xf32>
    %470 = arith.mulf %468, %469 : vector<8x128xf32>
    %cst_172 = arith.constant 4.471500e-02 : f32
    %471 = vector.broadcast %cst_172 : f32 to vector<8x128xf32>
    %472 = arith.mulf %471, %470 : vector<8x128xf32>
    %473 = arith.addf %468, %472 : vector<8x128xf32>
    %cst_173 = arith.constant 0.797884583 : f32
    %474 = vector.broadcast %cst_173 : f32 to vector<8x128xf32>
    %475 = arith.mulf %474, %473 : vector<8x128xf32>
    %476 = math.tanh %475 : vector<8x128xf32>
    %cst_174 = arith.constant 1.000000e+00 : f32
    %477 = vector.broadcast %cst_174 : f32 to vector<8x128xf32>
    %478 = arith.addf %477, %476 : vector<8x128xf32>
    %cst_175 = arith.constant 5.000000e-01 : f32
    %479 = vector.broadcast %cst_175 : f32 to vector<8x128xf32>
    %480 = arith.mulf %479, %478 : vector<8x128xf32>
    %481 = arith.mulf %468, %480 : vector<8x128xf32>
    %cst_176 = arith.constant dense<0.000000e+00> : vector<8x32xf32>
    %482 = tpu.matmul %481, %396, %cst_176 {dimension_numbers = #tpu.dot_dimension_numbers<[1], [0], [0], [1], [0, 0, 1, 1], [], []>} : vector<8x128xf32>, vector<128x32xf32>, vector<8x32xf32> -> vector<8x32xf32>
    %483 = vector.broadcast %406 : vector<1x32xf32> to vector<8x32xf32>
    %484 = arith.addf %482, %483 : vector<8x32xf32>
    %485 = arith.addf %465, %484 : vector<8x32xf32>
    %cst_177 = arith.constant dense<0.000000e+00> : vector<8xf32>
    %486 = vector.multi_reduction <add>, %485, %cst_177 [1] : vector<8x32xf32> to vector<8xf32>
    %487 = vector.shape_cast %486 : vector<8xf32> to vector<8x1xf32>
    %cst_178 = arith.constant 3.200000e+01 : f32
    %488 = vector.broadcast %cst_178 : f32 to vector<8x1xf32>
    %489 = arith.divf %487, %488 : vector<8x1xf32>
    %490 = vector.broadcast %489 : vector<8x1xf32> to vector<8x32xf32>
    %491 = arith.subf %485, %490 : vector<8x32xf32>
    %492 = arith.mulf %491, %491 : vector<8x32xf32>
    %cst_179 = arith.constant dense<0.000000e+00> : vector<8xf32>
    %493 = vector.multi_reduction <add>, %492, %cst_179 [1] : vector<8x32xf32> to vector<8xf32>
    %494 = vector.shape_cast %493 : vector<8xf32> to vector<8x1xf32>
    %cst_180 = arith.constant 3.200000e+01 : f32
    %495 = vector.broadcast %cst_180 : f32 to vector<8x1xf32>
    %496 = arith.divf %494, %495 : vector<8x1xf32>
    %497 = vector.broadcast %489 : vector<8x1xf32> to vector<8x32xf32>
    %498 = arith.subf %485, %497 : vector<8x32xf32>
    %cst_181 = arith.constant 9.99999974E-6 : f32
    %499 = vector.broadcast %cst_181 : f32 to vector<8x1xf32>
    %500 = arith.addf %496, %499 : vector<8x1xf32>
    %501 = math.rsqrt %500 : vector<8x1xf32>
    %502 = vector.broadcast %501 : vector<8x1xf32> to vector<8x32xf32>
    %503 = arith.mulf %498, %502 : vector<8x32xf32>
    %504 = vector.broadcast %407 : vector<1x32xf32> to vector<8x32xf32>
    %505 = arith.mulf %503, %504 : vector<8x32xf32>
    %506 = vector.broadcast %408 : vector<1x32xf32> to vector<8x32xf32>
    %507 = arith.addf %505, %506 : vector<8x32xf32>
    %c0_182 = arith.constant 0 : index
    %c0_183 = arith.constant 0 : index
    %508 = vector.load %arg18[%c0_182, %c0_183] : memref<3x128xf32, #tpu.memory_space<vmem>>, vector<3x128xf32>
    %c0_184 = arith.constant 0 : index
    %c0_185 = arith.constant 0 : index
    %509 = vector.load %arg17[%c0_184, %c0_185] : memref<32x32xf32, #tpu.memory_space<vmem>>, vector<32x32xf32>
    %cst_186 = arith.constant dense<0.000000e+00> : vector<8x32xf32>
    %510 = tpu.matmul %507, %509, %cst_186 {dimension_numbers = #tpu.dot_dimension_numbers<[1], [0], [0], [1], [0, 0, 1, 1], [], []>} : vector<8x32xf32>, vector<32x32xf32>, vector<8x32xf32> -> vector<8x32xf32>
    %511 = vector.extract_strided_slice %508 {offsets = [0, 0], sizes = [1, 32], strides = [1, 1]} : vector<3x128xf32> to vector<1x32xf32>
    %512 = vector.broadcast %511 : vector<1x32xf32> to vector<8x32xf32>
    %513 = arith.addf %510, %512 : vector<8x32xf32>
    %514 = arith.mulf %513, %513 : vector<8x32xf32>
    %515 = arith.mulf %513, %514 : vector<8x32xf32>
    %cst_187 = arith.constant 4.471500e-02 : f32
    %516 = vector.broadcast %cst_187 : f32 to vector<8x32xf32>
    %517 = arith.mulf %516, %515 : vector<8x32xf32>
    %518 = arith.addf %513, %517 : vector<8x32xf32>
    %cst_188 = arith.constant 0.797884583 : f32
    %519 = vector.broadcast %cst_188 : f32 to vector<8x32xf32>
    %520 = arith.mulf %519, %518 : vector<8x32xf32>
    %521 = math.tanh %520 : vector<8x32xf32>
    %cst_189 = arith.constant 1.000000e+00 : f32
    %522 = vector.broadcast %cst_189 : f32 to vector<8x32xf32>
    %523 = arith.addf %522, %521 : vector<8x32xf32>
    %cst_190 = arith.constant 5.000000e-01 : f32
    %524 = vector.broadcast %cst_190 : f32 to vector<8x32xf32>
    %525 = arith.mulf %524, %523 : vector<8x32xf32>
    %526 = arith.mulf %513, %525 : vector<8x32xf32>
    %527 = vector.extract_strided_slice %508 {offsets = [1, 0], sizes = [1, 32], strides = [1, 1]} : vector<3x128xf32> to vector<1x32xf32>
    %528 = vector.extract_strided_slice %508 {offsets = [2, 0], sizes = [1, 32], strides = [1, 1]} : vector<3x128xf32> to vector<1x32xf32>
    %cst_191 = arith.constant dense<0.000000e+00> : vector<8xf32>
    %529 = vector.multi_reduction <add>, %526, %cst_191 [1] : vector<8x32xf32> to vector<8xf32>
    %530 = vector.shape_cast %529 : vector<8xf32> to vector<8x1xf32>
    %cst_192 = arith.constant 3.200000e+01 : f32
    %531 = vector.broadcast %cst_192 : f32 to vector<8x1xf32>
    %532 = arith.divf %530, %531 : vector<8x1xf32>
    %533 = vector.broadcast %532 : vector<8x1xf32> to vector<8x32xf32>
    %534 = arith.subf %526, %533 : vector<8x32xf32>
    %535 = arith.mulf %534, %534 : vector<8x32xf32>
    %cst_193 = arith.constant dense<0.000000e+00> : vector<8xf32>
    %536 = vector.multi_reduction <add>, %535, %cst_193 [1] : vector<8x32xf32> to vector<8xf32>
    %537 = vector.shape_cast %536 : vector<8xf32> to vector<8x1xf32>
    %cst_194 = arith.constant 3.200000e+01 : f32
    %538 = vector.broadcast %cst_194 : f32 to vector<8x1xf32>
    %539 = arith.divf %537, %538 : vector<8x1xf32>
    %540 = vector.broadcast %532 : vector<8x1xf32> to vector<8x32xf32>
    %541 = arith.subf %526, %540 : vector<8x32xf32>
    %cst_195 = arith.constant 9.99999974E-6 : f32
    %542 = vector.broadcast %cst_195 : f32 to vector<8x1xf32>
    %543 = arith.addf %539, %542 : vector<8x1xf32>
    %544 = math.rsqrt %543 : vector<8x1xf32>
    %545 = vector.broadcast %544 : vector<8x1xf32> to vector<8x32xf32>
    %546 = arith.mulf %541, %545 : vector<8x32xf32>
    %547 = vector.broadcast %527 : vector<1x32xf32> to vector<8x32xf32>
    %548 = arith.mulf %546, %547 : vector<8x32xf32>
    %549 = vector.broadcast %528 : vector<1x32xf32> to vector<8x32xf32>
    %550 = arith.addf %548, %549 : vector<8x32xf32>
    %c0_196 = arith.constant 0 : index
    %c0_197 = arith.constant 0 : index
    %551 = vector.load %arg21[%c0_196, %c0_197] : memref<6x128xf32, #tpu.memory_space<vmem>>, vector<6x128xf32>
    %c0_198 = arith.constant 0 : index
    %c0_199 = arith.constant 0 : index
    %c0_200 = arith.constant 0 : index
    %552 = vector.load %arg19[%c0_198, %c0_199, %c0_200] : memref<3x32x32xf32, #tpu.memory_space<vmem>>, vector<3x32x32xf32>
    %553 = vector.extract_strided_slice %552 {offsets = [0, 0, 0], sizes = [1, 32, 32], strides = [1, 1, 1]} : vector<3x32x32xf32> to vector<1x32x32xf32>
    %554 = vector.shape_cast %553 : vector<1x32x32xf32> to vector<32x32xf32>
    %cst_201 = arith.constant dense<0.000000e+00> : vector<8x32xf32>
    %555 = tpu.matmul %240, %554, %cst_201 {dimension_numbers = #tpu.dot_dimension_numbers<[1], [0], [0], [1], [0, 0, 1, 1], [], []>} : vector<8x32xf32>, vector<32x32xf32>, vector<8x32xf32> -> vector<8x32xf32>
    %556 = vector.extract_strided_slice %551 {offsets = [0, 0], sizes = [1, 32], strides = [1, 1]} : vector<6x128xf32> to vector<1x32xf32>
    %557 = vector.broadcast %556 : vector<1x32xf32> to vector<8x32xf32>
    %558 = arith.addf %555, %557 : vector<8x32xf32>
    %559 = vector.extract_strided_slice %552 {offsets = [1, 0, 0], sizes = [1, 32, 32], strides = [1, 1, 1]} : vector<3x32x32xf32> to vector<1x32x32xf32>
    %560 = vector.shape_cast %559 : vector<1x32x32xf32> to vector<32x32xf32>
    %cst_202 = arith.constant dense<0.000000e+00> : vector<8x32xf32>
    %561 = tpu.matmul %550, %560, %cst_202 {dimension_numbers = #tpu.dot_dimension_numbers<[1], [0], [0], [1], [0, 0, 1, 1], [], []>} : vector<8x32xf32>, vector<32x32xf32>, vector<8x32xf32> -> vector<8x32xf32>
    %562 = vector.extract_strided_slice %551 {offsets = [1, 0], sizes = [1, 32], strides = [1, 1]} : vector<6x128xf32> to vector<1x32xf32>
    %563 = vector.broadcast %562 : vector<1x32xf32> to vector<8x32xf32>
    %564 = arith.addf %561, %563 : vector<8x32xf32>
    %565 = vector.extract_strided_slice %552 {offsets = [2, 0, 0], sizes = [1, 32, 32], strides = [1, 1, 1]} : vector<3x32x32xf32> to vector<1x32x32xf32>
    %566 = vector.shape_cast %565 : vector<1x32x32xf32> to vector<32x32xf32>
    %cst_203 = arith.constant dense<0.000000e+00> : vector<8x32xf32>
    %567 = tpu.matmul %550, %566, %cst_203 {dimension_numbers = #tpu.dot_dimension_numbers<[1], [0], [0], [1], [0, 0, 1, 1], [], []>} : vector<8x32xf32>, vector<32x32xf32>, vector<8x32xf32> -> vector<8x32xf32>
    %568 = vector.extract_strided_slice %551 {offsets = [2, 0], sizes = [1, 32], strides = [1, 1]} : vector<6x128xf32> to vector<1x32xf32>
    %569 = vector.broadcast %568 : vector<1x32xf32> to vector<8x32xf32>
    %570 = arith.addf %567, %569 : vector<8x32xf32>
    "tpu.trace_start"() <{level = 10 : i32, message = "qd,kd->qk"}> : () -> ()
    %cst_204 = arith.constant dense<0.000000e+00> : vector<8x8xf32>
    %571 = tpu.matmul %558, %564, %cst_204 {dimension_numbers = #tpu.dot_dimension_numbers<[1], [1], [0], [0], [0, 0, 1, 0], [], []>} : vector<8x32xf32>, vector<8x32xf32>, vector<8x8xf32> -> vector<8x8xf32>
    "tpu.trace_stop"() : () -> ()
    %cst_205 = arith.constant 0.176776692 : f32
    %572 = vector.broadcast %cst_205 : f32 to vector<8x8xf32>
    %573 = arith.mulf %571, %572 : vector<8x8xf32>
    %574 = vector.broadcast %242 : vector<1x8xf32> to vector<8x8xf32>
    %575 = arith.addf %573, %574 : vector<8x8xf32>
    %cst_206 = arith.constant dense<0xFF800000> : vector<8xf32>
    %576 = vector.multi_reduction <maximumf>, %575, %cst_206 [1] : vector<8x8xf32> to vector<8xf32>
    %577 = vector.shape_cast %576 : vector<8xf32> to vector<8x1xf32>
    %578 = vector.broadcast %577 : vector<8x1xf32> to vector<8x8xf32>
    %579 = arith.subf %575, %578 : vector<8x8xf32>
    %580 = math.exp %579 : vector<8x8xf32>
    %cst_207 = arith.constant dense<0.000000e+00> : vector<8xf32>
    %581 = vector.multi_reduction <add>, %580, %cst_207 [1] : vector<8x8xf32> to vector<8xf32>
    %582 = vector.shape_cast %581 : vector<8xf32> to vector<8x1xf32>
    %583 = tpu.reciprocal %582 {approx = true} : vector<8x1xf32> -> vector<8x1xf32>
    %584 = vector.broadcast %583 : vector<8x1xf32> to vector<8x8xf32>
    %585 = arith.mulf %580, %584 : vector<8x8xf32>
    %cst_208 = arith.constant dense<0.000000e+00> : vector<8x32xf32>
    %586 = tpu.matmul %585, %570, %cst_208 {dimension_numbers = #tpu.dot_dimension_numbers<[1], [0], [0], [1], [0, 0, 1, 1], [], []>} : vector<8x8xf32>, vector<8x32xf32>, vector<8x32xf32> -> vector<8x32xf32>
    %c0_209 = arith.constant 0 : index
    %c0_210 = arith.constant 0 : index
    %587 = vector.load %arg20[%c0_209, %c0_210] : memref<32x32xf32, #tpu.memory_space<vmem>>, vector<32x32xf32>
    %cst_211 = arith.constant dense<0.000000e+00> : vector<8x32xf32>
    %588 = tpu.matmul %586, %587, %cst_211 {dimension_numbers = #tpu.dot_dimension_numbers<[1], [0], [0], [1], [0, 0, 1, 1], [], []>} : vector<8x32xf32>, vector<32x32xf32>, vector<8x32xf32> -> vector<8x32xf32>
    %589 = vector.extract_strided_slice %551 {offsets = [3, 0], sizes = [1, 32], strides = [1, 1]} : vector<6x128xf32> to vector<1x32xf32>
    %590 = vector.broadcast %589 : vector<1x32xf32> to vector<8x32xf32>
    %591 = arith.addf %588, %590 : vector<8x32xf32>
    %592 = vector.extract_strided_slice %551 {offsets = [4, 0], sizes = [1, 32], strides = [1, 1]} : vector<6x128xf32> to vector<1x32xf32>
    %593 = vector.extract_strided_slice %551 {offsets = [5, 0], sizes = [1, 32], strides = [1, 1]} : vector<6x128xf32> to vector<1x32xf32>
    %cst_212 = arith.constant dense<0.000000e+00> : vector<8xf32>
    %594 = vector.multi_reduction <add>, %591, %cst_212 [1] : vector<8x32xf32> to vector<8xf32>
    %595 = vector.shape_cast %594 : vector<8xf32> to vector<8x1xf32>
    %cst_213 = arith.constant 3.200000e+01 : f32
    %596 = vector.broadcast %cst_213 : f32 to vector<8x1xf32>
    %597 = arith.divf %595, %596 : vector<8x1xf32>
    %598 = vector.broadcast %597 : vector<8x1xf32> to vector<8x32xf32>
    %599 = arith.subf %591, %598 : vector<8x32xf32>
    %600 = arith.mulf %599, %599 : vector<8x32xf32>
    %cst_214 = arith.constant dense<0.000000e+00> : vector<8xf32>
    %601 = vector.multi_reduction <add>, %600, %cst_214 [1] : vector<8x32xf32> to vector<8xf32>
    %602 = vector.shape_cast %601 : vector<8xf32> to vector<8x1xf32>
    %cst_215 = arith.constant 3.200000e+01 : f32
    %603 = vector.broadcast %cst_215 : f32 to vector<8x1xf32>
    %604 = arith.divf %602, %603 : vector<8x1xf32>
    %605 = vector.broadcast %597 : vector<8x1xf32> to vector<8x32xf32>
    %606 = arith.subf %591, %605 : vector<8x32xf32>
    %cst_216 = arith.constant 9.99999974E-6 : f32
    %607 = vector.broadcast %cst_216 : f32 to vector<8x1xf32>
    %608 = arith.addf %604, %607 : vector<8x1xf32>
    %609 = math.rsqrt %608 : vector<8x1xf32>
    %610 = vector.broadcast %609 : vector<8x1xf32> to vector<8x32xf32>
    %611 = arith.mulf %606, %610 : vector<8x32xf32>
    %612 = vector.broadcast %592 : vector<1x32xf32> to vector<8x32xf32>
    %613 = arith.mulf %611, %612 : vector<8x32xf32>
    %614 = vector.broadcast %593 : vector<1x32xf32> to vector<8x32xf32>
    %615 = arith.addf %613, %614 : vector<8x32xf32>
    %616 = vector.shape_cast %615 : vector<8x32xf32> to vector<1x8x32xf32>
    %c0_217 = arith.constant 0 : index
    %c0_218 = arith.constant 0 : index
    %c0_219 = arith.constant 0 : index
    %617 = vector.load %arg22[%c0_217, %c0_218, %c0_219] : memref<1x8x32xf32, #tpu.memory_space<vmem>>, vector<1x8x32xf32>
    tpu.vector_store %arg22[%c0_217, %c0_218, %c0_219], %616 {strides = array<i32>} : memref<1x8x32xf32, #tpu.memory_space<vmem>>, vector<1x8x32xf32>,
    %618 = tpu.iota {dimensions = array<i32: 1>} : vector<1x4xi32>
    %cst_220 = arith.constant 0.000000e+00 : f32
    %619 = vector.broadcast %cst_220 : f32 to vector<1x4xf32>
    %c0_i32 = arith.constant 0 : i32
    %620 = vector.broadcast %c0_i32 : i32 to vector<1x4xi32>
    %621 = arith.cmpi eq, %618, %620 : vector<1x4xi32>
    %622 = arith.cmpf one, %240, %240 : vector<8x32xf32>
    %623 = arith.extui %622 : vector<8x32xi1> to vector<8x32xi32>
    %624 = arith.sitofp %623 : vector<8x32xi32> to vector<8x32xf32>
    %cst_221 = arith.constant dense<0xFF800000> : vector<8xf32>
    %625 = vector.multi_reduction <maximumf>, %624, %cst_221 [1] : vector<8x32xf32> to vector<8xf32>
    %626 = vector.shape_cast %625 : vector<8xf32> to vector<8x1xf32>
    %cst_222 = arith.constant dense<0xFF800000> : vector<1xf32>
    %627 = vector.multi_reduction <maximumf>, %626, %cst_222 [0] : vector<8x1xf32> to vector<1xf32>
    %628 = vector.shape_cast %627 : vector<1xf32> to vector<1x1xf32>
    %629 = vector.shape_cast %628 : vector<1x1xf32> to vector<1x1xf32>
    %630 = vector.broadcast %629 : vector<1x1xf32> to vector<1x4xf32>
    %631 = arith.select %621, %630, %619 : vector<1x4xi1>, vector<1x4xf32>
    %c1_i32 = arith.constant 1 : i32
    %632 = vector.broadcast %c1_i32 : i32 to vector<1x4xi32>
    %633 = arith.cmpi eq, %618, %632 : vector<1x4xi32>
    %634 = arith.cmpf one, %507, %507 : vector<8x32xf32>
    %635 = arith.extui %634 : vector<8x32xi1> to vector<8x32xi32>
    %636 = arith.sitofp %635 : vector<8x32xi32> to vector<8x32xf32>
    %cst_223 = arith.constant dense<0xFF800000> : vector<8xf32>
    %637 = vector.multi_reduction <maximumf>, %636, %cst_223 [1] : vector<8x32xf32> to vector<8xf32>
    %638 = vector.shape_cast %637 : vector<8xf32> to vector<8x1xf32>
    %cst_224 = arith.constant dense<0xFF800000> : vector<1xf32>
    %639 = vector.multi_reduction <maximumf>, %638, %cst_224 [0] : vector<8x1xf32> to vector<1xf32>
    %640 = vector.shape_cast %639 : vector<1xf32> to vector<1x1xf32>
    %641 = vector.shape_cast %640 : vector<1x1xf32> to vector<1x1xf32>
    %642 = vector.broadcast %641 : vector<1x1xf32> to vector<1x4xf32>
    %643 = arith.select %633, %642, %619 : vector<1x4xi1>, vector<1x4xf32>
    %644 = arith.addf %631, %643 : vector<1x4xf32>
    %c2_i32 = arith.constant 2 : i32
    %645 = vector.broadcast %c2_i32 : i32 to vector<1x4xi32>
    %646 = arith.cmpi eq, %618, %645 : vector<1x4xi32>
    %647 = arith.cmpf one, %550, %550 : vector<8x32xf32>
    %648 = arith.extui %647 : vector<8x32xi1> to vector<8x32xi32>
    %649 = arith.sitofp %648 : vector<8x32xi32> to vector<8x32xf32>
    %cst_225 = arith.constant dense<0xFF800000> : vector<8xf32>
    %650 = vector.multi_reduction <maximumf>, %649, %cst_225 [1] : vector<8x32xf32> to vector<8xf32>
    %651 = vector.shape_cast %650 : vector<8xf32> to vector<8x1xf32>
    %cst_226 = arith.constant dense<0xFF800000> : vector<1xf32>
    %652 = vector.multi_reduction <maximumf>, %651, %cst_226 [0] : vector<8x1xf32> to vector<1xf32>
    %653 = vector.shape_cast %652 : vector<1xf32> to vector<1x1xf32>
    %654 = vector.shape_cast %653 : vector<1x1xf32> to vector<1x1xf32>
    %655 = vector.broadcast %654 : vector<1x1xf32> to vector<1x4xf32>
    %656 = arith.select %646, %655, %619 : vector<1x4xi1>, vector<1x4xf32>
    %657 = arith.addf %644, %656 : vector<1x4xf32>
    %c3_i32 = arith.constant 3 : i32
    %658 = vector.broadcast %c3_i32 : i32 to vector<1x4xi32>
    %659 = arith.cmpi eq, %618, %658 : vector<1x4xi32>
    %660 = arith.cmpf one, %615, %615 : vector<8x32xf32>
    %661 = arith.extui %660 : vector<8x32xi1> to vector<8x32xi32>
    %662 = arith.sitofp %661 : vector<8x32xi32> to vector<8x32xf32>
    %cst_227 = arith.constant dense<0xFF800000> : vector<8xf32>
    %663 = vector.multi_reduction <maximumf>, %662, %cst_227 [1] : vector<8x32xf32> to vector<8xf32>
    %664 = vector.shape_cast %663 : vector<8xf32> to vector<8x1xf32>
    %cst_228 = arith.constant dense<0xFF800000> : vector<1xf32>
    %665 = vector.multi_reduction <maximumf>, %664, %cst_228 [0] : vector<8x1xf32> to vector<1xf32>
    %666 = vector.shape_cast %665 : vector<1xf32> to vector<1x1xf32>
    %667 = vector.shape_cast %666 : vector<1x1xf32> to vector<1x1xf32>
    %668 = vector.broadcast %667 : vector<1x1xf32> to vector<1x4xf32>
    %669 = arith.select %659, %668, %619 : vector<1x4xi1>, vector<1x4xf32>
    %670 = arith.addf %657, %669 : vector<1x4xf32>
    %671 = vector.shape_cast %670 : vector<1x4xf32> to vector<1x1x4xf32>
    %c0_229 = arith.constant 0 : index
    %c0_230 = arith.constant 0 : index
    %c0_231 = arith.constant 0 : index
    %672 = vector.load %arg23[%c0_229, %c0_230, %c0_231] : memref<1x1x4xf32, #tpu.memory_space<vmem>>, vector<1x1x4xf32>
    tpu.vector_store %arg23[%c0_229, %c0_230, %c0_231], %671 {strides = array<i32>} : memref<1x1x4xf32, #tpu.memory_space<vmem>>, vector<1x1x4xf32>,
    return
  }
  func.func @transform_0(%arg0: i32) -> (i32, i32, i32) {
    %c0_i32 = arith.constant 0 : i32
    %c0_i32_0 = arith.constant 0 : i32
    %c0_i32_1 = arith.constant 0 : i32
    return %arg0, %c0_i32, %c0_i32_0 : i32, i32, i32
  }
  func.func @transform_1(%arg0: i32) -> (i32, i32) {
    %c0_i32 = arith.constant 0 : i32
    %c0_i32_0 = arith.constant 0 : i32
    %c0_i32_1 = arith.constant 0 : i32
    return %c0_i32, %c0_i32_0 : i32, i32
  }
  func.func @transform_2(%arg0: i32) -> (i32, i32) {
    %c0_i32 = arith.constant 0 : i32
    %c0_i32_0 = arith.constant 0 : i32
    %c0_i32_1 = arith.constant 0 : i32
    return %c0_i32, %c0_i32_0 : i32, i32
  }
  func.func @transform_3(%arg0: i32) -> (i32, i32, i32, i32) {
    %c0_i32 = arith.constant 0 : i32
    %c0_i32_0 = arith.constant 0 : i32
    %c0_i32_1 = arith.constant 0 : i32
    %c0_i32_2 = arith.constant 0 : i32
    %c0_i32_3 = arith.constant 0 : i32
    return %c0_i32, %c0_i32_0, %c0_i32_1, %c0_i32_2 : i32, i32, i32, i32
  }
  func.func @transform_4(%arg0: i32) -> (i32, i32, i32) {
    %c0_i32 = arith.constant 0 : i32
    %c0_i32_0 = arith.constant 0 : i32
    %c0_i32_1 = arith.constant 0 : i32
    %c0_i32_2 = arith.constant 0 : i32
    return %c0_i32, %c0_i32_0, %c0_i32_1 : i32, i32, i32
  }
  func.func @transform_5(%arg0: i32) -> (i32, i32, i32) {
    %c0_i32 = arith.constant 0 : i32
    %c0_i32_0 = arith.constant 0 : i32
    %c0_i32_1 = arith.constant 0 : i32
    %c0_i32_2 = arith.constant 0 : i32
    return %c0_i32, %c0_i32_0, %c0_i32_1 : i32, i32, i32
  }
  func.func @transform_6(%arg0: i32) -> (i32, i32, i32) {
    %c0_i32 = arith.constant 0 : i32
    %c0_i32_0 = arith.constant 0 : i32
    %c0_i32_1 = arith.constant 0 : i32
    %c0_i32_2 = arith.constant 0 : i32
    return %c0_i32, %c0_i32_0, %c0_i32_1 : i32, i32, i32
  }
  func.func @transform_7(%arg0: i32) -> (i32, i32, i32) {
    %c0_i32 = arith.constant 0 : i32
    %c0_i32_0 = arith.constant 0 : i32
    %c0_i32_1 = arith.constant 0 : i32
    %c0_i32_2 = arith.constant 0 : i32
    return %c0_i32, %c0_i32_0, %c0_i32_1 : i32, i32, i32
  }
  func.func @transform_8(%arg0: i32) -> (i32, i32, i32) {
    %c0_i32 = arith.constant 0 : i32
    %c0_i32_0 = arith.constant 0 : i32
    %c0_i32_1 = arith.constant 0 : i32
    return %arg0, %c0_i32, %c0_i32_0 : i32, i32, i32
  }
  func.func @transform_9(%arg0: i32) -> (i32, i32) {
    %c0_i32 = arith.constant 0 : i32
    %c0_i32_0 = arith.constant 0 : i32
    %c0_i32_1 = arith.constant 0 : i32
    return %c0_i32, %c0_i32_0 : i32, i32
  }
  func.func @transform_10(%arg0: i32) -> (i32, i32, i32, i32) {
    %c0_i32 = arith.constant 0 : i32
    %c0_i32_0 = arith.constant 0 : i32
    %c0_i32_1 = arith.constant 0 : i32
    %c0_i32_2 = arith.constant 0 : i32
    %c0_i32_3 = arith.constant 0 : i32
    return %c0_i32, %c0_i32_0, %c0_i32_1, %c0_i32_2 : i32, i32, i32, i32
  }
  func.func @transform_11(%arg0: i32) -> (i32, i32, i32) {
    %c0_i32 = arith.constant 0 : i32
    %c0_i32_0 = arith.constant 0 : i32
    %c0_i32_1 = arith.constant 0 : i32
    %c0_i32_2 = arith.constant 0 : i32
    return %c0_i32, %c0_i32_0, %c0_i32_1 : i32, i32, i32
  }
  func.func @transform_12(%arg0: i32) -> (i32, i32, i32) {
    %c0_i32 = arith.constant 0 : i32
    %c0_i32_0 = arith.constant 0 : i32
    %c0_i32_1 = arith.constant 0 : i32
    %c0_i32_2 = arith.constant 0 : i32
    return %c0_i32, %c0_i32_0, %c0_i32_1 : i32, i32, i32
  }
  func.func @transform_13(%arg0: i32) -> (i32, i32, i32) {
    %c0_i32 = arith.constant 0 : i32
    %c0_i32_0 = arith.constant 0 : i32
    %c0_i32_1 = arith.constant 0 : i32
    %c0_i32_2 = arith.constant 0 : i32
    return %c0_i32, %c0_i32_0, %c0_i32_1 : i32, i32, i32
  }
  func.func @transform_14(%arg0: i32) -> (i32, i32, i32) {
    %c0_i32 = arith.constant 0 : i32
    %c0_i32_0 = arith.constant 0 : i32
    %c0_i32_1 = arith.constant 0 : i32
    %c0_i32_2 = arith.constant 0 : i32
    return %c0_i32, %c0_i32_0, %c0_i32_1 : i32, i32, i32
  }
  func.func @transform_15(%arg0: i32) -> (i32, i32, i32) {
    %c0_i32 = arith.constant 0 : i32
    %c0_i32_0 = arith.constant 0 : i32
    %c0_i32_1 = arith.constant 0 : i32
    return %arg0, %c0_i32, %c0_i32_0 : i32, i32, i32
  }
  func.func @transform_16(%arg0: i32) -> (i32, i32) {
    %c0_i32 = arith.constant 0 : i32
    %c0_i32_0 = arith.constant 0 : i32
    %c0_i32_1 = arith.constant 0 : i32
    return %c0_i32, %c0_i32_0 : i32, i32
  }
  func.func @transform_17(%arg0: i32) -> (i32, i32) {
    %c0_i32 = arith.constant 0 : i32
    %c0_i32_0 = arith.constant 0 : i32
    %c0_i32_1 = arith.constant 0 : i32
    return %c0_i32, %c0_i32_0 : i32, i32
  }
  func.func @transform_18(%arg0: i32) -> (i32, i32, i32) {
    %c0_i32 = arith.constant 0 : i32
    %c0_i32_0 = arith.constant 0 : i32
    %c0_i32_1 = arith.constant 0 : i32
    %c0_i32_2 = arith.constant 0 : i32
    return %c0_i32, %c0_i32_0, %c0_i32_1 : i32, i32, i32
  }
  func.func @transform_19(%arg0: i32) -> (i32, i32) {
    %c0_i32 = arith.constant 0 : i32
    %c0_i32_0 = arith.constant 0 : i32
    %c0_i32_1 = arith.constant 0 : i32
    return %c0_i32, %c0_i32_0 : i32, i32
  }
  func.func @transform_20(%arg0: i32) -> (i32, i32) {
    %c0_i32 = arith.constant 0 : i32
    %c0_i32_0 = arith.constant 0 : i32
    %c0_i32_1 = arith.constant 0 : i32
    return %c0_i32, %c0_i32_0 : i32, i32
  }
  func.func @transform_21(%arg0: i32) -> (i32, i32, i32) {
    %c0_i32 = arith.constant 0 : i32
    %c0_i32_0 = arith.constant 0 : i32
    %c0_i32_1 = arith.constant 0 : i32
    return %arg0, %c0_i32, %c0_i32_0 : i32, i32, i32
  }
  func.func @transform_22(%arg0: i32) -> (i32, i32, i32) {
    %c0_i32 = arith.constant 0 : i32
    %c0_i32_0 = arith.constant 0 : i32
    %c0_i32_1 = arith.constant 0 : i32
    return %arg0, %c0_i32, %c0_i32_0 : i32, i32, i32
  }
}

</mosaic_0001>

<bundles_post_ra>
// kernel: forward.1
= control target key start
LH: loop header
LB: loop body
LE: loop exit
PB: predicated region body
PF: predicated region fallthrough
CT: control target
= control target key end

     0   :  { %s6751_s0 = inlined_call_operand.vmem [shape: f32[2,8,8], index: 0, kind: input, shape index: {}]   ;;  %s6752_s1 = inlined_call_operand.vmem [shape: f32[8,32], index: 1, kind: input, shape index: {}]   ;;  %s6753_s2 = inlined_call_operand.vmem [shape: f32[1,32], index: 2, kind: input, shape index: {}]   ;;  %s6754_s3 = inlined_call_operand.vmem [shape: f32[2,3,32,32], index: 3, kind: input, shape index: {}]   ;;  %s6755_s4 = inlined_call_operand.vmem [shape: f32[2,32,32], index: 4, kind: input, shape index: {}]   ;;  %s6756_s5 = inlined_call_operand.vmem [shape: f32[2,32,128], index: 5, kind: input, shape index: {}]   ;;  %s6757_s6 = inlined_call_operand.vmem [shape: f32[2,128,32], index: 6, kind: input, shape index: {}]   ;;  %s6758_s7 = inlined_call_operand.vmem [shape: f32[2,10,128], index: 7, kind: input, shape index: {}]   ;;  %s6759_s8 = inlined_call_operand.vmem [shape: f32[2,8,32], index: 8, kind: input, shape index: {}]   ;;  %s6760_s9 = inlined_call_operand.vmem [shape: f32[2,128], index: 9, kind: input, shape index: {}]   ;;  %s6761_s10 = inlined_call_operand.vmem [shape: f32[2,3,32,32], index: 10, kind: input, shape index: {}]   ;;  %s6762_s11 = inlined_call_operand.vmem [shape: f32[2,32,32], index: 11, kind: input, shape index: {}]   ;;  %s6763_s12 = inlined_call_operand.vmem [shape: f32[2,32,128], index: 12, kind: input, shape index: {}]   ;;  %s6764_s13 = inlined_call_operand.vmem [shape: f32[2,128,32], index: 13, kind: input, shape index: {}]   ;;  %s6765_s14 = inlined_call_operand.vmem [shape: f32[2,10,128], index: 14, kind: input, shape index: {}]   ;;  %s6766_s15 = inlined_call_operand.vmem [shape: f32[2,1,8], index: 15, kind: input, shape index: {}]   ;;  %s6767_s16 = inlined_call_operand.vmem [shape: f32[32,32], index: 16, kind: input, shape index: {}]   ;;  %s6768_s17 = inlined_call_operand.vmem [shape: f32[3,128], index: 17, kind: input, shape index: {}]   ;;  %s6769_s18 = inlined_call_operand.vmem [shape: f32[3,32,32], index: 18, kind: input, shape index: {}]   ;;  %s6770_s19 = inlined_call_operand.vmem [shape: f32[32,32], index: 19, kind: input, shape index: {}]   ;;  %s6771_s20 = inlined_call_operand.vmem [shape: f32[6,128], index: 20, kind: input, shape index: {}]   ;;  %s6772_s21 = inlined_call_operand.hbm [shape: f32[2,8,32], index: 21, kind: output, shape index: {0}]   ;;  %s6773_s22 = inlined_call_operand.vmem [shape: f32[2,1,4], index: 22, kind: output, shape index: {1}]  }
   0x1   :  { %6788 = sst [smem:[#allocation11_spill]] %s6751_s0 }
   0x2   :  { %6789 = sst [smem:[#allocation12_spill]] %s6752_s1 }
   0x3   :  { %6790 = sst [smem:[#allocation13_spill]] %s6753_s2 }
   0x4   :  { %6791 = sst [smem:[#allocation14_spill]] %s6754_s3 }
   0x5   :  { %6792 = sst [smem:[#allocation15_spill]] %s6755_s4 }
   0x6   :  { %6793 = sst [smem:[#allocation16_spill]] %s6756_s5 }
   0x7   :  { %6794 = sst [smem:[#allocation17_spill]] %s6757_s6 }
   0x8   :  { %6795 = sst [smem:[#allocation18_spill]] %s6758_s7 }
   0x9   :  { %6796 = sst [smem:[#allocation19_spill]] %s6773_s22 }
   0xa   :  { %28 = vsyncpa [#allocation3], 0 }
   0xb   :  { %30 = vsyncpa [#allocation3 + $0x1], 0  ;;  %s5582_s3 = smov 0   ;;  %s5584_s28 = smov 0  }
   0xc   :  { %s5586_s29 = smov 0   ;;  %s5588_s30 = smov 0  }
   0xd LB: > { %6797 = sst [smem:[#allocation5_spill]] %s5450_s3  ;;  %s5603_s4 = sadd.s32 4294967295, %s5462_s30   ;;  %s5462_s30 = sphi %s5588_s30, %s6818_s30   ;;  %s5458_s29 = sphi %s5586_s29, %s6820_s29   ;;  %s5454_s28 = sphi %s5584_s28, %s6822_s28   ;;  %s5450_s3 = sphi %s5582_s3, %s6821_s3  }
   0xe   : > { %6798 = sst [smem:[#allocation6_spill]] %s5458_s29  ;;  %s4488_s0 = sadd.s32 4294967294, %s5462_s30  }
   0xf   : > { %6799 = sst [smem:[#allocation7_spill]] %s5462_s30  ;;  %s5607_s23 = sadd.s32 1, %s5462_s30  }
  0x10   : > { %6800 = sst [smem:[#allocation8_spill]] %s5607_s23  ;;  %s499_s1 = sadd.s32 1, %s5458_s29 }
  0x11   : > { %s496_s5 = ssub.s32 %s5462_s30, %s5607_s23  ;;  %p509_p0 = scmp.ne.s32.totalorder %s5458_s29, %s5454_s28 }
  0x12   : > { %p497_p1 = scmp.eq.s32.totalorder %s496_s5, 0  ;;  %p510_p2 = scmp.eq.s32.totalorder %s5603_s4, 1 }
  0x13   : > { %p515_p3 = scmp.ne.s32.totalorder %s5454_s28, %s5450_s3  ;;  %p516_p4 = scmp.eq.s32.totalorder %s4488_s0, 1 }
  0x14   : > { %s5618_s24 = scalar_select %p497_p1, %s5458_s29, %s499_s1  }
  0x15   : > { %p5620_p5 = por %p510_p2, %p509_p0  ;;  %p5624_p6 = por %p516_p4, %p515_p3 }
  0x16   : > { %6801 = sst [smem:[#allocation9_spill]] %s5618_s24  ;;  %p4491_p7 = scmp.ge.s32.totalorder %s5462_s30, 1 }
  0x17   : > { %s6803_s25 = scalar_select %p5624_p6, 1, 0 }
  0x18   : > { %p634_p8 = scmp.lt.s32.totalorder %s5462_s30, 3 }
  0x19   : > { %6804 = sst [smem:[#allocation10_spill]] %s6803_s25 }
  0x1a   : > { %p635_p9 = pnand %p4491_p7, %p634_p8 }
  0x1b   : > { %s6805_s27 = sld [smem:[#allocation12_spill]] (!%p635_p9)  ;;  %p705_p10 = scmp.lt.s32.totalorder (!%p635_p9), %s5603_s4, 1 }
  0x1c   : > { %638 = sbr.rel (%p635_p9) target bundleno = 10164 (0x27b4), region = 104  ;;  %s6806_s5 = sld [smem:[#allocation14_spill]] (!%p635_p9) }
  0x1d   : > { %s6807_s25 = sld [smem:[#allocation11_spill]] (!%p635_p9) }
  0x1e   : > { %s6808_s3 = sld [smem:[#allocation13_spill]] (!%p635_p9) }
  0x1f   : > { %s6809_s7 = sld [smem:[#allocation18_spill]] (!%p635_p9) }
  0x20   : > { %s6810_s2 = sld [smem:[#allocation15_spill]] (!%p635_p9) }
  0x21   : > { %v720_v0 = vld [vmem:[%s6805_s27] sm:$0xff]  ;;  %v5464_v2 = vmov 0.0   ;;  %vm5465_vm0 = vmmov 0   ;;  %s5641_s24 = scalar_select %p705_p10, %s5603_s4, 1  ;;  %vm728_vm1 = vcmask 64512   ;;  %vm844_vm2 = vcmask 261120  }
  0x22   : > { %v805_v1 = vld [vmem:[%s6806_s5 + $0x18] sm:$0xff]  ;;  %4837 = vmatprep.subr.mxu0 %v5464_v2  ;;  %4839 = vmatprep.mubr.msk.f32.mxu0 %vm5465_vm0, %v5464_v2  ;;  %v804_v3 = vld [vmem:[%s6806_s5 + $0x10] sm:$0xff]  ;;  %v803_v4 = vld [vmem:[%s6806_s5 + $0x8] sm:$0xff]  ;;  %v840_v19 = vlaneseq  ;;  %s6811_s1 = sld [smem:[#allocation16_spill]] }
  0x23   : > { %4838 = vmatpush3.msra.mxu0 %v720_v0  ;;  %4842 = vmatprep.subr.mxu1 %v5464_v2  ;;  %s6783_s27 = sshll.u32 %s5641_s24, 3  ;;  %v809_v5 = vld [vmem:[%s6806_s5 + $0x38] sm:$0xff]  ;;  %v808_v7 = vld [vmem:[%s6806_s5 + $0x30] sm:$0xff]  ;;  %v807_v8 = vld [vmem:[%s6806_s5 + $0x28] sm:$0xff]  ;;  %s6813_s22 = sshll.u32 %s5641_s24, 3 }
  0x24   : > { %4843 = vmatpush3.msra.mxu1 %v805_v1  ;;  %4853 = vmatprep.subr.mxu0 %v5464_v2  ;;  %s708_s26 = scalar_lea.vmem %s6807_s25, %s6783_s27  ;;  %v802_v9 = vld [vmem:[%s6806_s5] sm:$0xff]  ;;  %v813_v14 = vld [vmem:[%s6806_s5 + $0x58] sm:$0xff]  ;;  %v812_v16 = vld [vmem:[%s6806_s5 + $0x50] sm:$0xff]  ;;  %v5719_v20 = vshrl.u32 %v840_v19, 7  ;;  %s712_s30 = scalar_lea.vmem %s6759_s8, %s6813_s22 }
  0x25   : > { %4844 = vmatprep.subr.mxu1 %v5464_v2  ;;  %4850 = vmatprep.mubr.msk.f32.mxu1 %vm5465_vm0, %v5464_v2  ;;  %v719_v6 = vld [vmem:[%s708_s26] sm:$0xff]  ;;  %v811_v17 = vld [vmem:[%s6806_s5 + $0x48] sm:$0xff]  ;;  %s6812_s26 = sld [smem:[#allocation17_spill]]  ;;  %s6192_s25 = scalar_lea.vmem %s6766_s15, %s5641_s24 }
  0x26   : > { %4845 = vmatpush3.msra.mxu1 %v804_v3  ;;  %4840 = vmatmul.mubr.msk.f32.vlgmr.msra.gmra.mxu0 %vm728_vm1, %v719_v6  ;;  %v806_v10 = vld [vmem:[%s6806_s5 + $0x20] sm:$0xff]  ;;  %v5722_v21 = vsub.s32 1, %v5719_v20  ;;  %v5730_v23 = vsub.s32 0, %v5719_v20  ;;  %v5737_v29 = vsub.s32 2, %v5719_v20  ;;  %v817_v46 = vld [vmem:[%s6810_s2 + $0x18] sm:$0xff]  ;;  %v816_v47 = vld [vmem:[%s6810_s2 + $0x10] sm:$0xff] }
  0x27   : > { %4846 = vmatprep.subr.mxu1 %v5464_v2  ;;  %4854 = vmatpush3.msra.mxu0 %v809_v5  ;;  %v4495_v11 = vld [vmem:[%s6808_s3] ss:$0 sm:$0xff]  ;;  %v815_v48 = vld [vmem:[%s6810_s2 + $0x8] sm:$0xff]  ;;  %v5772_v55 = vsub.s32 3, %v5719_v20  ;;  %s697_s22 = sand.u32 1, %s5454_s28  }
  0x28   : > { %4847 = vmatpush3.msra.mxu1 %v803_v4  ;;  %4855 = vmatprep.subr.mxu0 %v5464_v2  ;;  %v810_v18 = vld [vmem:[%s6806_s5 + $0x40] sm:$0xff]  ;;  %v821_v4 = vld [vmem:[%s6811_s1 + $0x18] sm:$0xff]  ;;  %v820_v5 = vld [vmem:[%s6811_s1 + $0x10] sm:$0xff]  ;;  %s4492_s23 = sshll.u32 %s697_s22, 3  ;;  %s4370_s29 = scalar_lea.sflag [#allocation3], %s697_s22 }
  0x29   : > { %4848 = vmatprep.subr.mxu1 %v5464_v2  ;;  %4861 = vmatprep.mubr.msk.f32.mxu0 %vm5465_vm0, %v5464_v2  ;;  %v5727_v22 = vld [vmem:[%s6809_s7] sm:$0xff]  ;;  %v819_v6 = vld [vmem:[%s6811_s1 + $0x8] sm:$0xff] }
  0x2a   : > { %4856 = vmatpush3.msra.mxu0 %v808_v7  ;;  %4849 = vmatpush3.msra.mxu1 %v802_v9  ;;  %v921_v24 = vrot.slane %v5727_v22, %v5722_v21  ;;  %v843_v25 = vrot.slane %v5727_v22, %v5730_v23  ;;  %v995_v33 = vrot.slane %v5727_v22, %v5737_v29  ;;  %v814_v52 = vld [vmem:[%s6810_s2] sm:$0xff] }
  0x2b   : > { %4857 = vmatprep.subr.mxu0 %v5464_v2  ;;  %4864 = vmatprep.subr.mxu1 %v5464_v2  ;;  %v1230_v56 = vrot.slane %v5727_v22, %v5772_v55  ;;  %v818_v7 = vld [vmem:[%s6811_s1] sm:$0xff] }
  0x2c   : > { %4858 = vmatpush3.msra.mxu0 %v807_v8 }
  0x2d   : > { %4859 = vmatprep.subr.mxu0 %v5464_v2 }
  0x2e   : > { %4860 = vmatpush3.msra.mxu0 %v806_v10 }
  0x2f   : > { %4875 = vmatprep.subr.mxu0 %v5464_v2 }
  0xe6   : > { %v798_v12 = vpop.f32.mrf.mxu0 }
  0xe7   : > { %v5688_v13 = vadd.f32 %v4495_v11, %v798_v12  ;;  %v5796_v11 = vsub.s32 4, %v5719_v20  ;;  %v5799_v12 = vsub.s32 5, %v5719_v20 }
  0xe8   : > { %v4841_v15 = vpop.f32.mrf.mxu0 }
  0xe9   : > { %4851 = vmatmul.mubr.msk.f32.vlgmr.msra.gmra.mxu1 %vm844_vm2, %v5688_v13  ;;  %4862 = vmatmul.mubr.msk.f32.vlgmr.msra.gmra.mxu0 %vm844_vm2, %v5688_v13 }
  0xea   : > { %4865 = vmatpush3.msra.mxu1 %v813_v14  ;;  %4872 = vmatprep.mubr.msk.f32.mxu1 %vm5465_vm0, %v5464_v2 }
  0xeb   : > { %4866 = vmatprep.subr.mxu1 %v5464_v2  ;;  %4877 = vmatprep.mubr.msk.f32.mxu0 %vm5465_vm0, %v5464_v2 }
  0xec   : > { %4867 = vmatpush3.msra.mxu1 %v812_v16  ;;  %v1327_v16 = vrot.slane %v5727_v22, %v5799_v12 }
  0xed   : > { %4868 = vmatprep.subr.mxu1 %v5464_v2 }
  0xee   : > { %4869 = vmatpush3.msra.mxu1 %v811_v17 }
  0xef   : > { %4870 = vmatprep.subr.mxu1 %v5464_v2 }
  0xf0   : > { %4871 = vmatpush3.msra.mxu1 %v810_v18 }
  0xf1   : > { %4873 = vmatmul.mubr.msk.f32.vlgmr.msra.gmra.mxu1 %vm844_vm2, %v5688_v13  ;;  %4885 = vmatprep.subr.mxu1 %v5464_v2 }
  0xf2   : > { %4893 = vmatprep.mubr.msk.f32.mxu1 %vm5465_vm0, %v5464_v2  ;;  %4886 = vmatpush3.msra.mxu1 %v817_v46 }
  0xf3   : > { %4887 = vmatprep.subr.mxu1 %v5464_v2 }
  0xf4   : > { %4888 = vmatpush3.msra.mxu1 %v816_v47 }
  0xf5   : > { %4889 = vmatprep.subr.mxu1 %v5464_v2 }
  0xf6   : > { %4890 = vmatpush3.msra.mxu1 %v815_v48 }
  0xf7   : > { %4891 = vmatprep.subr.mxu1 %v5464_v2 }
  0xf8   : > { %4892 = vmatpush3.msra.mxu1 %v814_v52 }
  0xf9   : > { %4907 = vmatprep.subr.mxu1 %v5464_v2 }
 0x1a9   : > { %v914_v26 = vpop.f32.mrf.mxu1  ;;  %v988_v27 = vpop.f32.mrf.mxu0 }
 0x1aa   : > { %v989_v28 = vadd.f32 %v988_v27, %v921_v24  ;;  %v915_v32 = vadd.f32 %v914_v26, %v843_v25  ;;  %v837_v24 = vld [vmem:[%s6812_s26 + $0x78] sm:$0xff]  ;;  %v836_v25 = vld [vmem:[%s6812_s26 + $0x70] sm:$0xff]  ;;  %v835_v26 = vld [vmem:[%s6812_s26 + $0x68] sm:$0xff] }
 0x1ab   : > { %v4852_v30 = vpop.f32.mrf.mxu1  ;;  %v4863_v31 = vpop.f32.mrf.mxu0  ;;  %v834_v27 = vld [vmem:[%s6812_s26 + $0x60] sm:$0xff] }
 0x1ac   : > { %4876 = vmatpush3.xpose.msk.msra.mxu0 %vm844_vm2, %v989_v28  ;;  %v833_v28 = vld [vmem:[%s6812_s26 + $0x58] sm:$0xff]  ;;  %v832_v30 = vld [vmem:[%s6812_s26 + $0x50] sm:$0xff]  ;;  %v831_v31 = vld [vmem:[%s6812_s26 + $0x48] sm:$0xff] }
 0x1ad   : > { %4880 = vmatprep.subr.mxu0 %v5464_v2 }
 0x1af   : > { %4878 = vmatmul.mubr.msk.f32.vlgmr.msra.gmra.mxu0 %vm844_vm2, %v915_v32  ;;  %v830_v32 = vld [vmem:[%s6812_s26 + $0x40] sm:$0xff] }
 0x1b0   : > { %4882 = vmatprep.mubr.msk.f32.mxu0 %vm5465_vm0, %v5464_v2 }
 0x1b1   : > { %v1062_v34 = vpop.f32.mrf.mxu1 }
 0x1b2   : > { %v1063_v35 = vadd.f32 %v1062_v34, %v995_v33  ;;  %v829_v33 = vld [vmem:[%s6812_s26 + $0x38] sm:$0xff]  ;;  %v828_v34 = vld [vmem:[%s6812_s26 + $0x30] sm:$0xff] }
 0x1b3   : > { %v4874_v36 = vpop.f32.mrf.mxu1 }
 0x1b4   : > { %4881 = vmatpush3.msra.mxu0 %v1063_v35  ;;  %v827_v35 = vld [vmem:[%s6812_s26 + $0x28] sm:$0xff]  ;;  %v826_v36 = vld [vmem:[%s6812_s26 + $0x20] sm:$0xff] }
 0x1b5   : > { %4896 = vmatprep.subr.mxu0 %v5464_v2 }
 0x26f   : > { %v1138_v37 = vpop.f32.mrf.mxu0 }
 0x270   : > { %v1142_v38 = vmul.f32 0.17677669, %v1138_v37  ;;  %v825_v37 = vld [vmem:[%s6812_s26 + $0x18] sm:$0xff] }
 0x271   : > { %v4879_v39 = vpop.f32.mrf.mxu0 }
 0x272   : > { %v1143_v40 = vsel %vm728_vm1, %v1142_v38, -inf  ;;  %v823_v39 = vld [vmem:[%s6812_s26 + $0x8] sm:$0xff] }
 0x273   : > { %1144 = vmax.xlane.f32.xlu0 %v1143_v40  ;;  %v822_v40 = vld [vmem:[%s6812_s26] sm:$0xff] }
 0x2fc   : > { %v1145_v41 = vpop.xlane.xlu0 %1144 }
 0x2fd   : > { %v1146_v42 = vsub.f32 %v1142_v38, %v1145_v41  ;;  %v824_v38 = vld [vmem:[%s6812_s26 + $0x10] sm:$0xff]  ;;  %v5876_v41 = vsub.s32 6, %v5719_v20 }
 0x2ff   : > { %v1147_v43 = vmul.f32 1.442695, %v1146_v42  ;;  %v1332_v42 = vrot.slane %v5727_v22, %v5876_v41 }
 0x301   : > { %5348 = vpow2.f32 %v1147_v43 }
 0x30e   : > { %v5349_v44 = vpop.eup %5348 }
 0x30f   : > { %v1149_v45 = vsel %vm728_vm1, %v5349_v44, 0.0 }
 0x310   : > { %1150 = vadd.xlane.f32.xlu0 %v1149_v45 }
 0x399   : > { %v1151_v49 = vpop.xlane.xlu0 %1150 }
 0x39a   : > { %5350 = vrcp.f32 %v1151_v49 }
 0x3a7   : > { %v5351_v50 = vpop.eup %5350 }
 0x3a8   : > { %v1153_v51 = vmul.f32 %v5351_v50, %v5349_v44 }
 0x3aa   : > { %4883 = vmatmul.mubr.msk.f32.vlgmr.msra.gmra.mxu0 %vm728_vm1, %v1153_v51 }
 0x3ab   : > { %4904 = vmatprep.mubr.msk.f32.mxu0 %vm5465_vm0, %v5464_v2  ;;  %4897 = vmatpush3.msra.mxu0 %v821_v4 }
 0x3ac   : > { %4898 = vmatprep.subr.mxu0 %v5464_v2 }
 0x3ad   : > { %4899 = vmatpush3.msra.mxu0 %v820_v5  ;;  %v4506_v5 = vld [vmem:[%s6806_s5 + $0x68] sm:$0xff] }
 0x3ae   : > { %4900 = vmatprep.subr.mxu0 %v5464_v2 }
 0x3af   : > { %4901 = vmatpush3.msra.mxu0 %v819_v6  ;;  %v4505_v6 = vld [vmem:[%s6806_s5 + $0x60] sm:$0xff] }
 0x3b0   : > { %4902 = vmatprep.subr.mxu0 %v5464_v2 }
 0x3b1   : > { %4903 = vmatpush3.msra.mxu0 %v818_v7 }
 0x3b2   : > { %4942 = vmatprep.subr.mxu0 %v5464_v2 }
 0x46a   : > { %v1223_v53 = vpop.f32.mrf.mxu0 }
 0x46b   : > { %4894 = vmatmul.mubr.msk.f32.vlgmr.msra.gmra.mxu1 %vm844_vm2, %v1223_v53 }
 0x46c   : > { %v4884_v54 = vpop.f32.mrf.mxu0  ;;  %4939 = vmatprep.mubr.msk.f32.mxu1 %vm5465_vm0, %v5464_v2  ;;  %4908 = vmatpush3.msra.mxu1 %v837_v24  ;;  %v4512_v24 = vld [vmem:[%s6806_s5 + $0x98] sm:$0xff] }
 0x46d   : > { %4909 = vmatprep.subr.mxu1 %v5464_v2 }
 0x46e   : > { %4910 = vmatpush3.msra.mxu1 %v836_v25  ;;  %v4511_v25 = vld [vmem:[%s6806_s5 + $0x90] sm:$0xff] }
 0x46f   : > { %4911 = vmatprep.subr.mxu1 %v5464_v2 }
 0x470   : > { %4912 = vmatpush3.msra.mxu1 %v835_v26  ;;  %v4510_v26 = vld [vmem:[%s6806_s5 + $0x88] sm:$0xff] }
 0x471   : > { %4913 = vmatprep.subr.mxu1 %v5464_v2 }
 0x472   : > { %4914 = vmatpush3.msra.mxu1 %v834_v27  ;;  %v4509_v27 = vld [vmem:[%s6806_s5 + $0x80] sm:$0xff] }
 0x473   : > { %4915 = vmatprep.subr.mxu1 %v5464_v2 }
 0x474   : > { %4916 = vmatpush3.msra.mxu1 %v833_v28  ;;  %v4516_v28 = vld [vmem:[%s6806_s5 + $0xb8] sm:$0xff] }
 0x475   : > { %4917 = vmatprep.subr.mxu1 %v5464_v2 }
 0x476   : > { %4918 = vmatpush3.msra.mxu1 %v832_v30  ;;  %v4515_v30 = vld [vmem:[%s6806_s5 + $0xb0] sm:$0xff] }
 0x477   : > { %4919 = vmatprep.subr.mxu1 %v5464_v2 }
 0x478   : > { %4920 = vmatpush3.msra.mxu1 %v831_v31  ;;  %v4514_v31 = vld [vmem:[%s6806_s5 + $0xa8] sm:$0xff] }
 0x479   : > { %4921 = vmatprep.subr.mxu1 %v5464_v2 }
 0x47a   : > { %4922 = vmatpush3.msra.mxu1 %v830_v32  ;;  %v4513_v32 = vld [vmem:[%s6806_s5 + $0xa0] sm:$0xff] }
 0x47b   : > { %4923 = vmatprep.subr.mxu1 %v5464_v2 }
 0x47c   : > { %4924 = vmatpush3.msra.mxu1 %v829_v33 }
 0x47d   : > { %4925 = vmatprep.subr.mxu1 %v5464_v2 }
 0x47e   : > { %4926 = vmatpush3.msra.mxu1 %v828_v34 }
 0x47f   : > { %4927 = vmatprep.subr.mxu1 %v5464_v2 }
 0x480   : > { %4928 = vmatpush3.msra.mxu1 %v827_v35  ;;  %v5960_v35 = vld [vmem:[%s6809_s7 + $0x10] sm:$0xff] }
 0x481   : > { %4929 = vmatprep.subr.mxu1 %v5464_v2 }
 0x482   : > { %4930 = vmatpush3.msra.mxu1 %v826_v36  ;;  %v1636_v36 = vrot.slane %v5960_v35, %v5722_v21 }
 0x483   : > { %4931 = vmatprep.subr.mxu1 %v5464_v2 }
 0x484   : > { %4932 = vmatpush3.msra.mxu1 %v825_v37  ;;  %v1559_v37 = vrot.slane %v5960_v35, %v5730_v23 }
 0x485   : > { %4933 = vmatprep.subr.mxu1 %v5464_v2 }
 0x486   : > { %4934 = vmatpush3.msra.mxu1 %v824_v38 }
 0x487   : > { %4935 = vmatprep.subr.mxu1 %v5464_v2 }
 0x488   : > { %4936 = vmatpush3.msra.mxu1 %v823_v39 }
 0x489   : > { %4937 = vmatprep.subr.mxu1 %v5464_v2 }
 0x48a   : > { %4938 = vmatpush3.msra.mxu1 %v822_v40 }
 0x48b   : > { %4985 = vmatprep.subr.mxu1 %v5464_v2 }
 0x52b   : > { %v1300_v57 = vpop.f32.mrf.mxu1 }
 0x52c   : > { %v1301_v58 = vadd.f32 %v1300_v57, %v1230_v56  ;;  %v5883_v56 = vsub.s32 7, %v5719_v20  ;;  %v4508_v20 = vld [vmem:[%s6806_s5 + $0x78] sm:$0xff] }
 0x52d   : > { %v4895_v59 = vpop.f32.mrf.mxu1 }
 0x52e   : > { %v1304_v60 = vadd.f32 %v1301_v58, %v5688_v13  ;;  %v1322_v13 = vrot.slane %v5727_v22, %v5796_v11  ;;  %v1418_v57 = vrot.slane %v5727_v22, %v5883_v56  ;;  %v4507_v22 = vld [vmem:[%s6806_s5 + $0x70] sm:$0xff] }
 0x530   : > { %v1305_v61 = vsel %vm844_vm2, %v1304_v60, 0.0 }
 0x531   : > { %1306 = vadd.xlane.f32.xlu1 %v1305_v61 }
 0x5ba   : > { %v1307_v62 = vpop.xlane.xlu1 %1306 }
 0x5bb   : > { %v1309_v63 = vmul.f32 0.03125, %v1307_v62 }
 0x5bd   : > { %v1310_v0 = vsub.f32 %v1304_v60, %v1309_v63 }
 0x5bf   : > { %v1311_v1 = vmul.f32 %v1310_v0, %v1310_v0 }
 0x5c1   : > { %v1312_v3 = vsel %vm844_vm2, %v1311_v1, 0.0 }
 0x5c2   : > { %1313 = vadd.xlane.f32.xlu1 %v1312_v3 }
 0x64b   : > { %v1314_v8 = vpop.xlane.xlu1 %1313 }
 0x64c   : > { %v1315_v9 = vmul.f32 0.03125, %v1314_v8 }
 0x64e   : > { %v1316_v10 = vadd.f32 1e-05, %v1315_v9 }
 0x650   : > { %5352 = vrsqrt.f32 %v1316_v10  ;;  %v839_v10 = vld [vmem:[%s6809_s7 + $0x8] sm:$0x3] }
 0x65d   : > { %v5353_v14 = vpop.eup %5352 }
 0x65e   : > { %v1318_v15 = vmul.f32 %v5353_v14, %v1310_v0 }
 0x660   : > { %v1323_v17 = vmul.f32 %v1322_v13, %v1318_v15  ;;  %v1506_v13 = vrot.slane %v839_v10, %v5730_v23 }
 0x662   : > { %v5805_v18 = vadd.f32 %v1327_v16, %v1323_v17  ;;  %v1511_v16 = vrot.slane %v839_v10, %v5722_v21 }
 0x664   : > { %4905 = vmatmul.mubr.msk.f32.vlgmr.msra.gmra.mxu0 %vm844_vm2, %v5805_v18 }
 0x665   : > { %4950 = vmatprep.mubr.msk.f32.mxu0 %vm5465_vm0, %v5464_v2  ;;  %4943 = vmatpush3.msra.mxu0 %v4508_v20 }
 0x666   : > { %4944 = vmatprep.subr.mxu0 %v5464_v2 }
 0x667   : > { %4945 = vmatpush3.msra.mxu0 %v4507_v22 }
 0x668   : > { %4946 = vmatprep.subr.mxu0 %v5464_v2 }
 0x669   : > { %4947 = vmatpush3.msra.mxu0 %v4506_v5 }
 0x66a   : > { %4948 = vmatprep.subr.mxu0 %v5464_v2 }
 0x66b   : > { %4949 = vmatpush3.msra.mxu0 %v4505_v6 }
 0x66c   : > { %4953 = vmatprep.subr.mxu0 %v5464_v2 }
 0x724   : > { %v1402_v43 = vpop.f32.mrf.mxu0 }
 0x725   : > { %v1403_v44 = vadd.f32 %v1402_v43, %v1332_v42  ;;  %v1710_v43 = vrot.slane %v5960_v35, %v5737_v29 }
 0x726   : > { %v4906_v45 = vpop.f32.mrf.mxu0 }
 0x727   : > { %v1406_v46 = vmul.f32 %v1403_v44, %v1403_v44 }
 0x729   : > { %v1407_v47 = vmul.f32 %v1406_v46, %v1403_v44 }
 0x72b   : > { %v1408_v48 = vmul.f32 0.044715, %v1407_v47 }
 0x72d   : > { %v1409_v49 = vadd.f32 %v1408_v48, %v1403_v44 }
 0x72f   : > { %v1410_v50 = vmul.f32 0.7978846, %v1409_v49 }
 0x731   : > { %5354 = vtanh.f32 %v1410_v50 }
 0x73e   : > { %v5355_v51 = vpop.eup %5354 }
 0x73f   : > { %v1412_v52 = vadd.f32 1.0, %v5355_v51 }
 0x741   : > { %v1413_v53 = vmul.f32 0.5, %v1412_v52 }
 0x743   : > { %v1414_v54 = vmul.f32 %v1413_v53, %v1403_v44 }
 0x745   : > { %4940 = vmatmul.mubr.f32.vlgmr.msra.gmra.mxu1 %v1414_v54 }
 0x746   : > { %4993 = vmatprep.mubr.msk.f32.mxu1 %vm5465_vm0, %v5464_v2 }
 0x805   : > { %v1485_v58 = vpop.f32.mrf.mxu1 }
 0x806   : > { %v1486_v59 = vadd.f32 %v1485_v58, %v1418_v57  ;;  %v4520_v58 = vld [vmem:[%s6810_s2 + $0x38] sm:$0xff] }
 0x807   : > { %v4941_v60 = vpop.f32.mrf.mxu1  ;;  %4986 = vmatpush3.msra.mxu1 %v4520_v58 }
 0x808   : > { %v1489_v61 = vadd.f32 %v1486_v59, %v5805_v18  ;;  %v4519_v59 = vld [vmem:[%s6810_s2 + $0x30] sm:$0xff]  ;;  %4987 = vmatprep.subr.mxu1 %v5464_v2  ;;  %v4518_v60 = vld [vmem:[%s6810_s2 + $0x28] sm:$0xff] }
 0x809   : > { %4988 = vmatpush3.msra.mxu1 %v4519_v59  ;;  %v2260_v59 = vld [vmem:[%s6761_s10 + $0x38] sm:$0xff] }
 0x80a   : > { %v1490_v62 = vsel %vm844_vm2, %v1489_v61, 0.0  ;;  %4989 = vmatprep.subr.mxu1 %v5464_v2 }
 0x80b   : > { %1491 = vadd.xlane.f32.xlu0 %v1490_v62  ;;  %4990 = vmatpush3.msra.mxu1 %v4518_v60  ;;  %v2259_v60 = vld [vmem:[%s6761_s10 + $0x30] sm:$0xff] }
 0x80c   : > { %4991 = vmatprep.subr.mxu1 %v5464_v2 }
 0x894   : > { %v1492_v63 = vpop.xlane.xlu0 %1491 }
 0x895   : > { %v1493_v0 = vmul.f32 0.03125, %v1492_v63 }
 0x897   : > { %v1494_v1 = vsub.f32 %v1489_v61, %v1493_v0  ;;  %v4517_v0 = vld [vmem:[%s6810_s2 + $0x20] sm:$0xff] }
 0x898   : > { %4992 = vmatpush3.msra.mxu1 %v4517_v0  ;;  %v2263_v0 = vld [vmem:[%s6761_s10 + $0x50] sm:$0xff] }
 0x899   : > { %v1495_v3 = vmul.f32 %v1494_v1, %v1494_v1  ;;  %5007 = vmatprep.subr.mxu1 %v5464_v2 }
 0x89b   : > { %v1496_v4 = vsel %vm844_vm2, %v1495_v3, 0.0 }
 0x89c   : > { %1497 = vadd.xlane.f32.xlu1 %v1496_v4 }
 0x925   : > { %v1498_v7 = vpop.xlane.xlu1 %1497 }
 0x926   : > { %v1499_v8 = vmul.f32 0.03125, %v1498_v7 }
 0x928   : > { %v1500_v9 = vadd.f32 1e-05, %v1499_v8 }
 0x92a   : > { %5356 = vrsqrt.f32 %v1500_v9  ;;  %v1945_v9 = vrot.slane %v5960_v35, %v5772_v55 }
 0x937   : > { %v5357_v14 = vpop.eup %5356 }
 0x938   : > { %v1502_v15 = vmul.f32 %v5357_v14, %v1494_v1  ;;  %v2229_v1 = vld [vmem:[%s712_s30] sm:$0xff]  ;;  %s699_s30 = scalar_lea.vmem [#allocation2], %s4492_s23  ;;  %s5466_s23 = smov [#allocation2]  }
 0x939   : > { %v2230_v3 = vsel %vm844_vm2, %v2229_v1, 0.0  ;;  %s4386_s27 = sshll.u32 %s699_s30, 4  ;;  %s5406_s5 = sshll.u32 %s5466_s23, 4  ;;  %s4387_s27 = int_to_ptr.vmem [resolvable:$true] %s4386_s27  ;;  %s5407_s5 = int_to_ptr.vmem [resolvable:$false] %s5406_s5 }
 0x93a   : > { %v1507_v17 = vmul.f32 %v1506_v13, %v1502_v15  ;;  %s5402_s2 = scalar_lea.vmem %s4387_s27, 128  ;;  %p5409_p0 = scmp.lt.s32.totalorder %s4387_s27, %s5407_s5 }
 0x93b   : > { %p5403_p11 = scmp.ne.s32.totalorder %s4387_s27, %s5402_s2 }
 0x93c   : > { %v5911_v18 = vadd.f32 %v1511_v16, %v1507_v17 }
 0x93d   : > { %p5404_p12 = pnand %p5403_p11, %p5620_p5 }
 0x93e   : > { %4951 = vmatmul.mubr.msk.f32.vlgmr.msra.gmra.mxu0 %vm844_vm2, %v5911_v18 }
 0x93f   : > { %4954 = vmatpush3.msra.mxu0 %v4512_v24  ;;  %4961 = vmatprep.mubr.msk.f32.mxu0 %vm5465_vm0, %v5464_v2  ;;  %p5405_p13 = pneg %p5404_p12 }
 0x940   : > { %4955 = vmatprep.subr.mxu0 %v5464_v2 }
 0x941   : > { %4956 = vmatpush3.msra.mxu0 %v4511_v25 }
 0x942   : > { %4957 = vmatprep.subr.mxu0 %v5464_v2 }
 0x943   : > { %4958 = vmatpush3.msra.mxu0 %v4510_v26 }
 0x944   : > { %4959 = vmatprep.subr.mxu0 %v5464_v2 }
 0x945   : > { %4960 = vmatpush3.msra.mxu0 %v4509_v27 }
 0x946   : > { %4962 = vmatmul.mubr.msk.f32.vlgmr.msra.gmra.mxu0 %vm844_vm2, %v5911_v18  ;;  %4964 = vmatprep.subr.mxu0 %v5464_v2 }
 0x947   : > { %4965 = vmatpush3.msra.mxu0 %v4516_v28  ;;  %4972 = vmatprep.mubr.msk.f32.mxu0 %vm5465_vm0, %v5464_v2  ;;  %v4524_v28 = vld [vmem:[%s6811_s1 + $0x38] sm:$0xff] }
 0x948   : > { %4966 = vmatprep.subr.mxu0 %v5464_v2 }
 0x949   : > { %4967 = vmatpush3.msra.mxu0 %v4515_v30  ;;  %v4522_v30 = vld [vmem:[%s6811_s1 + $0x28] sm:$0xff] }
 0x94a   : > { %4968 = vmatprep.subr.mxu0 %v5464_v2 }
 0x94b   : > { %4969 = vmatpush3.msra.mxu0 %v4514_v31  ;;  %v4521_v31 = vld [vmem:[%s6811_s1 + $0x20] sm:$0xff] }
 0x94c   : > { %4970 = vmatprep.subr.mxu0 %v5464_v2 }
 0x94d   : > { %4971 = vmatpush3.msra.mxu0 %v4513_v32 }
 0x94e   : > { %4973 = vmatmul.mubr.msk.f32.vlgmr.msra.gmra.mxu0 %vm844_vm2, %v5911_v18  ;;  %4975 = vmatprep.subr.mxu0 %v5464_v2 }
 0x94f   : > { %4977 = vmatprep.mubr.msk.f32.mxu0 %vm5465_vm0, %v5464_v2 }
 0x9fe   : > { %v1629_v33 = vpop.f32.mrf.mxu0 }
 0x9ff   : > { %v1630_v42 = vadd.f32 %v1629_v33, %v1559_v37 }
 0xa00   : > { %v4952_v34 = vpop.f32.mrf.mxu0 }
 0xa06   : > { %v1703_v38 = vpop.f32.mrf.mxu0 }
 0xa07   : > { %v1704_v39 = vadd.f32 %v1703_v38, %v1636_v36 }
 0xa08   : > { %v4963_v40 = vpop.f32.mrf.mxu0 }
 0xa09   : > { %4976 = vmatpush3.xpose.msk.msra.mxu0 %vm844_vm2, %v1704_v39  ;;  %v2036_v39 = vrot.slane %v5960_v35, %v5796_v11 }
 0xa0a   : > { %4980 = vmatprep.subr.mxu0 %v5464_v2 }
 0xa0c   : > { %4978 = vmatmul.mubr.msk.f32.vlgmr.msra.gmra.mxu0 %vm844_vm2, %v1630_v42 }
 0xa0d   : > { %4982 = vmatprep.mubr.msk.f32.mxu0 %vm5465_vm0, %v5464_v2 }
 0xa0e   : > { %v1777_v44 = vpop.f32.mrf.mxu0 }
 0xa0f   : > { %v1778_v45 = vadd.f32 %v1777_v44, %v1710_v43  ;;  %v2041_v43 = vrot.slane %v5960_v35, %v5799_v12 }
 0xa10   : > { %v4974_v46 = vpop.f32.mrf.mxu0 }
 0xa11   : > { %4981 = vmatpush3.msra.mxu0 %v1778_v45  ;;  %v2228_v45 = vld [vmem:[%s6760_s9] sm:$0x3] }
 0xa12   : > { %4996 = vmatprep.subr.mxu0 %v5464_v2 }
 0xacc   : > { %v1853_v47 = vpop.f32.mrf.mxu0 }
 0xacd   : > { %v1857_v48 = vmul.f32 0.17677669, %v1853_v47 }
 0xace   : > { %v4979_v49 = vpop.f32.mrf.mxu0 }
 0xacf   : > { %v1858_v50 = vsel %vm728_vm1, %v1857_v48, -inf  ;;  %v2256_v49 = vld [vmem:[%s6761_s10 + $0x18] sm:$0xff] }
 0xad0   : > { %1859 = vmax.xlane.f32.xlu0 %v1858_v50  ;;  %v2246_v50 = vrot.slane %v2228_v45, %v5730_v23 }
 0xb59   : > { %v1860_v51 = vpop.xlane.xlu0 %1859 }
 0xb5a   : > { %v1861_v52 = vsub.f32 %v1857_v48, %v1860_v51  ;;  %v2255_v51 = vld [vmem:[%s6761_s10 + $0x10] sm:$0xff] }
 0xb5c   : > { %v1862_v53 = vmul.f32 1.442695, %v1861_v52  ;;  %v2254_v52 = vld [vmem:[%s6761_s10 + $0x8] sm:$0xff] }
 0xb5e   : > { %5358 = vpow2.f32 %v1862_v53 }
 0xb6b   : > { %v5359_v54 = vpop.eup %5358 }
 0xb6c   : > { %v1864_v57 = vsel %vm728_vm1, %v5359_v54, 0.0 }
 0xb6d   : > { %1865 = vadd.xlane.f32.xlu1 %v1864_v57  ;;  %v2253_v57 = vld [vmem:[%s6761_s10] sm:$0xff] }
 0xb71   : > { %2231 = vadd.xlane.f32.xlu1 %v2230_v3  ;;  %v2261_v3 = vld [vmem:[%s6761_s10 + $0x40] sm:$0xff] }
 0xbf6   : > { %v1866_v61 = vpop.xlane.xlu1 %1865 }
 0xbf7   : > { %5360 = vrcp.f32 %v1866_v61  ;;  %v2258_v61 = vld [vmem:[%s6761_s10 + $0x28] sm:$0xff] }
 0xbfa   : > { %v2232_v22 = vpop.xlane.xlu1 %2231 }
 0xbfb   : > { %v2233_v5 = vmul.f32 0.03125, %v2232_v22  ;;  %v4538_v22 = vld [vmem:[%s6812_s26 + $0xe8] sm:$0xff] }
 0xbfd   : > { %v2234_v6 = vsub.f32 %v2229_v1, %v2233_v5  ;;  %v2262_v1 = vld [vmem:[%s6761_s10 + $0x48] sm:$0xff]  ;;  %v4537_v5 = vld [vmem:[%s6812_s26 + $0xe0] sm:$0xff] }
 0xbff   : > { %v2235_v7 = vmul.f32 %v2234_v6, %v2234_v6 }
 0xc01   : > { %v2236_v8 = vsel %vm844_vm2, %v2235_v7, 0.0  ;;  %v4535_v7 = vld [vmem:[%s6812_s26 + $0xd0] sm:$0xff] }
 0xc02   : > { %2237 = vadd.xlane.f32.xlu1 %v2236_v8  ;;  %v4534_v8 = vld [vmem:[%s6812_s26 + $0xc8] sm:$0xff] }
 0xc04   : > { %v5361_v62 = vpop.eup %5360 }
 0xc05   : > { %v1868_v63 = vmul.f32 %v5361_v62, %v5359_v54  ;;  %v2251_v54 = vrot.slane %v2228_v45, %v5722_v21  ;;  %v2257_v62 = vld [vmem:[%s6761_s10 + $0x20] sm:$0xff] }
 0xc07   : > { %4983 = vmatmul.mubr.msk.f32.vlgmr.msra.gmra.mxu0 %vm728_vm1, %v1868_v63  ;;  %v2264_v63 = vld [vmem:[%s6761_s10 + $0x58] sm:$0xff] }
 0xc08   : > { %5004 = vmatprep.mubr.msk.f32.mxu0 %vm5465_vm0, %v5464_v2  ;;  %4997 = vmatpush3.msra.mxu0 %v4524_v28 }
 0xc09   : > { %4998 = vmatprep.subr.mxu0 %v5464_v2 }
 0xc8b   : > { %v2238_v32 = vpop.xlane.xlu1 %2237 }
 0xc8c   : > { %v2239_v33 = vmul.f32 0.03125, %v2238_v32 }
 0xc8e   : > { %v2240_v37 = vadd.f32 1e-05, %v2239_v33 }
 0xcc7   : > { %v1938_v4 = vpop.f32.mrf.mxu0 }
 0xcc8   : > { %4994 = vmatmul.mubr.msk.f32.vlgmr.msra.gmra.mxu1 %vm844_vm2, %v1938_v4  ;;  %v4540_v4 = vld [vmem:[%s6812_s26 + $0xf8] sm:$0xff] }
 0xcc9   : > { %v4984_v20 = vpop.f32.mrf.mxu0  ;;  %5039 = vmatprep.mubr.msk.f32.mxu1 %vm5465_vm0, %v5464_v2  ;;  %5008 = vmatpush3.msra.mxu1 %v4540_v4 }
 0xcca   : > { %5009 = vmatprep.subr.mxu1 %v5464_v2  ;;  %v4539_v20 = vld [vmem:[%s6812_s26 + $0xf0] sm:$0xff] }
 0xccb   : > { %5010 = vmatpush3.msra.mxu1 %v4539_v20 }
 0xccc   : > { %5011 = vmatprep.subr.mxu1 %v5464_v2 }
 0xccd   : > { %5012 = vmatpush3.msra.mxu1 %v4538_v22 }
 0xcce   : > { %5013 = vmatprep.subr.mxu1 %v5464_v2 }
 0xccf   : > { %5014 = vmatpush3.msra.mxu1 %v4537_v5  ;;  %v2268_v5 = vld [vmem:[%s6762_s11 + $0x18] sm:$0xff] }
 0xcd0   : > { %5015 = vmatprep.subr.mxu1 %v5464_v2 }
 0xd88   : > { %v2015_v10 = vpop.f32.mrf.mxu1 }
 0xd89   : > { %v2016_v13 = vadd.f32 %v2015_v10, %v1945_v9  ;;  %v4533_v9 = vld [vmem:[%s6812_s26 + $0xc0] sm:$0xff]  ;;  %v4532_v10 = vld [vmem:[%s6812_s26 + $0xb8] sm:$0xff] }
 0xd8a   : > { %v4995_v14 = vpop.f32.mrf.mxu1 }
 0xd8b   : > { %v2019_v15 = vadd.f32 %v2016_v13, %v5911_v18  ;;  %v4523_v18 = vld [vmem:[%s6811_s1 + $0x30] sm:$0xff]  ;;  %v4530_v14 = vld [vmem:[%s6812_s26 + $0xa8] sm:$0xff]  ;;  %s4619_s1 = sshll.u32 %s5603_s4, 7 }
 0xd8c   : > { %4999 = vmatpush3.msra.mxu0 %v4523_v18  ;;  %v4531_v13 = vld [vmem:[%s6812_s26 + $0xb0] sm:$0xff]  ;;  %s4384_s3 = scalar_lea.hbm %s6772_s21, %s4619_s1 }
 0xd8d   : > { %v2020_v16 = vsel %vm844_vm2, %v2019_v15, 0.0  ;;  %5000 = vmatprep.subr.mxu0 %v5464_v2 }
 0xd8e   : > { %2021 = vadd.xlane.f32.xlu0 %v2020_v16  ;;  %5001 = vmatpush3.msra.mxu0 %v4522_v30  ;;  %v4528_v16 = vld [vmem:[%s6812_s26 + $0x98] sm:$0xff] }
 0xd8f   : > { %5002 = vmatprep.subr.mxu0 %v5464_v2 }
 0xd90   : > { %5003 = vmatpush3.msra.mxu0 %v4521_v31 }
 0xd91   : > { %5042 = vmatprep.subr.mxu0 %v5464_v2 }
 0xe17   : > { %v2022_v17 = vpop.xlane.xlu0 %2021 }
 0xe18   : > { %v2023_v24 = vmul.f32 0.03125, %v2022_v17  ;;  %v4527_v17 = vld [vmem:[%s6812_s26 + $0x90] sm:$0xff] }
 0xe1a   : > { %v2024_v25 = vsub.f32 %v2019_v15, %v2023_v24  ;;  %v4529_v15 = vld [vmem:[%s6812_s26 + $0xa0] sm:$0xff]  ;;  %v4526_v24 = vld [vmem:[%s6812_s26 + $0x88] sm:$0xff] }
 0xe1c   : > { %v2025_v26 = vmul.f32 %v2024_v25, %v2024_v25 }
 0xe1e   : > { %v2026_v27 = vsel %vm844_vm2, %v2025_v26, 0.0  ;;  %v2046_v26 = vrot.slane %v5960_v35, %v5876_v41 }
 0xe1f   : > { %2027 = vadd.xlane.f32.xlu0 %v2026_v27 }
 0xea8   : > { %v2028_v34 = vpop.xlane.xlu0 %2027 }
 0xea9   : > { %v2029_v36 = vmul.f32 0.03125, %v2028_v34 }
 0xeab   : > { %v2030_v38 = vadd.f32 1e-05, %v2029_v36 }
 0xead   : > { %5362 = vrsqrt.f32 %v2030_v38  ;;  %v6172_v38 = vld [vmem:[%s6765_s14] sm:$0xff] }
 0xeae   : > { %5364 = vrsqrt.f32 %v2240_v37  ;;  %v2294_v35 = vrot.slane %v6172_v38, %v5730_v23  ;;  %v2445_v45 = vrot.slane %v6172_v38, %v5737_v29 }
 0xeba   : > { %v5363_v40 = vpop.eup %5362 }
 0xebb   : > { %v2032_v42 = vmul.f32 %v5363_v40, %v2024_v25  ;;  %v5365_v44 = vpop.eup %5364  ;;  %v4525_v25 = vld [vmem:[%s6812_s26 + $0x80] sm:$0xff] }
 0xebc   : > { %v2242_v47 = vmul.f32 %v5365_v44, %v2234_v6  ;;  %v4536_v6 = vld [vmem:[%s6812_s26 + $0xd8] sm:$0xff] }
 0xebd   : > { %v2037_v46 = vmul.f32 %v2036_v39, %v2032_v42  ;;  %5016 = vmatpush3.msra.mxu1 %v4536_v6  ;;  %v2371_v39 = vrot.slane %v6172_v38, %v5722_v21  ;;  %v2267_v6 = vld [vmem:[%s6762_s11 + $0x10] sm:$0xff] }
 0xebe   : > { %v2247_v53 = vmul.f32 %v2246_v50, %v2242_v47  ;;  %5017 = vmatprep.subr.mxu1 %v5464_v2 }
 0xebf   : > { %v6033_v48 = vadd.f32 %v2041_v43, %v2037_v46  ;;  %5018 = vmatpush3.msra.mxu1 %v4535_v7  ;;  %v2266_v7 = vld [vmem:[%s6762_s11 + $0x8] sm:$0xff] }
 0xec0   : > { %v6056_v58 = vadd.f32 %v2251_v54, %v2247_v53  ;;  %5019 = vmatprep.subr.mxu1 %v5464_v2 }
 0xec1   : > { %5005 = vmatmul.mubr.msk.f32.vlgmr.msra.gmra.mxu0 %vm844_vm2, %v6033_v48  ;;  %5020 = vmatpush3.msra.mxu1 %v4534_v8 }
 0xec2   : > { %5043 = vmatpush3.msra.mxu0 %v2256_v49  ;;  %5050 = vmatprep.mubr.msk.f32.mxu0 %vm5465_vm0, %v5464_v2 }
 0xec3   : > { %5044 = vmatprep.subr.mxu0 %v5464_v2  ;;  %5021 = vmatprep.subr.mxu1 %v5464_v2 }
 0xec4   : > { %5045 = vmatpush3.msra.mxu0 %v2255_v51  ;;  %5022 = vmatpush3.msra.mxu1 %v4533_v9 }
 0xec5   : > { %5046 = vmatprep.subr.mxu0 %v5464_v2  ;;  %5023 = vmatprep.subr.mxu1 %v5464_v2 }
 0xec6   : > { %5047 = vmatpush3.msra.mxu0 %v2254_v52  ;;  %5024 = vmatpush3.msra.mxu1 %v4532_v10 }
 0xec7   : > { %5048 = vmatprep.subr.mxu0 %v5464_v2  ;;  %5025 = vmatprep.subr.mxu1 %v5464_v2 }
 0xec8   : > { %5049 = vmatpush3.msra.mxu0 %v2253_v57  ;;  %5026 = vmatpush3.msra.mxu1 %v4531_v13  ;;  %v6195_v57 = vld [vmem:[%s6192_s25] ss:$0 sm:$0xff] }
 0xec9   : > { %5051 = vmatmul.mubr.msk.f32.vlgmr.msra.gmra.mxu0 %vm844_vm2, %v6056_v58  ;;  %5053 = vmatprep.subr.mxu0 %v5464_v2  ;;  %v2265_v13 = vld [vmem:[%s6762_s11] sm:$0xff] }
 0xeca   : > { %5054 = vmatpush3.msra.mxu0 %v2260_v59  ;;  %5061 = vmatprep.mubr.msk.f32.mxu0 %vm5465_vm0, %v5464_v2 }
 0xecb   : > { %5055 = vmatprep.subr.mxu0 %v5464_v2  ;;  %5027 = vmatprep.subr.mxu1 %v5464_v2 }
 0xecc   : > { %5056 = vmatpush3.msra.mxu0 %v2259_v60  ;;  %5028 = vmatpush3.msra.mxu1 %v4530_v14 }
 0xecd   : > { %5057 = vmatprep.subr.mxu0 %v5464_v2  ;;  %5029 = vmatprep.subr.mxu1 %v5464_v2 }
 0xece   : > { %5058 = vmatpush3.msra.mxu0 %v2258_v61  ;;  %5030 = vmatpush3.msra.mxu1 %v4529_v15 }
 0xecf   : > { %5059 = vmatprep.subr.mxu0 %v5464_v2  ;;  %5031 = vmatprep.subr.mxu1 %v5464_v2 }
 0xed0   : > { %5060 = vmatpush3.msra.mxu0 %v2257_v62  ;;  %5032 = vmatpush3.msra.mxu1 %v4528_v16  ;;  %v2687_v16 = vrot.slane %v6172_v38, %v5772_v55 }
 0xed1   : > { %5062 = vmatmul.mubr.msk.f32.vlgmr.msra.gmra.mxu0 %vm844_vm2, %v6056_v58  ;;  %5064 = vmatprep.subr.mxu0 %v5464_v2 }
 0xed2   : > { %5065 = vmatpush3.msra.mxu0 %v2264_v63  ;;  %5072 = vmatprep.mubr.msk.f32.mxu0 %vm5465_vm0, %v5464_v2 }
 0xed3   : > { %5066 = vmatprep.subr.mxu0 %v5464_v2  ;;  %5033 = vmatprep.subr.mxu1 %v5464_v2 }
 0xed4   : > { %5067 = vmatpush3.msra.mxu0 %v2263_v0  ;;  %5034 = vmatpush3.msra.mxu1 %v4527_v17 }
 0xed5   : > { %5068 = vmatprep.subr.mxu0 %v5464_v2  ;;  %5035 = vmatprep.subr.mxu1 %v5464_v2 }
 0xed6   : > { %5069 = vmatpush3.msra.mxu0 %v2262_v1  ;;  %5036 = vmatpush3.msra.mxu1 %v4526_v24 }
 0xed7   : > { %5070 = vmatprep.subr.mxu0 %v5464_v2  ;;  %5037 = vmatprep.subr.mxu1 %v5464_v2 }
 0xed8   : > { %5071 = vmatpush3.msra.mxu0 %v2261_v3  ;;  %5038 = vmatpush3.msra.mxu1 %v4525_v25 }
 0xed9   : > { %5073 = vmatmul.mubr.msk.f32.vlgmr.msra.gmra.mxu0 %vm844_vm2, %v6056_v58  ;;  %5075 = vmatprep.subr.mxu0 %v5464_v2 }
 0xeda   : > { %5077 = vmatprep.mubr.msk.f32.mxu0 %vm5465_vm0, %v5464_v2  ;;  %5085 = vmatprep.subr.mxu1 %v5464_v2 }
 0xf81   : > { %v2116_v27 = vpop.f32.mrf.mxu0 }
 0xf82   : > { %v2117_v28 = vadd.f32 %v2116_v27, %v2046_v26 }
 0xf83   : > { %v5006_v18 = vpop.f32.mrf.mxu0 }
 0xf84   : > { %v2120_v30 = vmul.f32 %v2117_v28, %v2117_v28 }
 0xf86   : > { %v2121_v31 = vmul.f32 %v2120_v30, %v2117_v28 }
 0xf88   : > { %v2122_v32 = vmul.f32 0.044715, %v2121_v31 }
 0xf89   : > { %v2364_v33 = vpop.f32.mrf.mxu0 }
 0xf8a   : > { %v2123_v34 = vadd.f32 %v2122_v32, %v2117_v28  ;;  %v2365_v44 = vadd.f32 %v2364_v33, %v2294_v35  ;;  %v2272_v33 = vld [vmem:[%s6763_s12 + $0x18] sm:$0xff] }
 0xf8b   : > { %v5052_v36 = vpop.f32.mrf.mxu0 }
 0xf8c   : > { %v2124_v37 = vmul.f32 0.7978846, %v2123_v34  ;;  %v2270_v34 = vld [vmem:[%s6763_s12 + $0x8] sm:$0xff]  ;;  %v2269_v36 = vld [vmem:[%s6763_s12] sm:$0xff] }
 0xf8e   : > { %5366 = vtanh.f32 %v2124_v37 }
 0xf91   : > { %v2438_v40 = vpop.f32.mrf.mxu0 }
 0xf92   : > { %v2439_v42 = vadd.f32 %v2438_v40, %v2371_v39  ;;  %v2778_v40 = vrot.slane %v6172_v38, %v5796_v11 }
 0xf93   : > { %v5063_v43 = vpop.f32.mrf.mxu0 }
 0xf94   : > { %5076 = vmatpush3.xpose.msk.msra.mxu0 %vm844_vm2, %v2439_v42 }
 0xf95   : > { %5080 = vmatprep.subr.mxu0 %v5464_v2 }
 0xf97   : > { %5078 = vmatmul.mubr.msk.f32.vlgmr.msra.gmra.mxu0 %vm844_vm2, %v2365_v44  ;;  %v2783_v44 = vrot.slane %v6172_v38, %v5799_v12 }
 0xf98   : > { %5082 = vmatprep.mubr.msk.f32.mxu0 %vm5465_vm0, %v5464_v2 }
 0xf99   : > { %v2512_v46 = vpop.f32.mrf.mxu0 }
 0xf9a   : > { %v2513_v47 = vadd.f32 %v2512_v46, %v2445_v45 }
 0xf9b   : > { %v5367_v49 = vpop.eup %5366  ;;  %v5074_v50 = vpop.f32.mrf.mxu0 }
 0xf9c   : > { %5081 = vmatpush3.msra.mxu0 %v2513_v47  ;;  %v2126_v51 = vadd.f32 1.0, %v5367_v49  ;;  %v2288_v47 = vld [vmem:[%s6764_s13 + $0x78] sm:$0xff]  ;;  %v2287_v49 = vld [vmem:[%s6764_s13 + $0x70] sm:$0xff]  ;;  %v2286_v50 = vld [vmem:[%s6764_s13 + $0x68] sm:$0xff] }
 0xf9d   : > { %5096 = vmatprep.subr.mxu0 %v5464_v2 }
 0xf9e   : > { %v2127_v52 = vmul.f32 0.5, %v2126_v51  ;;  %v2285_v51 = vld [vmem:[%s6764_s13 + $0x60] sm:$0xff] }
 0xfa0   : > { %v2128_v53 = vmul.f32 %v2127_v52, %v2117_v28  ;;  %v2284_v52 = vld [vmem:[%s6764_s13 + $0x58] sm:$0xff] }
 0xfa2   : > { %5040 = vmatmul.mubr.f32.vlgmr.msra.gmra.mxu1 %v2128_v53  ;;  %v2283_v53 = vld [vmem:[%s6764_s13 + $0x50] sm:$0xff] }
 0xfa3   : > { %5093 = vmatprep.mubr.msk.f32.mxu1 %vm5465_vm0, %v5464_v2  ;;  %5086 = vmatpush3.msra.mxu1 %v2268_v5 }
 0xfa4   : > { %5087 = vmatprep.subr.mxu1 %v5464_v2 }
 0xfa5   : > { %5088 = vmatpush3.msra.mxu1 %v2267_v6 }
 0xfa6   : > { %5089 = vmatprep.subr.mxu1 %v5464_v2 }
 0xfa7   : > { %5090 = vmatpush3.msra.mxu1 %v2266_v7 }
 0xfa8   : > { %5091 = vmatprep.subr.mxu1 %v5464_v2 }
 0xfa9   : > { %5092 = vmatpush3.msra.mxu1 %v2265_v13 }
 0xfaa   : > { %5107 = vmatprep.subr.mxu1 %v5464_v2 }
0x1057   : > { %v2588_v54 = vpop.f32.mrf.mxu0 }
0x1058   : > { %v2592_v59 = vmul.f32 0.17677669, %v2588_v54  ;;  %v2282_v54 = vld [vmem:[%s6764_s13 + $0x48] sm:$0xff] }
0x1059   : > { %v5079_v60 = vpop.f32.mrf.mxu0 }
0x105a   : > { %v2599_v61 = vadd.f32 %v6195_v57, %v2592_v59  ;;  %v2281_v59 = vld [vmem:[%s6764_s13 + $0x40] sm:$0xff]  ;;  %v2280_v60 = vld [vmem:[%s6764_s13 + $0x38] sm:$0xff] }
0x105c   : > { %v2600_v62 = vsel %vm728_vm1, %v2599_v61, -inf }
0x105d   : > { %2601 = vmax.xlane.f32.xlu0 %v2600_v62  ;;  %v2278_v62 = vld [vmem:[%s6764_s13 + $0x28] sm:$0xff] }
0x1062   : > { %v6199_v63 = vpop.f32.mrf.mxu1 }
0x1064   : > { %v5041_v0 = vpop.f32.mrf.mxu1 }
0x1065   : > { %v2277_v0 = vld [vmem:[%s6764_s13 + $0x20] sm:$0xff] }
0x10e6   : > { %v2602_v1 = vpop.xlane.xlu0 %2601 }
0x10e7   : > { %v2603_v3 = vsub.f32 %v2599_v61, %v2602_v1  ;;  %v2279_v61 = vld [vmem:[%s6764_s13 + $0x30] sm:$0xff]  ;;  %v2276_v1 = vld [vmem:[%s6764_s13 + $0x18] sm:$0xff] }
0x10e9   : > { %v2604_v4 = vmul.f32 1.442695, %v2603_v3  ;;  %v2275_v3 = vld [vmem:[%s6764_s13 + $0x10] sm:$0xff] }
0x10eb   : > { %5368 = vpow2.f32 %v2604_v4  ;;  %v2274_v4 = vld [vmem:[%s6764_s13 + $0x8] sm:$0xff] }
0x10f8   : > { %v5369_v20 = vpop.eup %5368 }
0x10f9   : > { %v2606_v22 = vsel %vm728_vm1, %v5369_v20, 0.0 }
0x10fa   : > { %2607 = vadd.xlane.f32.xlu1 %v2606_v22  ;;  %v2788_v22 = vrot.slane %v6172_v38, %v5876_v41 }
0x1183   : > { %v2608_v8 = vpop.xlane.xlu1 %2607 }
0x1184   : > { %5370 = vrcp.f32 %v2608_v8 }
0x1191   : > { %v5371_v9 = vpop.eup %5370 }
0x1192   : > { %v2610_v10 = vmul.f32 %v5371_v9, %v5369_v20  ;;  %v2273_v20 = vld [vmem:[%s6764_s13] sm:$0xff] }
0x1194   : > { %5083 = vmatmul.mubr.msk.f32.vlgmr.msra.gmra.mxu0 %vm728_vm1, %v2610_v10 }
0x1195   : > { %5104 = vmatprep.mubr.msk.f32.mxu0 %vm5465_vm0, %v5464_v2  ;;  %5097 = vmatpush3.msra.mxu0 %v2272_v33 }
0x1196   : > { %5098 = vmatprep.subr.mxu0 %v5464_v2 }
0x1254   : > { %v2680_v14 = vpop.f32.mrf.mxu0 }
0x1255   : > { %5094 = vmatmul.mubr.msk.f32.vlgmr.msra.gmra.mxu1 %vm844_vm2, %v2680_v14 }
0x1256   : > { %v5084_v15 = vpop.f32.mrf.mxu0  ;;  %5139 = vmatprep.mubr.msk.f32.mxu1 %vm5465_vm0, %v5464_v2  ;;  %5108 = vmatpush3.msra.mxu1 %v2288_v47 }
0x1257   : > { %5109 = vmatprep.subr.mxu1 %v5464_v2 }
0x1258   : > { %5110 = vmatpush3.msra.mxu1 %v2287_v49 }
0x1259   : > { %5111 = vmatprep.subr.mxu1 %v5464_v2 }
0x125a   : > { %5112 = vmatpush3.msra.mxu1 %v2286_v50 }
0x125b   : > { %5113 = vmatprep.subr.mxu1 %v5464_v2 }
0x125c   : > { %5114 = vmatpush3.msra.mxu1 %v2285_v51  ;;  %v4567_v51 = vld [vmem:[%s6761_s10 + $0x98] sm:$0xff] }
0x125d   : > { %5115 = vmatprep.subr.mxu1 %v5464_v2 }
0x125e   : > { %5116 = vmatpush3.msra.mxu1 %v2284_v52  ;;  %v4566_v52 = vld [vmem:[%s6761_s10 + $0x90] sm:$0xff] }
0x125f   : > { %5117 = vmatprep.subr.mxu1 %v5464_v2 }
0x1260   : > { %5118 = vmatpush3.msra.mxu1 %v2283_v53  ;;  %v4565_v53 = vld [vmem:[%s6761_s10 + $0x88] sm:$0xff] }
0x1261   : > { %5119 = vmatprep.subr.mxu1 %v5464_v2 }
0x1262   : > { %5120 = vmatpush3.msra.mxu1 %v2282_v54  ;;  %v4564_v54 = vld [vmem:[%s6761_s10 + $0x80] sm:$0xff] }
0x1263   : > { %5121 = vmatprep.subr.mxu1 %v5464_v2 }
0x1264   : > { %5122 = vmatpush3.msra.mxu1 %v2281_v59  ;;  %v4571_v59 = vld [vmem:[%s6761_s10 + $0xb8] sm:$0xff] }
0x1265   : > { %5123 = vmatprep.subr.mxu1 %v5464_v2 }
0x1266   : > { %5124 = vmatpush3.msra.mxu1 %v2280_v60  ;;  %v4570_v60 = vld [vmem:[%s6761_s10 + $0xb0] sm:$0xff] }
0x1267   : > { %5125 = vmatprep.subr.mxu1 %v5464_v2 }
0x1268   : > { %5126 = vmatpush3.msra.mxu1 %v2279_v61  ;;  %v4569_v61 = vld [vmem:[%s6761_s10 + $0xa8] sm:$0xff] }
0x1269   : > { %5127 = vmatprep.subr.mxu1 %v5464_v2 }
0x126a   : > { %5128 = vmatpush3.msra.mxu1 %v2278_v62  ;;  %v4568_v62 = vld [vmem:[%s6761_s10 + $0xa0] sm:$0xff] }
0x126b   : > { %5129 = vmatprep.subr.mxu1 %v5464_v2 }
0x126c   : > { %5130 = vmatpush3.msra.mxu1 %v2277_v0 }
0x126d   : > { %5131 = vmatprep.subr.mxu1 %v5464_v2 }
0x126e   : > { %5132 = vmatpush3.msra.mxu1 %v2276_v1 }
0x126f   : > { %5133 = vmatprep.subr.mxu1 %v5464_v2 }
0x1270   : > { %5134 = vmatpush3.msra.mxu1 %v2275_v3  ;;  %v6398_v3 = vld [vmem:[%s6765_s14 + $0x10] sm:$0xff] }
0x1271   : > { %5135 = vmatprep.subr.mxu1 %v5464_v2 }
0x1272   : > { %5136 = vmatpush3.msra.mxu1 %v2274_v4  ;;  %v3092_v4 = vrot.slane %v6398_v3, %v5722_v21 }
0x1273   : > { %5137 = vmatprep.subr.mxu1 %v5464_v2 }
0x1274   : > { %5138 = vmatpush3.msra.mxu1 %v2273_v20  ;;  %v3015_v20 = vrot.slane %v6398_v3, %v5730_v23 }
0x1275   : > { %5185 = vmatprep.subr.mxu1 %v5464_v2 }
0x1315   : > { %v2757_v17 = vpop.f32.mrf.mxu1 }
0x1316   : > { %v2758_v24 = vadd.f32 %v2757_v17, %v2687_v16 }
0x1317   : > { %v5095_v25 = vpop.f32.mrf.mxu1 }
0x1318   : > { %v2761_v26 = vadd.f32 %v2758_v24, %v6056_v58  ;;  %v2271_v58 = vld [vmem:[%s6763_s12 + $0x10] sm:$0xff]  ;;  %v2874_v25 = vrot.slane %v6172_v38, %v5883_v56 }
0x1319   : > { %5099 = vmatpush3.msra.mxu0 %v2271_v58  ;;  %v4562_v38 = vld [vmem:[%s6761_s10 + $0x70] sm:$0xff] }
0x131a   : > { %v2762_v27 = vsel %vm844_vm2, %v2761_v26, 0.0  ;;  %5100 = vmatprep.subr.mxu0 %v5464_v2 }
0x131b   : > { %2763 = vadd.xlane.f32.xlu0 %v2762_v27  ;;  %5101 = vmatpush3.msra.mxu0 %v2270_v34 }
0x131c   : > { %5102 = vmatprep.subr.mxu0 %v5464_v2 }
0x131d   : > { %5103 = vmatpush3.msra.mxu0 %v2269_v36  ;;  %v4563_v36 = vld [vmem:[%s6761_s10 + $0x78] sm:$0xff] }
0x131e   : > { %5142 = vmatprep.subr.mxu0 %v5464_v2 }
0x13a4   : > { %v2764_v28 = vpop.xlane.xlu0 %2763 }
0x13a5   : > { %v2765_v18 = vmul.f32 0.03125, %v2764_v28 }
0x13a7   : > { %v2766_v30 = vsub.f32 %v2761_v26, %v2765_v18 }
0x13a9   : > { %v2767_v31 = vmul.f32 %v2766_v30, %v2766_v30 }
0x13ab   : > { %v2768_v32 = vsel %vm844_vm2, %v2767_v31, 0.0 }
0x13ac   : > { %2769 = vadd.xlane.f32.xlu1 %v2768_v32 }
0x1435   : > { %v2770_v37 = vpop.xlane.xlu1 %2769 }
0x1436   : > { %v2771_v39 = vmul.f32 0.03125, %v2770_v37  ;;  %v4561_v37 = vld [vmem:[%s6761_s10 + $0x68] sm:$0xff] }
0x1438   : > { %v2772_v35 = vadd.f32 1e-05, %v2771_v39  ;;  %v4560_v39 = vld [vmem:[%s6761_s10 + $0x60] sm:$0xff] }
0x143a   : > { %5372 = vrsqrt.f32 %v2772_v35 }
0x1447   : > { %v5373_v42 = vpop.eup %5372 }
0x1448   : > { %v2774_v43 = vmul.f32 %v5373_v42, %v2766_v30 }
0x144a   : > { %v2779_v45 = vmul.f32 %v2778_v40, %v2774_v43  ;;  %v2290_v43 = vld [vmem:[%s6765_s14 + $0x8] sm:$0x3] }
0x144b   : > { %v2967_v47 = vrot.slane %v2290_v43, %v5722_v21 }
0x144c   : > { %v6249_v46 = vadd.f32 %v2783_v44, %v2779_v45  ;;  %v2962_v44 = vrot.slane %v2290_v43, %v5730_v23 }
0x144e   : > { %5105 = vmatmul.mubr.msk.f32.vlgmr.msra.gmra.mxu0 %vm844_vm2, %v6249_v46 }
0x144f   : > { %5150 = vmatprep.mubr.msk.f32.mxu0 %vm5465_vm0, %v5464_v2  ;;  %5143 = vmatpush3.msra.mxu0 %v4563_v36 }
0x1450   : > { %5144 = vmatprep.subr.mxu0 %v5464_v2 }
0x1451   : > { %5145 = vmatpush3.msra.mxu0 %v4562_v38 }
0x1452   : > { %5146 = vmatprep.subr.mxu0 %v5464_v2 }
0x1453   : > { %5147 = vmatpush3.msra.mxu0 %v4561_v37  ;;  %v3402_v37 = vrot.slane %v6398_v3, %v5772_v55 }
0x1454   : > { %5148 = vmatprep.subr.mxu0 %v5464_v2 }
0x1455   : > { %5149 = vmatpush3.msra.mxu0 %v4560_v39 }
0x1456   : > { %5153 = vmatprep.subr.mxu0 %v5464_v2 }
0x150e   : > { %v2858_v5 = vpop.f32.mrf.mxu0 }
0x150f   : > { %v2859_v6 = vadd.f32 %v2858_v5, %v2788_v22 }
0x1510   : > { %v5106_v7 = vpop.f32.mrf.mxu0 }
0x1511   : > { %v2862_v8 = vmul.f32 %v2859_v6, %v2859_v6 }
0x1513   : > { %v2863_v9 = vmul.f32 %v2862_v8, %v2859_v6  ;;  %v3166_v8 = vrot.slane %v6398_v3, %v5737_v29 }
0x1515   : > { %v2864_v10 = vmul.f32 0.044715, %v2863_v9 }
0x1517   : > { %v2865_v13 = vadd.f32 %v2864_v10, %v2859_v6 }
0x1519   : > { %v2866_v14 = vmul.f32 0.7978846, %v2865_v13 }
0x151b   : > { %5374 = vtanh.f32 %v2866_v14 }
0x1528   : > { %v5375_v15 = vpop.eup %5374 }
0x1529   : > { %v2868_v16 = vadd.f32 1.0, %v5375_v15 }
0x152b   : > { %v2869_v17 = vmul.f32 0.5, %v2868_v16 }
0x152d   : > { %v2870_v24 = vmul.f32 %v2869_v17, %v2859_v6 }
0x152f   : > { %5140 = vmatmul.mubr.f32.vlgmr.msra.gmra.mxu1 %v2870_v24 }
0x1530   : > { %5193 = vmatprep.mubr.msk.f32.mxu1 %vm5465_vm0, %v5464_v2 }
0x15ef   : > { %v2941_v26 = vpop.f32.mrf.mxu1 }
0x15f0   : > { %v2942_v27 = vadd.f32 %v2941_v26, %v2874_v25 }
0x15f1   : > { %v5141_v28 = vpop.f32.mrf.mxu1 }
0x15f2   : > { %v2945_v18 = vadd.f32 %v2942_v27, %v6249_v46 }
0x15f4   : > { %v2946_v30 = vsel %vm844_vm2, %v2945_v18, 0.0 }
0x15f5   : > { %2947 = vadd.xlane.f32.xlu0 %v2946_v30  ;;  %v4575_v30 = vld [vmem:[%s6762_s11 + $0x38] sm:$0xff] }
0x15f6   : > { %5186 = vmatpush3.msra.mxu1 %v4575_v30 }
0x15f7   : > { %5187 = vmatprep.subr.mxu1 %v5464_v2 }
0x167e   : > { %v2948_v31 = vpop.xlane.xlu0 %2947 }
0x167f   : > { %v2949_v32 = vmul.f32 0.03125, %v2948_v31  ;;  %v4574_v31 = vld [vmem:[%s6762_s11 + $0x30] sm:$0xff] }
0x1680   : > { %5188 = vmatpush3.msra.mxu1 %v4574_v31 }
0x1681   : > { %v2950_v33 = vsub.f32 %v2945_v18, %v2949_v32  ;;  %5189 = vmatprep.subr.mxu1 %v5464_v2 }
0x1683   : > { %v2951_v58 = vmul.f32 %v2950_v33, %v2950_v33 }
0x1685   : > { %v2952_v34 = vsel %vm844_vm2, %v2951_v58, 0.0 }
0x1686   : > { %2953 = vadd.xlane.f32.xlu1 %v2952_v34  ;;  %v4572_v34 = vld [vmem:[%s6762_s11 + $0x20] sm:$0xff] }
0x170f   : > { %v2954_v35 = vpop.xlane.xlu1 %2953 }
0x1710   : > { %v2955_v40 = vmul.f32 0.03125, %v2954_v35 }
0x1712   : > { %v2956_v42 = vadd.f32 1e-05, %v2955_v40 }
0x1714   : > { %5376 = vrsqrt.f32 %v2956_v42 }
0x1721   : > { %v5377_v45 = vpop.eup %5376 }
0x1722   : > { %v2958_v46 = vmul.f32 %v5377_v45, %v2950_v33 }
0x1724   : > { %v2963_v49 = vmul.f32 %v2962_v44, %v2958_v46 }
0x1726   : > { %v6349_v50 = vadd.f32 %v2967_v47, %v2963_v49 }
0x1728   : > { %5151 = vmatmul.mubr.msk.f32.vlgmr.msra.gmra.mxu0 %vm844_vm2, %v6349_v50 }
0x1729   : > { %5154 = vmatpush3.msra.mxu0 %v4567_v51  ;;  %5161 = vmatprep.mubr.msk.f32.mxu0 %vm5465_vm0, %v5464_v2  ;;  %v4579_v51 = vld [vmem:[%s6763_s12 + $0x38] sm:$0xff] }
0x172a   : > { %5155 = vmatprep.subr.mxu0 %v5464_v2 }
0x172b   : > { %5156 = vmatpush3.msra.mxu0 %v4566_v52  ;;  %v4577_v52 = vld [vmem:[%s6763_s12 + $0x28] sm:$0xff] }
0x172c   : > { %5157 = vmatprep.subr.mxu0 %v5464_v2 }
0x172d   : > { %5158 = vmatpush3.msra.mxu0 %v4565_v53  ;;  %v4576_v53 = vld [vmem:[%s6763_s12 + $0x20] sm:$0xff] }
0x172e   : > { %5159 = vmatprep.subr.mxu0 %v5464_v2 }
0x172f   : > { %5160 = vmatpush3.msra.mxu0 %v4564_v54 }
0x1730   : > { %5162 = vmatmul.mubr.msk.f32.vlgmr.msra.gmra.mxu0 %vm844_vm2, %v6349_v50  ;;  %5164 = vmatprep.subr.mxu0 %v5464_v2 }
0x1731   : > { %5165 = vmatpush3.msra.mxu0 %v4571_v59  ;;  %5172 = vmatprep.mubr.msk.f32.mxu0 %vm5465_vm0, %v5464_v2 }
0x1732   : > { %5166 = vmatprep.subr.mxu0 %v5464_v2 }
0x1733   : > { %5167 = vmatpush3.msra.mxu0 %v4570_v60 }
0x1734   : > { %5168 = vmatprep.subr.mxu0 %v5464_v2 }
0x1735   : > { %5169 = vmatpush3.msra.mxu0 %v4569_v61  ;;  %v3493_v61 = vrot.slane %v6398_v3, %v5796_v11 }
0x1736   : > { %5170 = vmatprep.subr.mxu0 %v5464_v2 }
0x1737   : > { %5171 = vmatpush3.msra.mxu0 %v4568_v62 }
0x1738   : > { %5173 = vmatmul.mubr.msk.f32.vlgmr.msra.gmra.mxu0 %vm844_vm2, %v6349_v50  ;;  %5175 = vmatprep.subr.mxu0 %v5464_v2 }
0x1739   : > { %5177 = vmatprep.mubr.msk.f32.mxu0 %vm5465_vm0, %v5464_v2 }
0x17e8   : > { %v3085_v0 = vpop.f32.mrf.mxu0 }
0x17e9   : > { %v3086_v7 = vadd.f32 %v3085_v0, %v3015_v20 }
0x17ea   : > { %v5152_v1 = vpop.f32.mrf.mxu0 }
0x17eb   : > { %v3498_v1 = vrot.slane %v6398_v3, %v5799_v12 }
0x17f0   : > { %v3159_v22 = vpop.f32.mrf.mxu0 }
0x17f1   : > { %v3160_v5 = vadd.f32 %v3159_v22, %v3092_v4  ;;  %v4595_v22 = vld [vmem:[%s6764_s13 + $0xf8] sm:$0xff] }
0x17f2   : > { %v5163_v6 = vpop.f32.mrf.mxu0 }
0x17f3   : > { %5176 = vmatpush3.xpose.msk.msra.mxu0 %vm844_vm2, %v3160_v5  ;;  %v4594_v5 = vld [vmem:[%s6764_s13 + $0xf0] sm:$0xff]  ;;  %v4593_v6 = vld [vmem:[%s6764_s13 + $0xe8] sm:$0xff] }
0x17f4   : > { %5180 = vmatprep.subr.mxu0 %v5464_v2 }
0x17f6   : > { %5178 = vmatmul.mubr.msk.f32.vlgmr.msra.gmra.mxu0 %vm844_vm2, %v3086_v7  ;;  %v4592_v7 = vld [vmem:[%s6764_s13 + $0xe0] sm:$0xff] }
0x17f7   : > { %5182 = vmatprep.mubr.msk.f32.mxu0 %vm5465_vm0, %v5464_v2 }
0x17f8   : > { %v3233_v9 = vpop.f32.mrf.mxu0 }
0x17f9   : > { %v3234_v10 = vadd.f32 %v3233_v9, %v3166_v8  ;;  %v4591_v8 = vld [vmem:[%s6764_s13 + $0xd8] sm:$0xff]  ;;  %v4590_v9 = vld [vmem:[%s6764_s13 + $0xd0] sm:$0xff] }
0x17fa   : > { %v5174_v13 = vpop.f32.mrf.mxu0 }
0x17fb   : > { %5181 = vmatpush3.msra.mxu0 %v3234_v10  ;;  %v4589_v10 = vld [vmem:[%s6764_s13 + $0xc8] sm:$0xff]  ;;  %v4588_v13 = vld [vmem:[%s6764_s13 + $0xc0] sm:$0xff] }
0x17fc   : > { %5196 = vmatprep.subr.mxu0 %v5464_v2 }
0x18b6   : > { %v3309_v14 = vpop.f32.mrf.mxu0 }
0x18b7   : > { %v3313_v15 = vmul.f32 0.17677669, %v3309_v14  ;;  %v4587_v14 = vld [vmem:[%s6764_s13 + $0xb8] sm:$0xff] }
0x18b8   : > { %v5179_v16 = vpop.f32.mrf.mxu0 }
0x18b9   : > { %v3314_v17 = vadd.f32 %v6195_v57, %v3313_v15  ;;  %v4573_v57 = vld [vmem:[%s6762_s11 + $0x28] sm:$0xff]  ;;  %v4586_v15 = vld [vmem:[%s6764_s13 + $0xb0] sm:$0xff] }
0x18ba   : > { %5190 = vmatpush3.msra.mxu1 %v4573_v57  ;;  %v4585_v16 = vld [vmem:[%s6764_s13 + $0xa8] sm:$0xff] }
0x18bb   : > { %v3315_v24 = vsel %vm728_vm1, %v3314_v17, -inf  ;;  %5191 = vmatprep.subr.mxu1 %v5464_v2 }
0x18bc   : > { %3316 = vmax.xlane.f32.xlu0 %v3315_v24  ;;  %5192 = vmatpush3.msra.mxu1 %v4572_v34  ;;  %v4583_v24 = vld [vmem:[%s6764_s13 + $0x98] sm:$0xff] }
0x18bd   : > { %5207 = vmatprep.subr.mxu1 %v5464_v2 }
0x1945   : > { %v3317_v25 = vpop.xlane.xlu0 %3316 }
0x1946   : > { %v3318_v26 = vsub.f32 %v3314_v17, %v3317_v25  ;;  %v4584_v17 = vld [vmem:[%s6764_s13 + $0xa0] sm:$0xff]  ;;  %v4582_v25 = vld [vmem:[%s6764_s13 + $0x90] sm:$0xff] }
0x1948   : > { %v3319_v27 = vmul.f32 1.442695, %v3318_v26  ;;  %v4581_v26 = vld [vmem:[%s6764_s13 + $0x88] sm:$0xff] }
0x194a   : > { %5378 = vpow2.f32 %v3319_v27  ;;  %v4580_v27 = vld [vmem:[%s6764_s13 + $0x80] sm:$0xff] }
0x1957   : > { %v5379_v28 = vpop.eup %5378 }
0x1958   : > { %v3321_v18 = vsel %vm728_vm1, %v5379_v28, 0.0 }
0x1959   : > { %3322 = vadd.xlane.f32.xlu1 %v3321_v18 }
0x19e2   : > { %v3323_v32 = vpop.xlane.xlu1 %3322 }
0x19e3   : > { %5380 = vrcp.f32 %v3323_v32 }
0x19f0   : > { %v5381_v33 = vpop.eup %5380 }
0x19f1   : > { %v3325_v58 = vmul.f32 %v5381_v33, %v5379_v28  ;;  %v3503_v28 = vrot.slane %v6398_v3, %v5876_v41  ;;  %v5400_v41 = vld [vmem:[%s6809_s7 + $0x10] sm:$0xff] }
0x19f3   : > { %5183 = vmatmul.mubr.msk.f32.vlgmr.msra.gmra.mxu0 %vm728_vm1, %v3325_v58 }
0x19f4   : > { %5204 = vmatprep.mubr.msk.f32.mxu0 %vm5465_vm0, %v5464_v2  ;;  %5197 = vmatpush3.msra.mxu0 %v4579_v51 }
0x19f5   : > { %5198 = vmatprep.subr.mxu0 %v5464_v2 }
0x1ab3   : > { %v3395_v36 = vpop.f32.mrf.mxu0 }
0x1ab4   : > { %5194 = vmatmul.mubr.msk.f32.vlgmr.msra.gmra.mxu1 %vm844_vm2, %v3395_v36 }
0x1ab5   : > { %v5184_v38 = vpop.f32.mrf.mxu0  ;;  %5239 = vmatprep.mubr.msk.f32.mxu1 %vm5465_vm0, %v5464_v2  ;;  %5208 = vmatpush3.msra.mxu1 %v4595_v22 }
0x1ab6   : > { %5209 = vmatprep.subr.mxu1 %v5464_v2 }
0x1ab7   : > { %5210 = vmatpush3.msra.mxu1 %v4594_v5 }
0x1ab8   : > { %5211 = vmatprep.subr.mxu1 %v5464_v2 }
0x1ab9   : > { %5212 = vmatpush3.msra.mxu1 %v4593_v6 }
0x1aba   : > { %5213 = vmatprep.subr.mxu1 %v5464_v2 }
0x1abb   : > { %5214 = vmatpush3.msra.mxu1 %v4592_v7 }
0x1abc   : > { %5215 = vmatprep.subr.mxu1 %v5464_v2 }
0x1abd   : > { %5216 = vmatpush3.msra.mxu1 %v4591_v8  ;;  %v4597_v8 = vld [vmem:[%s6765_s14 + $0x18] sm:$0x3] }
0x1abe   : > { %5217 = vmatprep.subr.mxu1 %v5464_v2 }
0x1abf   : > { %5218 = vmatpush3.msra.mxu1 %v4590_v9  ;;  %v3677_v9 = vrot.slane %v4597_v8, %v5730_v23 }
0x1ac0   : > { %5219 = vmatprep.subr.mxu1 %v5464_v2 }
0x1ac1   : > { %5220 = vmatpush3.msra.mxu1 %v4589_v10 }
0x1ac2   : > { %5221 = vmatprep.subr.mxu1 %v5464_v2 }
0x1ac3   : > { %5222 = vmatpush3.msra.mxu1 %v4588_v13 }
0x1ac4   : > { %5223 = vmatprep.subr.mxu1 %v5464_v2 }
0x1ac5   : > { %5224 = vmatpush3.msra.mxu1 %v4587_v14  ;;  %v3682_v14 = vrot.slane %v4597_v8, %v5722_v21  ;;  %v3807_v8 = vld [vmem:[%s6769_s18 + $0x40] sm:$0xff] }
0x1ac6   : > { %5225 = vmatprep.subr.mxu1 %v5464_v2 }
0x1ac7   : > { %5226 = vmatpush3.msra.mxu1 %v4586_v15  ;;  %v4542_v15 = vld [vmem:[%s6809_s7 + $0x18] sm:$0x3]  ;;  %s5408_s7 = scalar_lea.vmem %s5407_s5, 256 }
0x1ac8   : > { %5227 = vmatprep.subr.mxu1 %v5464_v2  ;;  %p5410_p1 = scmp.lt.s32.totalorder %s5408_s7, %s5402_s2 }
0x1ac9   : > { %5228 = vmatpush3.msra.mxu1 %v4585_v16 }
0x1aca   : > { %5229 = vmatprep.subr.mxu1 %v5464_v2  ;;  %p5411_p2 = por %p5410_p1, %p5409_p0 }
0x1acb   : > { %5230 = vmatpush3.msra.mxu1 %v4584_v17 }
0x1acc   : > { %5231 = vmatprep.subr.mxu1 %v5464_v2  ;;  %p5412_p3 = pnand %p5411_p2, %p5405_p13 }
0x1acd   : > { %5232 = vmatpush3.msra.mxu1 %v4583_v24 }
0x1ace   : > { %5233 = vmatprep.subr.mxu1 %v5464_v2 }
0x1acf   : > { %5234 = vmatpush3.msra.mxu1 %v4582_v25 }
0x1ad0   : > { %5235 = vmatprep.subr.mxu1 %v5464_v2 }
0x1ad1   : > { %5236 = vmatpush3.msra.mxu1 %v4581_v26  ;;  %v3802_v26 = vld [vmem:[%s6769_s18 + $0x18] sm:$0xff] }
0x1ad2   : > { %5237 = vmatprep.subr.mxu1 %v5464_v2 }
0x1ad3   : > { %5238 = vmatpush3.msra.mxu1 %v4580_v27  ;;  %v2220_v27 = vrot.slane %v4542_v15, %v5730_v23 }
0x1ad4   : > { %5296 = vmatprep.subr.mxu1 %v5464_v2 }
0x1b74   : > { %v3472_v39 = vpop.f32.mrf.mxu1 }
0x1b75   : > { %v3473_v35 = vadd.f32 %v3472_v39, %v3402_v37 }
0x1b76   : > { %v5195_v40 = vpop.f32.mrf.mxu1 }
0x1b77   : > { %v3476_v42 = vadd.f32 %v3473_v35, %v6349_v50  ;;  %v4578_v50 = vld [vmem:[%s6763_s12 + $0x30] sm:$0xff]  ;;  %v2132_v35 = vrot.slane %v5400_v41, %v5883_v56  ;;  %v3589_v40 = vrot.slane %v6398_v3, %v5883_v56 }
0x1b78   : > { %5199 = vmatpush3.msra.mxu0 %v4578_v50 }
0x1b79   : > { %v3477_v43 = vsel %vm844_vm2, %v3476_v42, 0.0  ;;  %5200 = vmatprep.subr.mxu0 %v5464_v2 }
0x1b7a   : > { %3478 = vadd.xlane.f32.xlu0 %v3477_v43  ;;  %5201 = vmatpush3.msra.mxu0 %v4577_v52  ;;  %v2200_v43 = vadd.f32 %v6199_v63, %v2132_v35 }
0x1b7b   : > { %5202 = vmatprep.subr.mxu0 %v5464_v2 }
0x1b7c   : > { %5203 = vmatpush3.msra.mxu0 %v4576_v53 }
0x1b7d   : > { %5242 = vmatprep.subr.mxu0 %v5464_v2 }
0x1c03   : > { %v3479_v44 = vpop.xlane.xlu0 %3478 }
0x1c04   : > { %v3480_v45 = vmul.f32 0.03125, %v3479_v44 }
0x1c06   : > { %v3481_v46 = vsub.f32 %v3476_v42, %v3480_v45 }
0x1c08   : > { %v3482_v47 = vmul.f32 %v3481_v46, %v3481_v46 }
0x1c0a   : > { %v3483_v49 = vsel %vm844_vm2, %v3482_v47, 0.0 }
0x1c0b   : > { %3484 = vadd.xlane.f32.xlu1 %v3483_v49  ;;  %v2203_v49 = vadd.f32 %v2200_v43, %v6033_v48  ;;  %v3688_v48 = vld [vmem:[%s6767_s16 + $0x18] sm:$0xff] }
0x1c0d   : > { %v2204_v51 = vsel %vm844_vm2, %v2203_v49, 0.0 }
0x1c94   : > { %v3485_v54 = vpop.xlane.xlu1 %3484 }
0x1c95   : > { %v3486_v59 = vmul.f32 0.03125, %v3485_v54 }
0x1c97   : > { %v3487_v60 = vadd.f32 1e-05, %v3486_v59 }
0x1c99   : > { %5382 = vrsqrt.f32 %v3487_v60 }
0x1ca6   : > { %v5383_v62 = vpop.eup %5382 }
0x1ca7   : > { %v3489_v0 = vmul.f32 %v5383_v62, %v3481_v46  ;;  %v3687_v62 = vld [vmem:[%s6767_s16 + $0x10] sm:$0xff] }
0x1ca9   : > { %v3494_v4 = vmul.f32 %v3493_v61, %v3489_v0  ;;  %v3686_v0 = vld [vmem:[%s6767_s16 + $0x8] sm:$0xff] }
0x1cab   : > { %v6462_v20 = vadd.f32 %v3498_v1, %v3494_v4  ;;  %v3685_v1 = vld [vmem:[%s6767_s16] sm:$0xff] }
0x1cad   : > { %5205 = vmatmul.mubr.msk.f32.vlgmr.msra.gmra.mxu0 %vm844_vm2, %v6462_v20 }
0x1cae   : > { %5250 = vmatprep.mubr.msk.f32.mxu0 %vm5465_vm0, %v5464_v2  ;;  %5243 = vmatpush3.msra.mxu0 %v3688_v48 }
0x1caf   : > { %5244 = vmatprep.subr.mxu0 %v5464_v2 }
0x1cb0   : > { %5245 = vmatpush3.msra.mxu0 %v3687_v62 }
0x1cb1   : > { %5246 = vmatprep.subr.mxu0 %v5464_v2 }
0x1cb2   : > { %5247 = vmatpush3.msra.mxu0 %v3686_v0 }
0x1cb3   : > { %5248 = vmatprep.subr.mxu0 %v5464_v2 }
0x1cb4   : > { %5249 = vmatpush3.msra.mxu0 %v3685_v1 }
0x1cb5   : > { %5253 = vmatprep.subr.mxu0 %v5464_v2 }
0x1d6d   : > { %v3573_v18 = vpop.f32.mrf.mxu0 }
0x1d6e   : > { %v3574_v30 = vadd.f32 %v3573_v18, %v3503_v28  ;;  %v3801_v28 = vld [vmem:[%s6769_s18 + $0x10] sm:$0xff]  ;;  %v3800_v18 = vld [vmem:[%s6769_s18 + $0x8] sm:$0xff] }
0x1d6f   : > { %v5206_v31 = vpop.f32.mrf.mxu0 }
0x1d70   : > { %v3577_v57 = vmul.f32 %v3574_v30, %v3574_v30  ;;  %v2225_v31 = vrot.slane %v4542_v15, %v5722_v21 }
0x1d72   : > { %v3578_v32 = vmul.f32 %v3577_v57, %v3574_v30  ;;  %v3799_v57 = vld [vmem:[%s6769_s18] sm:$0xff] }
0x1d74   : > { %v3579_v33 = vmul.f32 0.044715, %v3578_v32 }
0x1d76   : > { %v3580_v58 = vadd.f32 %v3579_v33, %v3574_v30  ;;  %v3684_v33 = vld [vmem:[%s6768_s17] sm:$0x7] }
0x1d77   : > { %v3791_v62 = vrot.slane %v3684_v33, %v5722_v21  ;;  %v3796_v1 = vrot.slane %v3684_v33, %v5737_v29 }
0x1d78   : > { %v3581_v34 = vmul.f32 0.7978846, %v3580_v58  ;;  %v3692_v58 = vrot.slane %v3684_v33, %v5730_v23 }
0x1d7a   : > { %5384 = vtanh.f32 %v3581_v34 }
0x1d87   : > { %v5385_v36 = vpop.eup %5384 }
0x1d88   : > { %v3583_v38 = vadd.f32 1.0, %v5385_v36 }
0x1d8a   : > { %v3584_v37 = vmul.f32 0.5, %v3583_v38 }
0x1d8c   : > { %v3585_v39 = vmul.f32 %v3584_v37, %v3574_v30 }
0x1d8e   : > { %5240 = vmatmul.mubr.f32.vlgmr.msra.gmra.mxu1 %v3585_v39 }
0x1d8f   : > { %5304 = vmatprep.mubr.msk.f32.mxu1 %vm5465_vm0, %v5464_v2 }
0x1e4e   : > { %v3656_v42 = vpop.f32.mrf.mxu1 }
0x1e4f   : > { %v3657_v44 = vadd.f32 %v3656_v42, %v3589_v40 }
0x1e50   : > { %v5241_v45 = vpop.f32.mrf.mxu1 }
0x1e51   : > { %v3660_v46 = vadd.f32 %v3657_v44, %v6462_v20 }
0x1e53   : > { %v3661_v47 = vsel %vm844_vm2, %v3660_v46, 0.0 }
0x1e54   : > { %3662 = vadd.xlane.f32.xlu0 %v3661_v47 }
0x1e58   : > { %2205 = vadd.xlane.f32.xlu0 %v2204_v51 }
0x1edd   : > { %v3663_v50 = vpop.xlane.xlu0 %3662 }
0x1ede   : > { %v3664_v52 = vmul.f32 0.03125, %v3663_v50 }
0x1ee0   : > { %v3665_v53 = vsub.f32 %v3660_v46, %v3664_v52 }
0x1ee1   : > { %v2206_v54 = vpop.xlane.xlu0 %2205 }
0x1ee2   : > { %v2207_v56 = vmul.f32 0.03125, %v2206_v54  ;;  %v3666_v3 = vmul.f32 %v3665_v53, %v3665_v53 }
0x1ee4   : > { %v2208_v59 = vsub.f32 %v2203_v49, %v2207_v56  ;;  %v3667_v63 = vsel %vm844_vm2, %v3666_v3, 0.0  ;;  %v3806_v56 = vld [vmem:[%s6769_s18 + $0x38] sm:$0xff]  ;;  %v3805_v3 = vld [vmem:[%s6769_s18 + $0x30] sm:$0xff] }
0x1ee5   : > { %3668 = vadd.xlane.f32.xlu1 %v3667_v63  ;;  %v3803_v63 = vld [vmem:[%s6769_s18 + $0x20] sm:$0xff] }
0x1ee6   : > { %v2209_v60 = vmul.f32 %v2208_v59, %v2208_v59 }
0x1ee8   : > { %v2210_v61 = vsel %vm844_vm2, %v2209_v60, 0.0 }
0x1ee9   : > { %2211 = vadd.xlane.f32.xlu0 %v2210_v61 }
0x1f6e   : > { %v3669_v4 = vpop.xlane.xlu1 %3668 }
0x1f6f   : > { %v3670_v20 = vmul.f32 0.03125, %v3669_v4 }
0x1f71   : > { %v3671_v22 = vadd.f32 1e-05, %v3670_v20 }
0x1f72   : > { %v2212_v5 = vpop.xlane.xlu0 %2211 }
0x1f73   : > { %5386 = vrsqrt.f32 %v3671_v22  ;;  %v2213_v6 = vmul.f32 0.03125, %v2212_v5  ;;  %v3810_v5 = vld [vmem:[%s6769_s18 + $0x58] sm:$0xff] }
0x1f75   : > { %v2214_v7 = vadd.f32 1e-05, %v2213_v6  ;;  %v3809_v6 = vld [vmem:[%s6769_s18 + $0x50] sm:$0xff] }
0x1f77   : > { %5388 = vrsqrt.f32 %v2214_v7  ;;  %v3808_v7 = vld [vmem:[%s6769_s18 + $0x48] sm:$0xff] }
0x1f80   : > { %v5387_v10 = vpop.eup %5386 }
0x1f81   : > { %v3673_v13 = vmul.f32 %v5387_v10, %v3665_v53 }
0x1f83   : > { %v3678_v16 = vmul.f32 %v3677_v9, %v3673_v13  ;;  %v6656_v9 = vld [vmem:[%s6771_s20] sm:$0x3f] }
0x1f84   : > { %v5389_v17 = vpop.eup %5388  ;;  %v3891_v10 = vrot.slane %v6656_v9, %v5722_v21  ;;  %v3814_v13 = vrot.slane %v6656_v9, %v5730_v23 }
0x1f85   : > { %v2216_v24 = vmul.f32 %v5389_v17, %v2208_v59  ;;  %v6573_v25 = vadd.f32 %v3682_v14, %v3678_v16  ;;  %v3804_v59 = vld [vmem:[%s6769_s18 + $0x28] sm:$0xff] }
0x1f87   : > { %5251 = vmatmul.mubr.msk.f32.vlgmr.msra.gmra.mxu0 %vm844_vm2, %v6573_v25  ;;  %v2221_v30 = vmul.f32 %v2220_v27, %v2216_v24  ;;  %v3968_v24 = vrot.slane %v6656_v9, %v5737_v29  ;;  %vm4323_vm5 = vcmp.ne.f32.partialorder %v6573_v25, %v6573_v25  ;;  %v4303_v25 = vrot.slane %v6656_v9, %v5799_v12 }
0x1f88   : > { %5254 = vmatpush3.msra.mxu0 %v3802_v26  ;;  %5261 = vmatprep.mubr.msk.f32.mxu0 %vm5465_vm0, %v5464_v2 }
0x1f89   : > { %5255 = vmatprep.subr.mxu0 %v5464_v2  ;;  %v6596_v32 = vadd.f32 %v2225_v31, %v2221_v30  ;;  %v5401_v30 = vld [vmem:[%s6192_s25] ss:$0 sm:$0xff] }
0x1f8a   : > { %5256 = vmatpush3.msra.mxu0 %v3801_v28 }
0x1f8b   : > { %5257 = vmatprep.subr.mxu0 %v5464_v2  ;;  %vm4309_vm3 = vcmp.ne.f32.partialorder %v6596_v32, %v6596_v32 }
0x1f8c   : > { %5258 = vmatpush3.msra.mxu0 %v3800_v18 }
0x1f8d   : > { %5259 = vmatprep.subr.mxu0 %v5464_v2 }
0x1f8e   : > { %5260 = vmatpush3.msra.mxu0 %v3799_v57 }
0x1f8f   : > { %5262 = vmatmul.mubr.msk.f32.vlgmr.msra.gmra.mxu0 %vm844_vm2, %v6596_v32  ;;  %5264 = vmatprep.subr.mxu0 %v5464_v2 }
0x1f90   : > { %5272 = vmatprep.mubr.msk.f32.mxu0 %vm5465_vm0, %v5464_v2  ;;  %5265 = vmatpush3.msra.mxu0 %v3806_v56 }
0x1f91   : > { %5266 = vmatprep.subr.mxu0 %v5464_v2 }
0x1f92   : > { %5267 = vmatpush3.msra.mxu0 %v3805_v3 }
0x1f93   : > { %5268 = vmatprep.subr.mxu0 %v5464_v2 }
0x1f94   : > { %5269 = vmatpush3.msra.mxu0 %v3804_v59 }
0x1f95   : > { %5270 = vmatprep.subr.mxu0 %v5464_v2 }
0x1f96   : > { %5271 = vmatpush3.msra.mxu0 %v3803_v63  ;;  %v4615_v63 = vsel %vm4323_vm5, 1.0, %v5464_v2 }
0x1f97   : > { %5275 = vmatprep.subr.mxu0 %v5464_v2 }
0x2047   : > { %v3762_v34 = vpop.f32.mrf.mxu0 }
0x2048   : > { %v3763_v36 = vadd.f32 %v3762_v34, %v3692_v58 }
0x2049   : > { %v5252_v38 = vpop.f32.mrf.mxu0 }
0x204a   : > { %v3766_v37 = vmul.f32 %v3763_v36, %v3763_v36  ;;  %v4204_v38 = vld [vmem:[%s6770_s19 + $0x18] sm:$0xff] }
0x204b   : > { %5297 = vmatpush3.msra.mxu1 %v4204_v38 }
0x204c   : > { %v3767_v39 = vmul.f32 %v3766_v37, %v3763_v36  ;;  %v4203_v37 = vld [vmem:[%s6770_s19 + $0x10] sm:$0xff]  ;;  %5298 = vmatprep.subr.mxu1 %v5464_v2 }
0x204d   : > { %5299 = vmatpush3.msra.mxu1 %v4203_v37 }
0x204e   : > { %v3768_v41 = vmul.f32 0.044715, %v3767_v39  ;;  %v4202_v39 = vld [vmem:[%s6770_s19 + $0x8] sm:$0xff]  ;;  %5300 = vmatprep.subr.mxu1 %v5464_v2 }
0x204f   : > { %v3884_v35 = vpop.f32.mrf.mxu0  ;;  %5301 = vmatpush3.msra.mxu1 %v4202_v39 }
0x2050   : > { %v3769_v40 = vadd.f32 %v3768_v41, %v3763_v36  ;;  %v3885_v17 = vadd.f32 %v3884_v35, %v3814_v13  ;;  %5302 = vmatprep.subr.mxu1 %v5464_v2 }
0x2051   : > { %v5263_v42 = vpop.f32.mrf.mxu0 }
0x2052   : > { %v3770_v43 = vmul.f32 0.7978846, %v3769_v40  ;;  %v4201_v42 = vld [vmem:[%s6770_s19] sm:$0xff] }
0x2053   : > { %5303 = vmatpush3.msra.mxu1 %v4201_v42 }
0x2054   : > { %5390 = vtanh.f32 %v3770_v43 }
0x2061   : > { %v5391_v44 = vpop.eup %5390 }
0x2062   : > { %v3772_v45 = vadd.f32 1.0, %v5391_v44 }
0x2064   : > { %v3773_v46 = vmul.f32 0.5, %v3772_v45  ;;  %v4208_v45 = vrot.slane %v6656_v9, %v5772_v55 }
0x2066   : > { %v3774_v47 = vmul.f32 %v3773_v46, %v3763_v36 }
0x2068   : > { %v3775_v49 = vsel %vm844_vm2, %v3774_v47, 0.0 }
0x2069   : > { %3776 = vadd.xlane.f32.xlu1 %v3775_v49 }
0x20f2   : > { %v3777_v51 = vpop.xlane.xlu1 %3776 }
0x20f3   : > { %v3778_v50 = vmul.f32 0.03125, %v3777_v51 }
0x20f5   : > { %v3779_v52 = vsub.f32 %v3774_v47, %v3778_v50  ;;  %v4614_v50 = vsel %vm4309_vm3, 1.0, %v5464_v2 }
0x20f7   : > { %v3780_v53 = vmul.f32 %v3779_v52, %v3779_v52 }
0x20f9   : > { %v3781_v54 = vsel %vm844_vm2, %v3780_v53, 0.0 }
0x20fa   : > { %3782 = vadd.xlane.f32.xlu1 %v3781_v54 }
0x2183   : > { %v3783_v60 = vpop.xlane.xlu1 %3782 }
0x2184   : > { %v3784_v61 = vmul.f32 0.03125, %v3783_v60  ;;  %v4326_v60 = vsel %vm844_vm2, %v4615_v63, -inf }
0x2186   : > { %v3785_v48 = vadd.f32 1e-05, %v3784_v61 }
0x2188   : > { %5392 = vrsqrt.f32 %v3785_v48 }
0x2195   : > { %v5393_v0 = vpop.eup %5392 }
0x2196   : > { %v3787_v4 = vmul.f32 %v5393_v0, %v3779_v52  ;;  %v4312_v52 = vsel %vm844_vm2, %v4614_v50, -inf  ;;  %v4298_v0 = vrot.slane %v6656_v9, %v5796_v11 }
0x2198   : > { %v3792_v20 = vmul.f32 %v3791_v62, %v3787_v4 }
0x219a   : > { %v6627_v22 = vadd.f32 %v3796_v1, %v3792_v20 }
0x219c   : > { %5273 = vmatmul.mubr.msk.f32.vlgmr.msra.gmra.mxu0 %vm844_vm2, %v6627_v22  ;;  %vm4338_vm4 = vcmp.ne.f32.partialorder %v6627_v22, %v6627_v22 }
0x219d   : > { %5276 = vmatpush3.msra.mxu0 %v3810_v5  ;;  %5283 = vmatprep.mubr.msk.f32.mxu0 %vm5465_vm0, %v5464_v2  ;;  %v4616_v53 = vsel %vm4338_vm4, 1.0, %v5464_v2 }
0x219e   : > { %5277 = vmatprep.subr.mxu0 %v5464_v2  ;;  %v4341_v55 = vsel %vm844_vm2, %v4616_v53, -inf }
0x219f   : > { %5278 = vmatpush3.msra.mxu0 %v3809_v6 }
0x21a0   : > { %5279 = vmatprep.subr.mxu0 %v5464_v2 }
0x21a1   : > { %5280 = vmatpush3.msra.mxu0 %v3808_v7 }
0x21a2   : > { %5281 = vmatprep.subr.mxu0 %v5464_v2 }
0x21a3   : > { %5282 = vmatpush3.msra.mxu0 %v3807_v8 }
0x21a4   : > { %5284 = vmatmul.mubr.msk.f32.vlgmr.msra.gmra.mxu0 %vm844_vm2, %v6627_v22  ;;  %5286 = vmatprep.subr.mxu0 %v5464_v2 }
0x21a5   : > { %5288 = vmatprep.mubr.msk.f32.mxu0 %vm5465_vm0, %v5464_v2 }
0x225c   : > { %v3961_v14 = vpop.f32.mrf.mxu0 }
0x225d   : > { %v3962_v15 = vadd.f32 %v3961_v14, %v3891_v10 }
0x225e   : > { %v5274_v16 = vpop.f32.mrf.mxu0 }
0x225f   : > { %5287 = vmatpush3.xpose.msk.msra.mxu0 %vm844_vm2, %v3962_v15 }
0x2260   : > { %5291 = vmatprep.subr.mxu0 %v5464_v2 }
0x2262   : > { %5289 = vmatmul.mubr.msk.f32.vlgmr.msra.gmra.mxu0 %vm844_vm2, %v3885_v17 }
0x2263   : > { %5293 = vmatprep.mubr.msk.f32.mxu0 %vm5465_vm0, %v5464_v2 }
0x2264   : > { %v4035_v21 = vpop.f32.mrf.mxu0 }
0x2265   : > { %v4036_v26 = vadd.f32 %v4035_v21, %v3968_v24 }
0x2266   : > { %v5285_v23 = vpop.f32.mrf.mxu0 }
0x2267   : > { %5292 = vmatpush3.msra.mxu0 %v4036_v26 }
0x2322   : > { %v4111_v27 = vpop.f32.mrf.mxu0 }
0x2323   : > { %v4115_v28 = vmul.f32 0.17677669, %v4111_v27 }
0x2324   : > { %v5290_v18 = vpop.f32.mrf.mxu0 }
0x2325   : > { %v4116_v31 = vadd.f32 %v5401_v30, %v4115_v28 }
0x2327   : > { %v4117_v57 = vsel %vm728_vm1, %v4116_v31, -inf }
0x2328   : > { %4118 = vmax.xlane.f32.xlu0 %v4117_v57 }
0x23b1   : > { %v4119_v33 = vpop.xlane.xlu0 %4118 }
0x23b2   : > { %v4120_v58 = vsub.f32 %v4116_v31, %v4119_v33 }
0x23b4   : > { %v4121_v29 = vmul.f32 1.442695, %v4120_v58 }
0x23b6   : > { %5394 = vpow2.f32 %v4121_v29 }
0x23c3   : > { %v5395_v34 = vpop.eup %5394 }
0x23c4   : > { %v4123_v36 = vsel %vm728_vm1, %v5395_v34, 0.0 }
0x23c5   : > { %4124 = vadd.xlane.f32.xlu1 %v4123_v36 }
0x244e   : > { %v4125_v41 = vpop.xlane.xlu1 %4124 }
0x244f   : > { %5396 = vrcp.f32 %v4125_v41 }
0x245c   : > { %v5397_v35 = vpop.eup %5396 }
0x245d   : > { %v4127_v40 = vmul.f32 %v5397_v35, %v5395_v34 }
0x245f   : > { %5294 = vmatmul.mubr.msk.f32.vlgmr.msra.gmra.mxu0 %vm728_vm1, %v4127_v40 }
0x251f   : > { %v4197_v43 = vpop.f32.mrf.mxu0 }
0x2520   : > { %5305 = vmatmul.mubr.msk.f32.vlgmr.msra.gmra.mxu1 %vm844_vm2, %v4197_v43 }
0x2521   : > { %v5295_v44 = vpop.f32.mrf.mxu0 }
0x25e0   : > { %v4278_v46 = vpop.f32.mrf.mxu1 }
0x25e1   : > { %v4279_v47 = vadd.f32 %v4278_v46, %v4208_v45 }
0x25e2   : > { %v5306_v49 = vpop.f32.mrf.mxu1 }
0x25e3   : > { %v4282_v51 = vsel %vm844_vm2, %v4279_v47, 0.0 }
0x25e4   : > { %4283 = vadd.xlane.f32.xlu0 %v4282_v51 }
0x25e8   : > { %4313 = vmax.xlane.f32.xlu0 %v4312_v52 }
0x25ec   : > { %4342 = vmax.xlane.f32.xlu0 %v4341_v55 }
0x266d   : > { %v4284_v54 = vpop.xlane.xlu0 %4283 }
0x266e   : > { %v4285_v32 = vmul.f32 0.03125, %v4284_v54 }
0x2670   : > { %v4286_v56 = vsub.f32 %v4279_v47, %v4285_v32 }
0x2672   : > { %v4287_v3 = vmul.f32 %v4286_v56, %v4286_v56 }
0x2674   : > { %v4288_v59 = vsel %vm844_vm2, %v4287_v3, 0.0 }
0x2675   : > { %4289 = vadd.xlane.f32.xlu1 %v4288_v59 }
0x2679   : > { %4327 = vmax.xlane.f32.xlu1 %v4326_v60 }
0x26fe   : > { %v4290_v61 = vpop.xlane.xlu1 %4289 }
0x26ff   : > { %v4291_v48 = vmul.f32 0.03125, %v4290_v61 }
0x2701   : > { %v4292_v62 = vadd.f32 1e-05, %v4291_v48 }
0x2703   : > { %5398 = vrsqrt.f32 %v4292_v62 }
0x2710   : > { %v5399_v1 = vpop.eup %5398 }
0x2711   : > { %v4294_v4 = vmul.f32 %v5399_v1, %v4286_v56 }
0x2713   : > { %v4299_v20 = vmul.f32 %v4298_v0, %v4294_v4 }
0x2715   : > { %v4304_v22 = vadd.f32 %v4303_v25, %v4299_v20 }
0x2717   : > { %vm4353_vm6 = vcmp.ne.f32.partialorder %v4304_v22, %v4304_v22  ;;  %4305 = vst.msk [vmem:[%s699_s30] sm:$0xff] %vm844_vm2, %v4304_v22 }
0x2718   : > { %v4617_v5 = vsel %vm4353_vm6, 1.0, %v5464_v2 }
0x2719   : > { %v4356_v6 = vsel %vm844_vm2, %v4617_v5, -inf }
0x271a   : > { %4357 = vmax.xlane.f32.xlu1 %v4356_v6 }
0x271b   : > { %5415 = shalt.err (!%p5412_p3)
}
0x271c   : > { %s5416_s4 = scalar_lea.hbm %s4384_s3, 128  ;;  %s5420_s1 = scalar_lea.hbm %s6772_s21, 256 }
0x271d   : > { %p5417_p4 = scmp.ne.s32.totalorder %s4384_s3, %s5416_s4  ;;  %p5421_p9 = scmp.lt.s32.totalorder %s4384_s3, %s6772_s21 }
0x271e   : > { %p5422_p10 = scmp.lt.s32.totalorder %s5420_s1, %s5416_s4 }
0x271f   : > { %p5418_p7 = pnand %p5417_p4, %p5620_p5 }
0x2720   : > { %p5423_p11 = por %p5422_p10, %p5421_p9 }
0x2721   : > { %p5419_p8 = pneg %p5418_p7 }
0x2723   : > { %p5424_p12 = pnand %p5423_p11, %p5419_p8 }
0x2725   : > { %5427 = shalt.err (!%p5424_p12)
}
0x2726   : > { %5307 = dma.vmem_to_hbm [thread:$0]  (%p5620_p5), %s4387_s27, 128, %s4384_s3, %s4370_s29   ;;  %v4314_v2 = vpop.xlane.xlu0 %4313  ;;  %v4328_v11 = vpop.xlane.xlu1 %4327  ;;  %v4307_v28 = vand.u32 127, %v840_v19  ;;  %vm4367_vm11 = vcmask 24576  }
0x2727   : > { %v4329_v12 = vrot.slane %v4328_v11, 4  ;;  %v4315_v7 = vrot.slane %v4314_v2, 4  ;;  %s6814_s5 = sld [smem:[#allocation19_spill]] }
0x2728   : > { %vm4322_vm7 = vcmp.eq.s32.totalorder %v4307_v28, 1  ;;  %vm4308_vm8 = vcmp.eq.s32.totalorder %v4307_v28, 0  ;;  %vm4337_vm9 = vcmp.eq.s32.totalorder %v4307_v28, 2  ;;  %vm4352_vm10 = vcmp.eq.s32.totalorder %v4307_v28, 3 }
0x2729   : > { %v4330_v9 = vmax.f32 %v4328_v11, %v4329_v12  ;;  %v4316_v10 = vmax.f32 %v4314_v2, %v4315_v7 }
0x272a   : > { %v4343_v8 = vpop.xlane.xlu0 %4342 }
0x272b   : > { %v4344_v13 = vrot.slane %v4343_v8, 4  ;;  %v4331_v14 = vrot.slane %v4330_v9, 2  ;;  %v4317_v15 = vrot.slane %v4316_v10, 2 }
0x272d   : > { %v4345_v16 = vmax.f32 %v4343_v8, %v4344_v13  ;;  %v4332_v17 = vmax.f32 %v4330_v9, %v4331_v14  ;;  %v4318_v24 = vmax.f32 %v4316_v10, %v4317_v15  ;;  %s718_s2 = scalar_lea.vmem %s6814_s5, %s5641_s24 }
0x272f   : > { %v4346_v21 = vrot.slane %v4345_v16, 2  ;;  %v4333_v26 = vrot.slane %v4332_v17, 1  ;;  %v4319_v23 = vrot.slane %v4318_v24, 1 }
0x2731   : > { %v4347_v27 = vmax.f32 %v4345_v16, %v4346_v21  ;;  %v4334_v30 = vmax.f32 %v4332_v17, %v4333_v26  ;;  %v4320_v57 = vmax.f32 %v4318_v24, %v4319_v23 }
0x2733   : > { %v4348_v33 = vrot.slane %v4347_v27, 1  ;;  %v4335_v29 = vsel %vm4322_vm7, %v4334_v30, 0.0  ;;  %v4321_v36 = vsel %vm4308_vm8, %v4320_v57, 0.0 }
0x2734   : > { %v4336_v39 = vadd.f32 %v4335_v29, %v4321_v36 }
0x2735   : > { %v4349_v38 = vmax.f32 %v4347_v27, %v4348_v33 }
0x2737   : > { %v4350_v35 = vsel %vm4337_vm9, %v4349_v38, 0.0 }
0x2738   : > { %v4351_v40 = vadd.f32 %v4350_v35, %v4336_v39 }
0x27a3   : > { %v4358_v18 = vpop.xlane.xlu1 %4357 }
0x27a4   : > { %v4359_v31 = vrot.slane %v4358_v18, 4 }
0x27a6   : > { %v4360_v58 = vmax.f32 %v4358_v18, %v4359_v31 }
0x27a8   : > { %v4361_v34 = vrot.slane %v4360_v58, 2 }
0x27aa   : > { %v4362_v37 = vmax.f32 %v4360_v58, %v4361_v34 }
0x27ac   : > { %v4363_v41 = vrot.slane %v4362_v37, 1 }
0x27ae   : > { %v4364_v19 = vmax.f32 %v4362_v37, %v4363_v41 }
0x27b0   : > { %v4365_v42 = vsel %vm4352_vm10, %v4364_v19, 0.0 }
0x27b1   : > { %v4366_v43 = vadd.f32 %v4365_v42, %v4351_v40 }
0x27b3   : > { %4368 = vst.msk [vmem:[%s718_s2] sm:$0x1] %vm4367_vm11, %v4366_v43 }
0x27b4 PF: > { %s6815_s27 = sld [smem:[#allocation7_spill]] }
0x27b5   : > { %s6816_s3 = sld [smem:[#allocation5_spill]] }
0x27ba   : > { %p5313_p5 = scmp.ge.s32.totalorder %s6815_s27, 2 }
0x27bb   : > { %s4401_s23 = sand.u32 1, %s6816_s3  }
0x27bc   : > { %p5310_p13 = pnand %p5313_p5, %p5624_p6  ;;  %s4402_s4 = scalar_lea.sflag [#allocation3], %s4401_s23 }
0x27be   : > { %p5311_p0 = pneg %p5310_p13 }
0x27c0   : > { %5445 = dma.done.wait (%p5311_p0), %s4402_s4, 128  }
0x27c1   : > { %5447 = vsyncadd (%p5311_p0), %s4402_s4, 4294967168  ;;  %s6818_s30 = sld [smem:[#allocation8_spill]]  ;;  %s6821_s3 = smov %s5454_s28 }
0x27c2   : > { %s6819_s22 = sld [smem:[#allocation6_spill]] }
0x27c3   : > { %s6820_s29 = sld [smem:[#allocation9_spill]] }
0x27c7   : > { %p33_p1 = scmp.ge.s32.totalorder %s6818_s30, 4  }
0x27c8   : > { %s6822_s28 = smov %s6819_s22 }
0x27c9   :  { %35 = sbr.rel (!%p33_p1) target bundleno = 13 (0xd), region = 167 }
0x27ce   :  { %4413 = vsyncpa [#allocation3], 1 }
0x27cf   :  { %4415 = vsyncpa [#allocation3 + $0x1], 1 }

</bundles_post_ra>
